<compile_context>
chip_gen: v5e
topology: v5e:2x2
jax: 0.10.0
libtpu: 0.0.40
codegen_flags: <defaults>
</compile_context>

<pallas_src>
import functools

import jax
import jax.numpy as jnp
from jax.experimental import pallas as pl
from jax.experimental.pallas import tpu as pltpu


def _fused_state_encoder_kernel(x_ref, wc_ref, bc_ref, wf_ref, bf_ref,
                                o_ref, h_ref, acc_ref, *, c_in, hw, tkc):
    """One channel tile (tkc conv output channels) of the fused forward.

    x_ref  : (Bp, C*HW)  f32  VMEM, full NCHW-flattened input (resident)
    wc_ref : (NC*C,)     f32  SMEM, 1x1 conv weights (flat, resident)
    bc_ref : (NC,)       f32  SMEM, conv bias (resident)
    wf_ref : (TK, O)     bf16 VMEM, fc weight rows for this tile (TK = tkc*HW)
    bf_ref : (1, O)      f32  VMEM, fc bias (resident)
    o_ref  : (Bp, O)     f32  output (written on the last tile only)
    h_ref  : (Bp, TK)    bf16 VMEM scratch: conv+ReLU slab, NCHW-flatten order
    acc_ref: (Bp, O)     f32  VMEM accumulator (persists across the grid)
    """
    k = pl.program_id(0)

    @pl.when(k == 0)
    def _init():
        acc_ref[...] = jnp.zeros_like(acc_ref)

    # Per-input-channel pixel slabs (HW lane-dense), loaded once per step.
    x_slabs = [x_ref[:, ci * hw:(ci + 1) * hw] for ci in range(c_in)]

    # 1x1 conv + bias + ReLU on the VPU (f32), written straight into the
    # NCHW-flatten layout the fc weight expects. Conv weights/bias come from
    # SMEM as scalars -> one sreg splat per term, no per-step param DMAs.
    base_oc = k * tkc
    for cl in range(tkc):                      # static unroll: tkc*(c_in+1) VPU ops
        w_base = (base_oc + cl) * c_in
        acc = x_slabs[0] * wc_ref[w_base]
        for ci in range(1, c_in):
            acc = acc + x_slabs[ci] * wc_ref[w_base + ci]
        acc = acc + bc_ref[base_oc + cl]
        h_ref[:, cl * hw:(cl + 1) * hw] = jnp.maximum(acc, 0.0).astype(h_ref.dtype)

    # fc partial product for this tile's TK weight rows: bf16 x bf16 on the
    # MXU with f32 accumulation.
    acc_ref[...] += jnp.dot(h_ref[...], wf_ref[...],
                            preferred_element_type=jnp.float32)

    @pl.when(k == pl.num_programs(0) - 1)
    def _finalize():
        o_ref[...] = jnp.maximum(acc_ref[...] + bf_ref[...],
                                 0.0).astype(o_ref.dtype)


def _pick_channel_tile(nc, hw, o, wf_itemsize, vmem_budget_bytes=12 << 20):
    """Largest TKC dividing NC whose double-buffered fc-weight tile
    (2 * TKC*HW * O * itemsize bytes) fits the VMEM budget.

    Prefers TK = TKC*HW to be a multiple of 8 (sublane rule) unless TKC == NC
    (full-extent block is always legal). Fewer, fatter tiles minimize the
    ~0.35 us per-grid-step overhead; per-step compute is negligible here.
    """
    max_tk_rows = max(1, vmem_budget_bytes // (2 * o * int(wf_itemsize)))
    cap = max(1, min(nc, max_tk_rows // max(hw, 1)))
    for tkc in range(cap, 0, -1):
        if nc % tkc == 0 and ((tkc * hw) % 8 == 0 or tkc == nc):
            return tkc
    return nc


def init_state_encoder_params(key, input_dim, num_channels, output_dim):
    """PyTorch-layout params + kernel-layout params (relayouts hoisted here)."""
    C, H, W = input_dim
    NC, O = num_channels, output_dim
    HW = H * W
    k1, k2, k3, k4 = jax.random.split(key, 4)
    # PyTorch-layout parameters (used by the pure-JAX reference).
    wc = jax.random.uniform(k1, (NC, C, 1, 1), jnp.float32, -0.5, 0.5)    # conv1.weight
    bc = jax.random.uniform(k2, (NC,), jnp.float32, -0.5, 0.5)            # conv1.bias
    wf = jax.random.uniform(k3, (O, NC * HW), jnp.float32, -0.02, 0.02)   # fc1.weight
    bf = jax.random.uniform(k4, (O,), jnp.float32, -0.02, 0.02)           # fc1.bias

    # Kernel layouts, computed ONCE -- nothing is permuted per forward call.
    return {
        "wc": wc, "bc": bc, "wf": wf, "bf": bf,
        "wc_k": wc.reshape(NC * C),                # flat (NC*C,) -> SMEM scalar reads
        "bc_k": bc,                                # (NC,)       -> SMEM scalar reads
        "wf_k": wf.T.astype(jnp.bfloat16),         # (F, O) bf16: halves dominant HBM read
        "bf_k": bf.reshape(1, O),                  # (1, O) f32
    }


def state_encoder_forward(state, params, input_dim, num_channels, output_dim):
    """state: anything reshapeable to (-1, C, H, W) (NCHW, like the PyTorch view)."""
    C, H, W = input_dim
    NC, O = num_channels, output_dim
    HW = H * W
    F = NC * HW

    x_flat = state.reshape(-1, C * HW).astype(jnp.float32)   # (B, C*HW), NCHW order
    B = x_flat.shape[0]
    # Pad batch to a multiple of 8 sublane rows (min 8) so VMEM blocks aren't
    # 2/8-row masked vregs; padded rows are independent and sliced off below.
    B_pad = max(8, ((B + 7) // 8) * 8)
    if B_pad != B:
        x_flat = jnp.pad(x_flat, ((0, B_pad - B), (0, 0)))

    wc = params["wc_k"]   # (NC*C,) f32  -> SMEM
    bc = params["bc_k"]   # (NC,)   f32  -> SMEM
    wf = params["wf_k"]   # (F, O)  bf16 -> streamed VMEM tiles
    bf = params["bf_k"]   # (1, O)  f32  -> resident VMEM

    TKC = _pick_channel_tile(NC, HW, O, wf.dtype.itemsize)
    TK = TKC * HW
    grid = (NC // TKC,)

    kernel = functools.partial(_fused_state_encoder_kernel,
                               c_in=C, hw=HW, tkc=TKC)

    cost = pl.CostEstimate(
        flops=2 * B_pad * HW * C * NC + 2 * B_pad * F * O,
        transcendentals=0,
        bytes_accessed=(4 * x_flat.size + 4 * wc.size + 4 * bc.size
                        + 2 * wf.size + 4 * bf.size + 4 * B_pad * O),
    )

    # TODO(synk): for large B, add a leading 'parallel' batch grid axis
    # (~128/256-row tiles) so v7x's second TensorCore is used, the MXU is not
    # M-starved, and the (B, ...) resident blocks stay inside v7x's 64 MiB
    # VMEM (raise vmem_limit_bytes accordingly).
    out = pl.pallas_call(
        kernel,
        out_shape=jax.ShapeDtypeStruct((B_pad, O), jnp.float32),
        grid_spec=pltpu.PrefetchScalarGridSpec(
            num_scalar_prefetch=0,
            grid=grid,
            in_specs=[
                pl.BlockSpec((B_pad, C * HW), lambda k: (0, 0)),            # x (resident)
                pl.BlockSpec(memory_space=pltpu.MemorySpace.SMEM),          # conv weight (resident scalars)
                pl.BlockSpec(memory_space=pltpu.MemorySpace.SMEM),          # conv bias (resident scalars)
                pl.BlockSpec((TK, O), lambda k: (k, 0)),                    # streamed bf16 fc weight
                pl.BlockSpec((1, O), lambda k: (0, 0)),                     # fc bias (resident)
            ],
            out_specs=pl.BlockSpec((B_pad, O), lambda k: (0, 0)),
            scratch_shapes=[
                pltpu.VMEM((B_pad, TK), jnp.bfloat16),                      # conv+ReLU slab (bf16)
                pltpu.VMEM((B_pad, O), jnp.float32),                        # fc accumulator
            ],
        ),
        compiler_params=pltpu.CompilerParams(
            dimension_semantics=("arbitrary",)),                            # grid axis = reduction
        cost_estimate=cost,
    )(x_flat, wc, bc, wf, bf)

    return out[:B]


def state_encoder_reference(state, params, input_dim, num_channels, output_dim):
    """Pure-JAX f32 reference mirroring the PyTorch forward exactly."""
    C, H, W = input_dim
    NC, O = num_channels, output_dim
    state = state.reshape(-1, C, H, W).astype(jnp.float32)
    B = state.shape[0]
    wc = params["wc"].reshape(NC, C)
    conv = jnp.einsum("bchw,nc->bnhw", state, wc) + params["bc"][None, :, None, None]
    x = jnp.maximum(conv, 0.0)
    x = x.reshape(B, NC * H * W)                     # NCHW channel-major flatten
    y = jnp.maximum(x @ params["wf"].T + params["bf"][None, :], 0.0)
    return y


if __name__ == "__main__":
    input_dim = (4, 16, 16)      # (C, H, W)
    num_channels = 32
    output_dim = 128
    batch = 2

    key = jax.random.PRNGKey(0)
    kp, kx = jax.random.split(key)
    params = init_state_encoder_params(kp, input_dim, num_channels, output_dim)
    state = jax.random.normal(kx, (batch,) + input_dim, dtype=jnp.float32)

    fwd = jax.jit(functools.partial(
        state_encoder_forward, input_dim=input_dim,
        num_channels=num_channels, output_dim=output_dim))
    out = jax.block_until_ready(fwd(state, params))

    ref = state_encoder_reference(state, params, input_dim, num_channels, output_dim)
    assert out.shape == (batch, output_dim)
    # Tolerance loosened vs. the f32 reference: fc weights and the conv+ReLU
    # activations are bf16-quantized in the kernel (accumulation is f32).
    max_err = float(jnp.max(jnp.abs(out - ref)))
    assert jnp.allclose(out, ref, rtol=1e-2, atol=1e-2), (
        f"mismatch vs reference (max abs err {max_err})")

    print("KERNEL_OK")
</pallas_src>

<mosaic_0001>
module attributes {stable_mosaic.version = 11 : i64} {
  func.func @_fused_state_encoder_kernel(%arg0: i32, %arg1: memref<8x1024xf32, #tpu.memory_space<vmem>>, %arg2: memref<128xf32, #tpu.memory_space<smem>>, %arg3: memref<32xf32, #tpu.memory_space<smem>>, %arg4: memref<8192x128xbf16, #tpu.memory_space<vmem>>, %arg5: memref<1x128xf32, #tpu.memory_space<vmem>>, %arg6: memref<8x128xf32, #tpu.memory_space<vmem>>, %arg7: memref<8x8192xbf16, #tpu.memory_space<vmem>>, %arg8: memref<8x128xf32, #tpu.memory_space<vmem>>) attributes {dimension_semantics = [#tpu.dimension_semantics<arbitrary>], iteration_bounds = array<i64: 1>, scalar_prefetch = 0 : i64, scratch_operands = 2 : i64, tpu.core_type = #tpu.core_type<tc>, window_params = [{pipeline_mode = #tpu.pipeline_mode<synchronous>, transform_indices = @transform_0, window_bounds = array<i64: 8, 1024>}, {transform_indices = @transform_1, window_bounds = array<i64: 128>}, {transform_indices = @transform_2, window_bounds = array<i64: 32>}, {transform_indices = @transform_3, window_bounds = array<i64: 8192, 128>}, {pipeline_mode = #tpu.pipeline_mode<synchronous>, transform_indices = @transform_4, window_bounds = array<i64: 1, 128>}, {pipeline_mode = #tpu.pipeline_mode<synchronous>, transform_indices = @transform_5, window_bounds = array<i64: 8, 128>}]} {
    %c0_i32 = arith.constant 0 : i32
    %0 = arith.cmpi eq, %arg0, %c0_i32 : i32
    %1 = arith.extui %0 : i1 to i32
    %c0_i32_0 = arith.constant 0 : i32
    %2 = arith.cmpi ne, %1, %c0_i32_0 : i32
    scf.if %2 {
      %cst_244 = arith.constant 0.000000e+00 : f32
      %1073 = vector.broadcast %cst_244 : f32 to vector<8x128xf32>
      %c0_245 = arith.constant 0 : index
      %c0_246 = arith.constant 0 : index
      %1074 = vector.load %arg8[%c0_245, %c0_246] : memref<8x128xf32, #tpu.memory_space<vmem>>, vector<8x128xf32>
      tpu.vector_store %arg8[%c0_245, %c0_246], %1073 {strides = array<i32>} : memref<8x128xf32, #tpu.memory_space<vmem>>, vector<8x128xf32>,
    } else {
    }
    %c0 = arith.constant 0 : index
    %c0_1 = arith.constant 0 : index
    %3 = vector.load %arg1[%c0, %c0_1] : memref<8x1024xf32, #tpu.memory_space<vmem>>, vector<8x256xf32>
    %c0_2 = arith.constant 0 : index
    %c256 = arith.constant 256 : index
    %4 = vector.load %arg1[%c0_2, %c256] : memref<8x1024xf32, #tpu.memory_space<vmem>>, vector<8x256xf32>
    %c0_3 = arith.constant 0 : index
    %c512 = arith.constant 512 : index
    %5 = vector.load %arg1[%c0_3, %c512] : memref<8x1024xf32, #tpu.memory_space<vmem>>, vector<8x256xf32>
    %c0_4 = arith.constant 0 : index
    %c768 = arith.constant 768 : index
    %6 = vector.load %arg1[%c0_4, %c768] : memref<8x1024xf32, #tpu.memory_space<vmem>>, vector<8x256xf32>
    %c32_i32 = arith.constant 32 : i32
    %7 = arith.muli %arg0, %c32_i32 : i32
    %c0_i32_5 = arith.constant 0 : i32
    %8 = arith.addi %7, %c0_i32_5 : i32
    %c4_i32 = arith.constant 4 : i32
    %9 = arith.muli %8, %c4_i32 : i32
    %10 = arith.index_cast %9 : i32 to index
    %11 = memref.load %arg2[%10] : memref<128xf32, #tpu.memory_space<smem>>
    %12 = vector.broadcast %11 : f32 to vector<8x256xf32>
    %13 = arith.mulf %3, %12 : vector<8x256xf32>
    %c1_i32 = arith.constant 1 : i32
    %14 = arith.addi %9, %c1_i32 : i32
    %15 = arith.index_cast %14 : i32 to index
    %16 = memref.load %arg2[%15] : memref<128xf32, #tpu.memory_space<smem>>
    %17 = vector.broadcast %16 : f32 to vector<8x256xf32>
    %18 = arith.mulf %4, %17 : vector<8x256xf32>
    %19 = arith.addf %13, %18 : vector<8x256xf32>
    %c2_i32 = arith.constant 2 : i32
    %20 = arith.addi %9, %c2_i32 : i32
    %21 = arith.index_cast %20 : i32 to index
    %22 = memref.load %arg2[%21] : memref<128xf32, #tpu.memory_space<smem>>
    %23 = vector.broadcast %22 : f32 to vector<8x256xf32>
    %24 = arith.mulf %5, %23 : vector<8x256xf32>
    %25 = arith.addf %19, %24 : vector<8x256xf32>
    %c3_i32 = arith.constant 3 : i32
    %26 = arith.addi %9, %c3_i32 : i32
    %27 = arith.index_cast %26 : i32 to index
    %28 = memref.load %arg2[%27] : memref<128xf32, #tpu.memory_space<smem>>
    %29 = vector.broadcast %28 : f32 to vector<8x256xf32>
    %30 = arith.mulf %6, %29 : vector<8x256xf32>
    %31 = arith.addf %25, %30 : vector<8x256xf32>
    %c0_i32_6 = arith.constant 0 : i32
    %32 = arith.addi %7, %c0_i32_6 : i32
    %33 = arith.index_cast %32 : i32 to index
    %34 = memref.load %arg3[%33] : memref<32xf32, #tpu.memory_space<smem>>
    %35 = vector.broadcast %34 : f32 to vector<8x256xf32>
    %36 = arith.addf %31, %35 : vector<8x256xf32>
    %cst = arith.constant 0.000000e+00 : f32
    %37 = vector.broadcast %cst : f32 to vector<8x256xf32>
    %38 = arith.maximumf %36, %37 : vector<8x256xf32>
    %39 = arith.truncf %38 : vector<8x256xf32> to vector<8x256xbf16>
    %c0_7 = arith.constant 0 : index
    %c0_8 = arith.constant 0 : index
    %40 = vector.load %arg7[%c0_7, %c0_8] : memref<8x8192xbf16, #tpu.memory_space<vmem>>, vector<8x256xbf16>
    tpu.vector_store %arg7[%c0_7, %c0_8], %39 {strides = array<i32>} : memref<8x8192xbf16, #tpu.memory_space<vmem>>, vector<8x256xbf16>,
    %c1_i32_9 = arith.constant 1 : i32
    %41 = arith.addi %7, %c1_i32_9 : i32
    %c4_i32_10 = arith.constant 4 : i32
    %42 = arith.muli %41, %c4_i32_10 : i32
    %43 = arith.index_cast %42 : i32 to index
    %44 = memref.load %arg2[%43] : memref<128xf32, #tpu.memory_space<smem>>
    %45 = vector.broadcast %44 : f32 to vector<8x256xf32>
    %46 = arith.mulf %3, %45 : vector<8x256xf32>
    %c1_i32_11 = arith.constant 1 : i32
    %47 = arith.addi %42, %c1_i32_11 : i32
    %48 = arith.index_cast %47 : i32 to index
    %49 = memref.load %arg2[%48] : memref<128xf32, #tpu.memory_space<smem>>
    %50 = vector.broadcast %49 : f32 to vector<8x256xf32>
    %51 = arith.mulf %4, %50 : vector<8x256xf32>
    %52 = arith.addf %46, %51 : vector<8x256xf32>
    %c2_i32_12 = arith.constant 2 : i32
    %53 = arith.addi %42, %c2_i32_12 : i32
    %54 = arith.index_cast %53 : i32 to index
    %55 = memref.load %arg2[%54] : memref<128xf32, #tpu.memory_space<smem>>
    %56 = vector.broadcast %55 : f32 to vector<8x256xf32>
    %57 = arith.mulf %5, %56 : vector<8x256xf32>
    %58 = arith.addf %52, %57 : vector<8x256xf32>
    %c3_i32_13 = arith.constant 3 : i32
    %59 = arith.addi %42, %c3_i32_13 : i32
    %60 = arith.index_cast %59 : i32 to index
    %61 = memref.load %arg2[%60] : memref<128xf32, #tpu.memory_space<smem>>
    %62 = vector.broadcast %61 : f32 to vector<8x256xf32>
    %63 = arith.mulf %6, %62 : vector<8x256xf32>
    %64 = arith.addf %58, %63 : vector<8x256xf32>
    %c1_i32_14 = arith.constant 1 : i32
    %65 = arith.addi %7, %c1_i32_14 : i32
    %66 = arith.index_cast %65 : i32 to index
    %67 = memref.load %arg3[%66] : memref<32xf32, #tpu.memory_space<smem>>
    %68 = vector.broadcast %67 : f32 to vector<8x256xf32>
    %69 = arith.addf %64, %68 : vector<8x256xf32>
    %cst_15 = arith.constant 0.000000e+00 : f32
    %70 = vector.broadcast %cst_15 : f32 to vector<8x256xf32>
    %71 = arith.maximumf %69, %70 : vector<8x256xf32>
    %72 = arith.truncf %71 : vector<8x256xf32> to vector<8x256xbf16>
    %c0_16 = arith.constant 0 : index
    %c256_17 = arith.constant 256 : index
    %73 = vector.load %arg7[%c0_16, %c256_17] : memref<8x8192xbf16, #tpu.memory_space<vmem>>, vector<8x256xbf16>
    tpu.vector_store %arg7[%c0_16, %c256_17], %72 {strides = array<i32>} : memref<8x8192xbf16, #tpu.memory_space<vmem>>, vector<8x256xbf16>,
    %c2_i32_18 = arith.constant 2 : i32
    %74 = arith.addi %7, %c2_i32_18 : i32
    %c4_i32_19 = arith.constant 4 : i32
    %75 = arith.muli %74, %c4_i32_19 : i32
    %76 = arith.index_cast %75 : i32 to index
    %77 = memref.load %arg2[%76] : memref<128xf32, #tpu.memory_space<smem>>
    %78 = vector.broadcast %77 : f32 to vector<8x256xf32>
    %79 = arith.mulf %3, %78 : vector<8x256xf32>
    %c1_i32_20 = arith.constant 1 : i32
    %80 = arith.addi %75, %c1_i32_20 : i32
    %81 = arith.index_cast %80 : i32 to index
    %82 = memref.load %arg2[%81] : memref<128xf32, #tpu.memory_space<smem>>
    %83 = vector.broadcast %82 : f32 to vector<8x256xf32>
    %84 = arith.mulf %4, %83 : vector<8x256xf32>
    %85 = arith.addf %79, %84 : vector<8x256xf32>
    %c2_i32_21 = arith.constant 2 : i32
    %86 = arith.addi %75, %c2_i32_21 : i32
    %87 = arith.index_cast %86 : i32 to index
    %88 = memref.load %arg2[%87] : memref<128xf32, #tpu.memory_space<smem>>
    %89 = vector.broadcast %88 : f32 to vector<8x256xf32>
    %90 = arith.mulf %5, %89 : vector<8x256xf32>
    %91 = arith.addf %85, %90 : vector<8x256xf32>
    %c3_i32_22 = arith.constant 3 : i32
    %92 = arith.addi %75, %c3_i32_22 : i32
    %93 = arith.index_cast %92 : i32 to index
    %94 = memref.load %arg2[%93] : memref<128xf32, #tpu.memory_space<smem>>
    %95 = vector.broadcast %94 : f32 to vector<8x256xf32>
    %96 = arith.mulf %6, %95 : vector<8x256xf32>
    %97 = arith.addf %91, %96 : vector<8x256xf32>
    %c2_i32_23 = arith.constant 2 : i32
    %98 = arith.addi %7, %c2_i32_23 : i32
    %99 = arith.index_cast %98 : i32 to index
    %100 = memref.load %arg3[%99] : memref<32xf32, #tpu.memory_space<smem>>
    %101 = vector.broadcast %100 : f32 to vector<8x256xf32>
    %102 = arith.addf %97, %101 : vector<8x256xf32>
    %cst_24 = arith.constant 0.000000e+00 : f32
    %103 = vector.broadcast %cst_24 : f32 to vector<8x256xf32>
    %104 = arith.maximumf %102, %103 : vector<8x256xf32>
    %105 = arith.truncf %104 : vector<8x256xf32> to vector<8x256xbf16>
    %c0_25 = arith.constant 0 : index
    %c512_26 = arith.constant 512 : index
    %106 = vector.load %arg7[%c0_25, %c512_26] : memref<8x8192xbf16, #tpu.memory_space<vmem>>, vector<8x256xbf16>
    tpu.vector_store %arg7[%c0_25, %c512_26], %105 {strides = array<i32>} : memref<8x8192xbf16, #tpu.memory_space<vmem>>, vector<8x256xbf16>,
    %c3_i32_27 = arith.constant 3 : i32
    %107 = arith.addi %7, %c3_i32_27 : i32
    %c4_i32_28 = arith.constant 4 : i32
    %108 = arith.muli %107, %c4_i32_28 : i32
    %109 = arith.index_cast %108 : i32 to index
    %110 = memref.load %arg2[%109] : memref<128xf32, #tpu.memory_space<smem>>
    %111 = vector.broadcast %110 : f32 to vector<8x256xf32>
    %112 = arith.mulf %3, %111 : vector<8x256xf32>
    %c1_i32_29 = arith.constant 1 : i32
    %113 = arith.addi %108, %c1_i32_29 : i32
    %114 = arith.index_cast %113 : i32 to index
    %115 = memref.load %arg2[%114] : memref<128xf32, #tpu.memory_space<smem>>
    %116 = vector.broadcast %115 : f32 to vector<8x256xf32>
    %117 = arith.mulf %4, %116 : vector<8x256xf32>
    %118 = arith.addf %112, %117 : vector<8x256xf32>
    %c2_i32_30 = arith.constant 2 : i32
    %119 = arith.addi %108, %c2_i32_30 : i32
    %120 = arith.index_cast %119 : i32 to index
    %121 = memref.load %arg2[%120] : memref<128xf32, #tpu.memory_space<smem>>
    %122 = vector.broadcast %121 : f32 to vector<8x256xf32>
    %123 = arith.mulf %5, %122 : vector<8x256xf32>
    %124 = arith.addf %118, %123 : vector<8x256xf32>
    %c3_i32_31 = arith.constant 3 : i32
    %125 = arith.addi %108, %c3_i32_31 : i32
    %126 = arith.index_cast %125 : i32 to index
    %127 = memref.load %arg2[%126] : memref<128xf32, #tpu.memory_space<smem>>
    %128 = vector.broadcast %127 : f32 to vector<8x256xf32>
    %129 = arith.mulf %6, %128 : vector<8x256xf32>
    %130 = arith.addf %124, %129 : vector<8x256xf32>
    %c3_i32_32 = arith.constant 3 : i32
    %131 = arith.addi %7, %c3_i32_32 : i32
    %132 = arith.index_cast %131 : i32 to index
    %133 = memref.load %arg3[%132] : memref<32xf32, #tpu.memory_space<smem>>
    %134 = vector.broadcast %133 : f32 to vector<8x256xf32>
    %135 = arith.addf %130, %134 : vector<8x256xf32>
    %cst_33 = arith.constant 0.000000e+00 : f32
    %136 = vector.broadcast %cst_33 : f32 to vector<8x256xf32>
    %137 = arith.maximumf %135, %136 : vector<8x256xf32>
    %138 = arith.truncf %137 : vector<8x256xf32> to vector<8x256xbf16>
    %c0_34 = arith.constant 0 : index
    %c768_35 = arith.constant 768 : index
    %139 = vector.load %arg7[%c0_34, %c768_35] : memref<8x8192xbf16, #tpu.memory_space<vmem>>, vector<8x256xbf16>
    tpu.vector_store %arg7[%c0_34, %c768_35], %138 {strides = array<i32>} : memref<8x8192xbf16, #tpu.memory_space<vmem>>, vector<8x256xbf16>,
    %c4_i32_36 = arith.constant 4 : i32
    %140 = arith.addi %7, %c4_i32_36 : i32
    %c4_i32_37 = arith.constant 4 : i32
    %141 = arith.muli %140, %c4_i32_37 : i32
    %142 = arith.index_cast %141 : i32 to index
    %143 = memref.load %arg2[%142] : memref<128xf32, #tpu.memory_space<smem>>
    %144 = vector.broadcast %143 : f32 to vector<8x256xf32>
    %145 = arith.mulf %3, %144 : vector<8x256xf32>
    %c1_i32_38 = arith.constant 1 : i32
    %146 = arith.addi %141, %c1_i32_38 : i32
    %147 = arith.index_cast %146 : i32 to index
    %148 = memref.load %arg2[%147] : memref<128xf32, #tpu.memory_space<smem>>
    %149 = vector.broadcast %148 : f32 to vector<8x256xf32>
    %150 = arith.mulf %4, %149 : vector<8x256xf32>
    %151 = arith.addf %145, %150 : vector<8x256xf32>
    %c2_i32_39 = arith.constant 2 : i32
    %152 = arith.addi %141, %c2_i32_39 : i32
    %153 = arith.index_cast %152 : i32 to index
    %154 = memref.load %arg2[%153] : memref<128xf32, #tpu.memory_space<smem>>
    %155 = vector.broadcast %154 : f32 to vector<8x256xf32>
    %156 = arith.mulf %5, %155 : vector<8x256xf32>
    %157 = arith.addf %151, %156 : vector<8x256xf32>
    %c3_i32_40 = arith.constant 3 : i32
    %158 = arith.addi %141, %c3_i32_40 : i32
    %159 = arith.index_cast %158 : i32 to index
    %160 = memref.load %arg2[%159] : memref<128xf32, #tpu.memory_space<smem>>
    %161 = vector.broadcast %160 : f32 to vector<8x256xf32>
    %162 = arith.mulf %6, %161 : vector<8x256xf32>
    %163 = arith.addf %157, %162 : vector<8x256xf32>
    %c4_i32_41 = arith.constant 4 : i32
    %164 = arith.addi %7, %c4_i32_41 : i32
    %165 = arith.index_cast %164 : i32 to index
    %166 = memref.load %arg3[%165] : memref<32xf32, #tpu.memory_space<smem>>
    %167 = vector.broadcast %166 : f32 to vector<8x256xf32>
    %168 = arith.addf %163, %167 : vector<8x256xf32>
    %cst_42 = arith.constant 0.000000e+00 : f32
    %169 = vector.broadcast %cst_42 : f32 to vector<8x256xf32>
    %170 = arith.maximumf %168, %169 : vector<8x256xf32>
    %171 = arith.truncf %170 : vector<8x256xf32> to vector<8x256xbf16>
    %c0_43 = arith.constant 0 : index
    %c1024 = arith.constant 1024 : index
    %172 = vector.load %arg7[%c0_43, %c1024] : memref<8x8192xbf16, #tpu.memory_space<vmem>>, vector<8x256xbf16>
    tpu.vector_store %arg7[%c0_43, %c1024], %171 {strides = array<i32>} : memref<8x8192xbf16, #tpu.memory_space<vmem>>, vector<8x256xbf16>,
    %c5_i32 = arith.constant 5 : i32
    %173 = arith.addi %7, %c5_i32 : i32
    %c4_i32_44 = arith.constant 4 : i32
    %174 = arith.muli %173, %c4_i32_44 : i32
    %175 = arith.index_cast %174 : i32 to index
    %176 = memref.load %arg2[%175] : memref<128xf32, #tpu.memory_space<smem>>
    %177 = vector.broadcast %176 : f32 to vector<8x256xf32>
    %178 = arith.mulf %3, %177 : vector<8x256xf32>
    %c1_i32_45 = arith.constant 1 : i32
    %179 = arith.addi %174, %c1_i32_45 : i32
    %180 = arith.index_cast %179 : i32 to index
    %181 = memref.load %arg2[%180] : memref<128xf32, #tpu.memory_space<smem>>
    %182 = vector.broadcast %181 : f32 to vector<8x256xf32>
    %183 = arith.mulf %4, %182 : vector<8x256xf32>
    %184 = arith.addf %178, %183 : vector<8x256xf32>
    %c2_i32_46 = arith.constant 2 : i32
    %185 = arith.addi %174, %c2_i32_46 : i32
    %186 = arith.index_cast %185 : i32 to index
    %187 = memref.load %arg2[%186] : memref<128xf32, #tpu.memory_space<smem>>
    %188 = vector.broadcast %187 : f32 to vector<8x256xf32>
    %189 = arith.mulf %5, %188 : vector<8x256xf32>
    %190 = arith.addf %184, %189 : vector<8x256xf32>
    %c3_i32_47 = arith.constant 3 : i32
    %191 = arith.addi %174, %c3_i32_47 : i32
    %192 = arith.index_cast %191 : i32 to index
    %193 = memref.load %arg2[%192] : memref<128xf32, #tpu.memory_space<smem>>
    %194 = vector.broadcast %193 : f32 to vector<8x256xf32>
    %195 = arith.mulf %6, %194 : vector<8x256xf32>
    %196 = arith.addf %190, %195 : vector<8x256xf32>
    %c5_i32_48 = arith.constant 5 : i32
    %197 = arith.addi %7, %c5_i32_48 : i32
    %198 = arith.index_cast %197 : i32 to index
    %199 = memref.load %arg3[%198] : memref<32xf32, #tpu.memory_space<smem>>
    %200 = vector.broadcast %199 : f32 to vector<8x256xf32>
    %201 = arith.addf %196, %200 : vector<8x256xf32>
    %cst_49 = arith.constant 0.000000e+00 : f32
    %202 = vector.broadcast %cst_49 : f32 to vector<8x256xf32>
    %203 = arith.maximumf %201, %202 : vector<8x256xf32>
    %204 = arith.truncf %203 : vector<8x256xf32> to vector<8x256xbf16>
    %c0_50 = arith.constant 0 : index
    %c1280 = arith.constant 1280 : index
    %205 = vector.load %arg7[%c0_50, %c1280] : memref<8x8192xbf16, #tpu.memory_space<vmem>>, vector<8x256xbf16>
    tpu.vector_store %arg7[%c0_50, %c1280], %204 {strides = array<i32>} : memref<8x8192xbf16, #tpu.memory_space<vmem>>, vector<8x256xbf16>,
    %c6_i32 = arith.constant 6 : i32
    %206 = arith.addi %7, %c6_i32 : i32
    %c4_i32_51 = arith.constant 4 : i32
    %207 = arith.muli %206, %c4_i32_51 : i32
    %208 = arith.index_cast %207 : i32 to index
    %209 = memref.load %arg2[%208] : memref<128xf32, #tpu.memory_space<smem>>
    %210 = vector.broadcast %209 : f32 to vector<8x256xf32>
    %211 = arith.mulf %3, %210 : vector<8x256xf32>
    %c1_i32_52 = arith.constant 1 : i32
    %212 = arith.addi %207, %c1_i32_52 : i32
    %213 = arith.index_cast %212 : i32 to index
    %214 = memref.load %arg2[%213] : memref<128xf32, #tpu.memory_space<smem>>
    %215 = vector.broadcast %214 : f32 to vector<8x256xf32>
    %216 = arith.mulf %4, %215 : vector<8x256xf32>
    %217 = arith.addf %211, %216 : vector<8x256xf32>
    %c2_i32_53 = arith.constant 2 : i32
    %218 = arith.addi %207, %c2_i32_53 : i32
    %219 = arith.index_cast %218 : i32 to index
    %220 = memref.load %arg2[%219] : memref<128xf32, #tpu.memory_space<smem>>
    %221 = vector.broadcast %220 : f32 to vector<8x256xf32>
    %222 = arith.mulf %5, %221 : vector<8x256xf32>
    %223 = arith.addf %217, %222 : vector<8x256xf32>
    %c3_i32_54 = arith.constant 3 : i32
    %224 = arith.addi %207, %c3_i32_54 : i32
    %225 = arith.index_cast %224 : i32 to index
    %226 = memref.load %arg2[%225] : memref<128xf32, #tpu.memory_space<smem>>
    %227 = vector.broadcast %226 : f32 to vector<8x256xf32>
    %228 = arith.mulf %6, %227 : vector<8x256xf32>
    %229 = arith.addf %223, %228 : vector<8x256xf32>
    %c6_i32_55 = arith.constant 6 : i32
    %230 = arith.addi %7, %c6_i32_55 : i32
    %231 = arith.index_cast %230 : i32 to index
    %232 = memref.load %arg3[%231] : memref<32xf32, #tpu.memory_space<smem>>
    %233 = vector.broadcast %232 : f32 to vector<8x256xf32>
    %234 = arith.addf %229, %233 : vector<8x256xf32>
    %cst_56 = arith.constant 0.000000e+00 : f32
    %235 = vector.broadcast %cst_56 : f32 to vector<8x256xf32>
    %236 = arith.maximumf %234, %235 : vector<8x256xf32>
    %237 = arith.truncf %236 : vector<8x256xf32> to vector<8x256xbf16>
    %c0_57 = arith.constant 0 : index
    %c1536 = arith.constant 1536 : index
    %238 = vector.load %arg7[%c0_57, %c1536] : memref<8x8192xbf16, #tpu.memory_space<vmem>>, vector<8x256xbf16>
    tpu.vector_store %arg7[%c0_57, %c1536], %237 {strides = array<i32>} : memref<8x8192xbf16, #tpu.memory_space<vmem>>, vector<8x256xbf16>,
    %c7_i32 = arith.constant 7 : i32
    %239 = arith.addi %7, %c7_i32 : i32
    %c4_i32_58 = arith.constant 4 : i32
    %240 = arith.muli %239, %c4_i32_58 : i32
    %241 = arith.index_cast %240 : i32 to index
    %242 = memref.load %arg2[%241] : memref<128xf32, #tpu.memory_space<smem>>
    %243 = vector.broadcast %242 : f32 to vector<8x256xf32>
    %244 = arith.mulf %3, %243 : vector<8x256xf32>
    %c1_i32_59 = arith.constant 1 : i32
    %245 = arith.addi %240, %c1_i32_59 : i32
    %246 = arith.index_cast %245 : i32 to index
    %247 = memref.load %arg2[%246] : memref<128xf32, #tpu.memory_space<smem>>
    %248 = vector.broadcast %247 : f32 to vector<8x256xf32>
    %249 = arith.mulf %4, %248 : vector<8x256xf32>
    %250 = arith.addf %244, %249 : vector<8x256xf32>
    %c2_i32_60 = arith.constant 2 : i32
    %251 = arith.addi %240, %c2_i32_60 : i32
    %252 = arith.index_cast %251 : i32 to index
    %253 = memref.load %arg2[%252] : memref<128xf32, #tpu.memory_space<smem>>
    %254 = vector.broadcast %253 : f32 to vector<8x256xf32>
    %255 = arith.mulf %5, %254 : vector<8x256xf32>
    %256 = arith.addf %250, %255 : vector<8x256xf32>
    %c3_i32_61 = arith.constant 3 : i32
    %257 = arith.addi %240, %c3_i32_61 : i32
    %258 = arith.index_cast %257 : i32 to index
    %259 = memref.load %arg2[%258] : memref<128xf32, #tpu.memory_space<smem>>
    %260 = vector.broadcast %259 : f32 to vector<8x256xf32>
    %261 = arith.mulf %6, %260 : vector<8x256xf32>
    %262 = arith.addf %256, %261 : vector<8x256xf32>
    %c7_i32_62 = arith.constant 7 : i32
    %263 = arith.addi %7, %c7_i32_62 : i32
    %264 = arith.index_cast %263 : i32 to index
    %265 = memref.load %arg3[%264] : memref<32xf32, #tpu.memory_space<smem>>
    %266 = vector.broadcast %265 : f32 to vector<8x256xf32>
    %267 = arith.addf %262, %266 : vector<8x256xf32>
    %cst_63 = arith.constant 0.000000e+00 : f32
    %268 = vector.broadcast %cst_63 : f32 to vector<8x256xf32>
    %269 = arith.maximumf %267, %268 : vector<8x256xf32>
    %270 = arith.truncf %269 : vector<8x256xf32> to vector<8x256xbf16>
    %c0_64 = arith.constant 0 : index
    %c1792 = arith.constant 1792 : index
    %271 = vector.load %arg7[%c0_64, %c1792] : memref<8x8192xbf16, #tpu.memory_space<vmem>>, vector<8x256xbf16>
    tpu.vector_store %arg7[%c0_64, %c1792], %270 {strides = array<i32>} : memref<8x8192xbf16, #tpu.memory_space<vmem>>, vector<8x256xbf16>,
    %c8_i32 = arith.constant 8 : i32
    %272 = arith.addi %7, %c8_i32 : i32
    %c4_i32_65 = arith.constant 4 : i32
    %273 = arith.muli %272, %c4_i32_65 : i32
    %274 = arith.index_cast %273 : i32 to index
    %275 = memref.load %arg2[%274] : memref<128xf32, #tpu.memory_space<smem>>
    %276 = vector.broadcast %275 : f32 to vector<8x256xf32>
    %277 = arith.mulf %3, %276 : vector<8x256xf32>
    %c1_i32_66 = arith.constant 1 : i32
    %278 = arith.addi %273, %c1_i32_66 : i32
    %279 = arith.index_cast %278 : i32 to index
    %280 = memref.load %arg2[%279] : memref<128xf32, #tpu.memory_space<smem>>
    %281 = vector.broadcast %280 : f32 to vector<8x256xf32>
    %282 = arith.mulf %4, %281 : vector<8x256xf32>
    %283 = arith.addf %277, %282 : vector<8x256xf32>
    %c2_i32_67 = arith.constant 2 : i32
    %284 = arith.addi %273, %c2_i32_67 : i32
    %285 = arith.index_cast %284 : i32 to index
    %286 = memref.load %arg2[%285] : memref<128xf32, #tpu.memory_space<smem>>
    %287 = vector.broadcast %286 : f32 to vector<8x256xf32>
    %288 = arith.mulf %5, %287 : vector<8x256xf32>
    %289 = arith.addf %283, %288 : vector<8x256xf32>
    %c3_i32_68 = arith.constant 3 : i32
    %290 = arith.addi %273, %c3_i32_68 : i32
    %291 = arith.index_cast %290 : i32 to index
    %292 = memref.load %arg2[%291] : memref<128xf32, #tpu.memory_space<smem>>
    %293 = vector.broadcast %292 : f32 to vector<8x256xf32>
    %294 = arith.mulf %6, %293 : vector<8x256xf32>
    %295 = arith.addf %289, %294 : vector<8x256xf32>
    %c8_i32_69 = arith.constant 8 : i32
    %296 = arith.addi %7, %c8_i32_69 : i32
    %297 = arith.index_cast %296 : i32 to index
    %298 = memref.load %arg3[%297] : memref<32xf32, #tpu.memory_space<smem>>
    %299 = vector.broadcast %298 : f32 to vector<8x256xf32>
    %300 = arith.addf %295, %299 : vector<8x256xf32>
    %cst_70 = arith.constant 0.000000e+00 : f32
    %301 = vector.broadcast %cst_70 : f32 to vector<8x256xf32>
    %302 = arith.maximumf %300, %301 : vector<8x256xf32>
    %303 = arith.truncf %302 : vector<8x256xf32> to vector<8x256xbf16>
    %c0_71 = arith.constant 0 : index
    %c2048 = arith.constant 2048 : index
    %304 = vector.load %arg7[%c0_71, %c2048] : memref<8x8192xbf16, #tpu.memory_space<vmem>>, vector<8x256xbf16>
    tpu.vector_store %arg7[%c0_71, %c2048], %303 {strides = array<i32>} : memref<8x8192xbf16, #tpu.memory_space<vmem>>, vector<8x256xbf16>,
    %c9_i32 = arith.constant 9 : i32
    %305 = arith.addi %7, %c9_i32 : i32
    %c4_i32_72 = arith.constant 4 : i32
    %306 = arith.muli %305, %c4_i32_72 : i32
    %307 = arith.index_cast %306 : i32 to index
    %308 = memref.load %arg2[%307] : memref<128xf32, #tpu.memory_space<smem>>
    %309 = vector.broadcast %308 : f32 to vector<8x256xf32>
    %310 = arith.mulf %3, %309 : vector<8x256xf32>
    %c1_i32_73 = arith.constant 1 : i32
    %311 = arith.addi %306, %c1_i32_73 : i32
    %312 = arith.index_cast %311 : i32 to index
    %313 = memref.load %arg2[%312] : memref<128xf32, #tpu.memory_space<smem>>
    %314 = vector.broadcast %313 : f32 to vector<8x256xf32>
    %315 = arith.mulf %4, %314 : vector<8x256xf32>
    %316 = arith.addf %310, %315 : vector<8x256xf32>
    %c2_i32_74 = arith.constant 2 : i32
    %317 = arith.addi %306, %c2_i32_74 : i32
    %318 = arith.index_cast %317 : i32 to index
    %319 = memref.load %arg2[%318] : memref<128xf32, #tpu.memory_space<smem>>
    %320 = vector.broadcast %319 : f32 to vector<8x256xf32>
    %321 = arith.mulf %5, %320 : vector<8x256xf32>
    %322 = arith.addf %316, %321 : vector<8x256xf32>
    %c3_i32_75 = arith.constant 3 : i32
    %323 = arith.addi %306, %c3_i32_75 : i32
    %324 = arith.index_cast %323 : i32 to index
    %325 = memref.load %arg2[%324] : memref<128xf32, #tpu.memory_space<smem>>
    %326 = vector.broadcast %325 : f32 to vector<8x256xf32>
    %327 = arith.mulf %6, %326 : vector<8x256xf32>
    %328 = arith.addf %322, %327 : vector<8x256xf32>
    %c9_i32_76 = arith.constant 9 : i32
    %329 = arith.addi %7, %c9_i32_76 : i32
    %330 = arith.index_cast %329 : i32 to index
    %331 = memref.load %arg3[%330] : memref<32xf32, #tpu.memory_space<smem>>
    %332 = vector.broadcast %331 : f32 to vector<8x256xf32>
    %333 = arith.addf %328, %332 : vector<8x256xf32>
    %cst_77 = arith.constant 0.000000e+00 : f32
    %334 = vector.broadcast %cst_77 : f32 to vector<8x256xf32>
    %335 = arith.maximumf %333, %334 : vector<8x256xf32>
    %336 = arith.truncf %335 : vector<8x256xf32> to vector<8x256xbf16>
    %c0_78 = arith.constant 0 : index
    %c2304 = arith.constant 2304 : index
    %337 = vector.load %arg7[%c0_78, %c2304] : memref<8x8192xbf16, #tpu.memory_space<vmem>>, vector<8x256xbf16>
    tpu.vector_store %arg7[%c0_78, %c2304], %336 {strides = array<i32>} : memref<8x8192xbf16, #tpu.memory_space<vmem>>, vector<8x256xbf16>,
    %c10_i32 = arith.constant 10 : i32
    %338 = arith.addi %7, %c10_i32 : i32
    %c4_i32_79 = arith.constant 4 : i32
    %339 = arith.muli %338, %c4_i32_79 : i32
    %340 = arith.index_cast %339 : i32 to index
    %341 = memref.load %arg2[%340] : memref<128xf32, #tpu.memory_space<smem>>
    %342 = vector.broadcast %341 : f32 to vector<8x256xf32>
    %343 = arith.mulf %3, %342 : vector<8x256xf32>
    %c1_i32_80 = arith.constant 1 : i32
    %344 = arith.addi %339, %c1_i32_80 : i32
    %345 = arith.index_cast %344 : i32 to index
    %346 = memref.load %arg2[%345] : memref<128xf32, #tpu.memory_space<smem>>
    %347 = vector.broadcast %346 : f32 to vector<8x256xf32>
    %348 = arith.mulf %4, %347 : vector<8x256xf32>
    %349 = arith.addf %343, %348 : vector<8x256xf32>
    %c2_i32_81 = arith.constant 2 : i32
    %350 = arith.addi %339, %c2_i32_81 : i32
    %351 = arith.index_cast %350 : i32 to index
    %352 = memref.load %arg2[%351] : memref<128xf32, #tpu.memory_space<smem>>
    %353 = vector.broadcast %352 : f32 to vector<8x256xf32>
    %354 = arith.mulf %5, %353 : vector<8x256xf32>
    %355 = arith.addf %349, %354 : vector<8x256xf32>
    %c3_i32_82 = arith.constant 3 : i32
    %356 = arith.addi %339, %c3_i32_82 : i32
    %357 = arith.index_cast %356 : i32 to index
    %358 = memref.load %arg2[%357] : memref<128xf32, #tpu.memory_space<smem>>
    %359 = vector.broadcast %358 : f32 to vector<8x256xf32>
    %360 = arith.mulf %6, %359 : vector<8x256xf32>
    %361 = arith.addf %355, %360 : vector<8x256xf32>
    %c10_i32_83 = arith.constant 10 : i32
    %362 = arith.addi %7, %c10_i32_83 : i32
    %363 = arith.index_cast %362 : i32 to index
    %364 = memref.load %arg3[%363] : memref<32xf32, #tpu.memory_space<smem>>
    %365 = vector.broadcast %364 : f32 to vector<8x256xf32>
    %366 = arith.addf %361, %365 : vector<8x256xf32>
    %cst_84 = arith.constant 0.000000e+00 : f32
    %367 = vector.broadcast %cst_84 : f32 to vector<8x256xf32>
    %368 = arith.maximumf %366, %367 : vector<8x256xf32>
    %369 = arith.truncf %368 : vector<8x256xf32> to vector<8x256xbf16>
    %c0_85 = arith.constant 0 : index
    %c2560 = arith.constant 2560 : index
    %370 = vector.load %arg7[%c0_85, %c2560] : memref<8x8192xbf16, #tpu.memory_space<vmem>>, vector<8x256xbf16>
    tpu.vector_store %arg7[%c0_85, %c2560], %369 {strides = array<i32>} : memref<8x8192xbf16, #tpu.memory_space<vmem>>, vector<8x256xbf16>,
    %c11_i32 = arith.constant 11 : i32
    %371 = arith.addi %7, %c11_i32 : i32
    %c4_i32_86 = arith.constant 4 : i32
    %372 = arith.muli %371, %c4_i32_86 : i32
    %373 = arith.index_cast %372 : i32 to index
    %374 = memref.load %arg2[%373] : memref<128xf32, #tpu.memory_space<smem>>
    %375 = vector.broadcast %374 : f32 to vector<8x256xf32>
    %376 = arith.mulf %3, %375 : vector<8x256xf32>
    %c1_i32_87 = arith.constant 1 : i32
    %377 = arith.addi %372, %c1_i32_87 : i32
    %378 = arith.index_cast %377 : i32 to index
    %379 = memref.load %arg2[%378] : memref<128xf32, #tpu.memory_space<smem>>
    %380 = vector.broadcast %379 : f32 to vector<8x256xf32>
    %381 = arith.mulf %4, %380 : vector<8x256xf32>
    %382 = arith.addf %376, %381 : vector<8x256xf32>
    %c2_i32_88 = arith.constant 2 : i32
    %383 = arith.addi %372, %c2_i32_88 : i32
    %384 = arith.index_cast %383 : i32 to index
    %385 = memref.load %arg2[%384] : memref<128xf32, #tpu.memory_space<smem>>
    %386 = vector.broadcast %385 : f32 to vector<8x256xf32>
    %387 = arith.mulf %5, %386 : vector<8x256xf32>
    %388 = arith.addf %382, %387 : vector<8x256xf32>
    %c3_i32_89 = arith.constant 3 : i32
    %389 = arith.addi %372, %c3_i32_89 : i32
    %390 = arith.index_cast %389 : i32 to index
    %391 = memref.load %arg2[%390] : memref<128xf32, #tpu.memory_space<smem>>
    %392 = vector.broadcast %391 : f32 to vector<8x256xf32>
    %393 = arith.mulf %6, %392 : vector<8x256xf32>
    %394 = arith.addf %388, %393 : vector<8x256xf32>
    %c11_i32_90 = arith.constant 11 : i32
    %395 = arith.addi %7, %c11_i32_90 : i32
    %396 = arith.index_cast %395 : i32 to index
    %397 = memref.load %arg3[%396] : memref<32xf32, #tpu.memory_space<smem>>
    %398 = vector.broadcast %397 : f32 to vector<8x256xf32>
    %399 = arith.addf %394, %398 : vector<8x256xf32>
    %cst_91 = arith.constant 0.000000e+00 : f32
    %400 = vector.broadcast %cst_91 : f32 to vector<8x256xf32>
    %401 = arith.maximumf %399, %400 : vector<8x256xf32>
    %402 = arith.truncf %401 : vector<8x256xf32> to vector<8x256xbf16>
    %c0_92 = arith.constant 0 : index
    %c2816 = arith.constant 2816 : index
    %403 = vector.load %arg7[%c0_92, %c2816] : memref<8x8192xbf16, #tpu.memory_space<vmem>>, vector<8x256xbf16>
    tpu.vector_store %arg7[%c0_92, %c2816], %402 {strides = array<i32>} : memref<8x8192xbf16, #tpu.memory_space<vmem>>, vector<8x256xbf16>,
    %c12_i32 = arith.constant 12 : i32
    %404 = arith.addi %7, %c12_i32 : i32
    %c4_i32_93 = arith.constant 4 : i32
    %405 = arith.muli %404, %c4_i32_93 : i32
    %406 = arith.index_cast %405 : i32 to index
    %407 = memref.load %arg2[%406] : memref<128xf32, #tpu.memory_space<smem>>
    %408 = vector.broadcast %407 : f32 to vector<8x256xf32>
    %409 = arith.mulf %3, %408 : vector<8x256xf32>
    %c1_i32_94 = arith.constant 1 : i32
    %410 = arith.addi %405, %c1_i32_94 : i32
    %411 = arith.index_cast %410 : i32 to index
    %412 = memref.load %arg2[%411] : memref<128xf32, #tpu.memory_space<smem>>
    %413 = vector.broadcast %412 : f32 to vector<8x256xf32>
    %414 = arith.mulf %4, %413 : vector<8x256xf32>
    %415 = arith.addf %409, %414 : vector<8x256xf32>
    %c2_i32_95 = arith.constant 2 : i32
    %416 = arith.addi %405, %c2_i32_95 : i32
    %417 = arith.index_cast %416 : i32 to index
    %418 = memref.load %arg2[%417] : memref<128xf32, #tpu.memory_space<smem>>
    %419 = vector.broadcast %418 : f32 to vector<8x256xf32>
    %420 = arith.mulf %5, %419 : vector<8x256xf32>
    %421 = arith.addf %415, %420 : vector<8x256xf32>
    %c3_i32_96 = arith.constant 3 : i32
    %422 = arith.addi %405, %c3_i32_96 : i32
    %423 = arith.index_cast %422 : i32 to index
    %424 = memref.load %arg2[%423] : memref<128xf32, #tpu.memory_space<smem>>
    %425 = vector.broadcast %424 : f32 to vector<8x256xf32>
    %426 = arith.mulf %6, %425 : vector<8x256xf32>
    %427 = arith.addf %421, %426 : vector<8x256xf32>
    %c12_i32_97 = arith.constant 12 : i32
    %428 = arith.addi %7, %c12_i32_97 : i32
    %429 = arith.index_cast %428 : i32 to index
    %430 = memref.load %arg3[%429] : memref<32xf32, #tpu.memory_space<smem>>
    %431 = vector.broadcast %430 : f32 to vector<8x256xf32>
    %432 = arith.addf %427, %431 : vector<8x256xf32>
    %cst_98 = arith.constant 0.000000e+00 : f32
    %433 = vector.broadcast %cst_98 : f32 to vector<8x256xf32>
    %434 = arith.maximumf %432, %433 : vector<8x256xf32>
    %435 = arith.truncf %434 : vector<8x256xf32> to vector<8x256xbf16>
    %c0_99 = arith.constant 0 : index
    %c3072 = arith.constant 3072 : index
    %436 = vector.load %arg7[%c0_99, %c3072] : memref<8x8192xbf16, #tpu.memory_space<vmem>>, vector<8x256xbf16>
    tpu.vector_store %arg7[%c0_99, %c3072], %435 {strides = array<i32>} : memref<8x8192xbf16, #tpu.memory_space<vmem>>, vector<8x256xbf16>,
    %c13_i32 = arith.constant 13 : i32
    %437 = arith.addi %7, %c13_i32 : i32
    %c4_i32_100 = arith.constant 4 : i32
    %438 = arith.muli %437, %c4_i32_100 : i32
    %439 = arith.index_cast %438 : i32 to index
    %440 = memref.load %arg2[%439] : memref<128xf32, #tpu.memory_space<smem>>
    %441 = vector.broadcast %440 : f32 to vector<8x256xf32>
    %442 = arith.mulf %3, %441 : vector<8x256xf32>
    %c1_i32_101 = arith.constant 1 : i32
    %443 = arith.addi %438, %c1_i32_101 : i32
    %444 = arith.index_cast %443 : i32 to index
    %445 = memref.load %arg2[%444] : memref<128xf32, #tpu.memory_space<smem>>
    %446 = vector.broadcast %445 : f32 to vector<8x256xf32>
    %447 = arith.mulf %4, %446 : vector<8x256xf32>
    %448 = arith.addf %442, %447 : vector<8x256xf32>
    %c2_i32_102 = arith.constant 2 : i32
    %449 = arith.addi %438, %c2_i32_102 : i32
    %450 = arith.index_cast %449 : i32 to index
    %451 = memref.load %arg2[%450] : memref<128xf32, #tpu.memory_space<smem>>
    %452 = vector.broadcast %451 : f32 to vector<8x256xf32>
    %453 = arith.mulf %5, %452 : vector<8x256xf32>
    %454 = arith.addf %448, %453 : vector<8x256xf32>
    %c3_i32_103 = arith.constant 3 : i32
    %455 = arith.addi %438, %c3_i32_103 : i32
    %456 = arith.index_cast %455 : i32 to index
    %457 = memref.load %arg2[%456] : memref<128xf32, #tpu.memory_space<smem>>
    %458 = vector.broadcast %457 : f32 to vector<8x256xf32>
    %459 = arith.mulf %6, %458 : vector<8x256xf32>
    %460 = arith.addf %454, %459 : vector<8x256xf32>
    %c13_i32_104 = arith.constant 13 : i32
    %461 = arith.addi %7, %c13_i32_104 : i32
    %462 = arith.index_cast %461 : i32 to index
    %463 = memref.load %arg3[%462] : memref<32xf32, #tpu.memory_space<smem>>
    %464 = vector.broadcast %463 : f32 to vector<8x256xf32>
    %465 = arith.addf %460, %464 : vector<8x256xf32>
    %cst_105 = arith.constant 0.000000e+00 : f32
    %466 = vector.broadcast %cst_105 : f32 to vector<8x256xf32>
    %467 = arith.maximumf %465, %466 : vector<8x256xf32>
    %468 = arith.truncf %467 : vector<8x256xf32> to vector<8x256xbf16>
    %c0_106 = arith.constant 0 : index
    %c3328 = arith.constant 3328 : index
    %469 = vector.load %arg7[%c0_106, %c3328] : memref<8x8192xbf16, #tpu.memory_space<vmem>>, vector<8x256xbf16>
    tpu.vector_store %arg7[%c0_106, %c3328], %468 {strides = array<i32>} : memref<8x8192xbf16, #tpu.memory_space<vmem>>, vector<8x256xbf16>,
    %c14_i32 = arith.constant 14 : i32
    %470 = arith.addi %7, %c14_i32 : i32
    %c4_i32_107 = arith.constant 4 : i32
    %471 = arith.muli %470, %c4_i32_107 : i32
    %472 = arith.index_cast %471 : i32 to index
    %473 = memref.load %arg2[%472] : memref<128xf32, #tpu.memory_space<smem>>
    %474 = vector.broadcast %473 : f32 to vector<8x256xf32>
    %475 = arith.mulf %3, %474 : vector<8x256xf32>
    %c1_i32_108 = arith.constant 1 : i32
    %476 = arith.addi %471, %c1_i32_108 : i32
    %477 = arith.index_cast %476 : i32 to index
    %478 = memref.load %arg2[%477] : memref<128xf32, #tpu.memory_space<smem>>
    %479 = vector.broadcast %478 : f32 to vector<8x256xf32>
    %480 = arith.mulf %4, %479 : vector<8x256xf32>
    %481 = arith.addf %475, %480 : vector<8x256xf32>
    %c2_i32_109 = arith.constant 2 : i32
    %482 = arith.addi %471, %c2_i32_109 : i32
    %483 = arith.index_cast %482 : i32 to index
    %484 = memref.load %arg2[%483] : memref<128xf32, #tpu.memory_space<smem>>
    %485 = vector.broadcast %484 : f32 to vector<8x256xf32>
    %486 = arith.mulf %5, %485 : vector<8x256xf32>
    %487 = arith.addf %481, %486 : vector<8x256xf32>
    %c3_i32_110 = arith.constant 3 : i32
    %488 = arith.addi %471, %c3_i32_110 : i32
    %489 = arith.index_cast %488 : i32 to index
    %490 = memref.load %arg2[%489] : memref<128xf32, #tpu.memory_space<smem>>
    %491 = vector.broadcast %490 : f32 to vector<8x256xf32>
    %492 = arith.mulf %6, %491 : vector<8x256xf32>
    %493 = arith.addf %487, %492 : vector<8x256xf32>
    %c14_i32_111 = arith.constant 14 : i32
    %494 = arith.addi %7, %c14_i32_111 : i32
    %495 = arith.index_cast %494 : i32 to index
    %496 = memref.load %arg3[%495] : memref<32xf32, #tpu.memory_space<smem>>
    %497 = vector.broadcast %496 : f32 to vector<8x256xf32>
    %498 = arith.addf %493, %497 : vector<8x256xf32>
    %cst_112 = arith.constant 0.000000e+00 : f32
    %499 = vector.broadcast %cst_112 : f32 to vector<8x256xf32>
    %500 = arith.maximumf %498, %499 : vector<8x256xf32>
    %501 = arith.truncf %500 : vector<8x256xf32> to vector<8x256xbf16>
    %c0_113 = arith.constant 0 : index
    %c3584 = arith.constant 3584 : index
    %502 = vector.load %arg7[%c0_113, %c3584] : memref<8x8192xbf16, #tpu.memory_space<vmem>>, vector<8x256xbf16>
    tpu.vector_store %arg7[%c0_113, %c3584], %501 {strides = array<i32>} : memref<8x8192xbf16, #tpu.memory_space<vmem>>, vector<8x256xbf16>,
    %c15_i32 = arith.constant 15 : i32
    %503 = arith.addi %7, %c15_i32 : i32
    %c4_i32_114 = arith.constant 4 : i32
    %504 = arith.muli %503, %c4_i32_114 : i32
    %505 = arith.index_cast %504 : i32 to index
    %506 = memref.load %arg2[%505] : memref<128xf32, #tpu.memory_space<smem>>
    %507 = vector.broadcast %506 : f32 to vector<8x256xf32>
    %508 = arith.mulf %3, %507 : vector<8x256xf32>
    %c1_i32_115 = arith.constant 1 : i32
    %509 = arith.addi %504, %c1_i32_115 : i32
    %510 = arith.index_cast %509 : i32 to index
    %511 = memref.load %arg2[%510] : memref<128xf32, #tpu.memory_space<smem>>
    %512 = vector.broadcast %511 : f32 to vector<8x256xf32>
    %513 = arith.mulf %4, %512 : vector<8x256xf32>
    %514 = arith.addf %508, %513 : vector<8x256xf32>
    %c2_i32_116 = arith.constant 2 : i32
    %515 = arith.addi %504, %c2_i32_116 : i32
    %516 = arith.index_cast %515 : i32 to index
    %517 = memref.load %arg2[%516] : memref<128xf32, #tpu.memory_space<smem>>
    %518 = vector.broadcast %517 : f32 to vector<8x256xf32>
    %519 = arith.mulf %5, %518 : vector<8x256xf32>
    %520 = arith.addf %514, %519 : vector<8x256xf32>
    %c3_i32_117 = arith.constant 3 : i32
    %521 = arith.addi %504, %c3_i32_117 : i32
    %522 = arith.index_cast %521 : i32 to index
    %523 = memref.load %arg2[%522] : memref<128xf32, #tpu.memory_space<smem>>
    %524 = vector.broadcast %523 : f32 to vector<8x256xf32>
    %525 = arith.mulf %6, %524 : vector<8x256xf32>
    %526 = arith.addf %520, %525 : vector<8x256xf32>
    %c15_i32_118 = arith.constant 15 : i32
    %527 = arith.addi %7, %c15_i32_118 : i32
    %528 = arith.index_cast %527 : i32 to index
    %529 = memref.load %arg3[%528] : memref<32xf32, #tpu.memory_space<smem>>
    %530 = vector.broadcast %529 : f32 to vector<8x256xf32>
    %531 = arith.addf %526, %530 : vector<8x256xf32>
    %cst_119 = arith.constant 0.000000e+00 : f32
    %532 = vector.broadcast %cst_119 : f32 to vector<8x256xf32>
    %533 = arith.maximumf %531, %532 : vector<8x256xf32>
    %534 = arith.truncf %533 : vector<8x256xf32> to vector<8x256xbf16>
    %c0_120 = arith.constant 0 : index
    %c3840 = arith.constant 3840 : index
    %535 = vector.load %arg7[%c0_120, %c3840] : memref<8x8192xbf16, #tpu.memory_space<vmem>>, vector<8x256xbf16>
    tpu.vector_store %arg7[%c0_120, %c3840], %534 {strides = array<i32>} : memref<8x8192xbf16, #tpu.memory_space<vmem>>, vector<8x256xbf16>,
    %c16_i32 = arith.constant 16 : i32
    %536 = arith.addi %7, %c16_i32 : i32
    %c4_i32_121 = arith.constant 4 : i32
    %537 = arith.muli %536, %c4_i32_121 : i32
    %538 = arith.index_cast %537 : i32 to index
    %539 = memref.load %arg2[%538] : memref<128xf32, #tpu.memory_space<smem>>
    %540 = vector.broadcast %539 : f32 to vector<8x256xf32>
    %541 = arith.mulf %3, %540 : vector<8x256xf32>
    %c1_i32_122 = arith.constant 1 : i32
    %542 = arith.addi %537, %c1_i32_122 : i32
    %543 = arith.index_cast %542 : i32 to index
    %544 = memref.load %arg2[%543] : memref<128xf32, #tpu.memory_space<smem>>
    %545 = vector.broadcast %544 : f32 to vector<8x256xf32>
    %546 = arith.mulf %4, %545 : vector<8x256xf32>
    %547 = arith.addf %541, %546 : vector<8x256xf32>
    %c2_i32_123 = arith.constant 2 : i32
    %548 = arith.addi %537, %c2_i32_123 : i32
    %549 = arith.index_cast %548 : i32 to index
    %550 = memref.load %arg2[%549] : memref<128xf32, #tpu.memory_space<smem>>
    %551 = vector.broadcast %550 : f32 to vector<8x256xf32>
    %552 = arith.mulf %5, %551 : vector<8x256xf32>
    %553 = arith.addf %547, %552 : vector<8x256xf32>
    %c3_i32_124 = arith.constant 3 : i32
    %554 = arith.addi %537, %c3_i32_124 : i32
    %555 = arith.index_cast %554 : i32 to index
    %556 = memref.load %arg2[%555] : memref<128xf32, #tpu.memory_space<smem>>
    %557 = vector.broadcast %556 : f32 to vector<8x256xf32>
    %558 = arith.mulf %6, %557 : vector<8x256xf32>
    %559 = arith.addf %553, %558 : vector<8x256xf32>
    %c16_i32_125 = arith.constant 16 : i32
    %560 = arith.addi %7, %c16_i32_125 : i32
    %561 = arith.index_cast %560 : i32 to index
    %562 = memref.load %arg3[%561] : memref<32xf32, #tpu.memory_space<smem>>
    %563 = vector.broadcast %562 : f32 to vector<8x256xf32>
    %564 = arith.addf %559, %563 : vector<8x256xf32>
    %cst_126 = arith.constant 0.000000e+00 : f32
    %565 = vector.broadcast %cst_126 : f32 to vector<8x256xf32>
    %566 = arith.maximumf %564, %565 : vector<8x256xf32>
    %567 = arith.truncf %566 : vector<8x256xf32> to vector<8x256xbf16>
    %c0_127 = arith.constant 0 : index
    %c4096 = arith.constant 4096 : index
    %568 = vector.load %arg7[%c0_127, %c4096] : memref<8x8192xbf16, #tpu.memory_space<vmem>>, vector<8x256xbf16>
    tpu.vector_store %arg7[%c0_127, %c4096], %567 {strides = array<i32>} : memref<8x8192xbf16, #tpu.memory_space<vmem>>, vector<8x256xbf16>,
    %c17_i32 = arith.constant 17 : i32
    %569 = arith.addi %7, %c17_i32 : i32
    %c4_i32_128 = arith.constant 4 : i32
    %570 = arith.muli %569, %c4_i32_128 : i32
    %571 = arith.index_cast %570 : i32 to index
    %572 = memref.load %arg2[%571] : memref<128xf32, #tpu.memory_space<smem>>
    %573 = vector.broadcast %572 : f32 to vector<8x256xf32>
    %574 = arith.mulf %3, %573 : vector<8x256xf32>
    %c1_i32_129 = arith.constant 1 : i32
    %575 = arith.addi %570, %c1_i32_129 : i32
    %576 = arith.index_cast %575 : i32 to index
    %577 = memref.load %arg2[%576] : memref<128xf32, #tpu.memory_space<smem>>
    %578 = vector.broadcast %577 : f32 to vector<8x256xf32>
    %579 = arith.mulf %4, %578 : vector<8x256xf32>
    %580 = arith.addf %574, %579 : vector<8x256xf32>
    %c2_i32_130 = arith.constant 2 : i32
    %581 = arith.addi %570, %c2_i32_130 : i32
    %582 = arith.index_cast %581 : i32 to index
    %583 = memref.load %arg2[%582] : memref<128xf32, #tpu.memory_space<smem>>
    %584 = vector.broadcast %583 : f32 to vector<8x256xf32>
    %585 = arith.mulf %5, %584 : vector<8x256xf32>
    %586 = arith.addf %580, %585 : vector<8x256xf32>
    %c3_i32_131 = arith.constant 3 : i32
    %587 = arith.addi %570, %c3_i32_131 : i32
    %588 = arith.index_cast %587 : i32 to index
    %589 = memref.load %arg2[%588] : memref<128xf32, #tpu.memory_space<smem>>
    %590 = vector.broadcast %589 : f32 to vector<8x256xf32>
    %591 = arith.mulf %6, %590 : vector<8x256xf32>
    %592 = arith.addf %586, %591 : vector<8x256xf32>
    %c17_i32_132 = arith.constant 17 : i32
    %593 = arith.addi %7, %c17_i32_132 : i32
    %594 = arith.index_cast %593 : i32 to index
    %595 = memref.load %arg3[%594] : memref<32xf32, #tpu.memory_space<smem>>
    %596 = vector.broadcast %595 : f32 to vector<8x256xf32>
    %597 = arith.addf %592, %596 : vector<8x256xf32>
    %cst_133 = arith.constant 0.000000e+00 : f32
    %598 = vector.broadcast %cst_133 : f32 to vector<8x256xf32>
    %599 = arith.maximumf %597, %598 : vector<8x256xf32>
    %600 = arith.truncf %599 : vector<8x256xf32> to vector<8x256xbf16>
    %c0_134 = arith.constant 0 : index
    %c4352 = arith.constant 4352 : index
    %601 = vector.load %arg7[%c0_134, %c4352] : memref<8x8192xbf16, #tpu.memory_space<vmem>>, vector<8x256xbf16>
    tpu.vector_store %arg7[%c0_134, %c4352], %600 {strides = array<i32>} : memref<8x8192xbf16, #tpu.memory_space<vmem>>, vector<8x256xbf16>,
    %c18_i32 = arith.constant 18 : i32
    %602 = arith.addi %7, %c18_i32 : i32
    %c4_i32_135 = arith.constant 4 : i32
    %603 = arith.muli %602, %c4_i32_135 : i32
    %604 = arith.index_cast %603 : i32 to index
    %605 = memref.load %arg2[%604] : memref<128xf32, #tpu.memory_space<smem>>
    %606 = vector.broadcast %605 : f32 to vector<8x256xf32>
    %607 = arith.mulf %3, %606 : vector<8x256xf32>
    %c1_i32_136 = arith.constant 1 : i32
    %608 = arith.addi %603, %c1_i32_136 : i32
    %609 = arith.index_cast %608 : i32 to index
    %610 = memref.load %arg2[%609] : memref<128xf32, #tpu.memory_space<smem>>
    %611 = vector.broadcast %610 : f32 to vector<8x256xf32>
    %612 = arith.mulf %4, %611 : vector<8x256xf32>
    %613 = arith.addf %607, %612 : vector<8x256xf32>
    %c2_i32_137 = arith.constant 2 : i32
    %614 = arith.addi %603, %c2_i32_137 : i32
    %615 = arith.index_cast %614 : i32 to index
    %616 = memref.load %arg2[%615] : memref<128xf32, #tpu.memory_space<smem>>
    %617 = vector.broadcast %616 : f32 to vector<8x256xf32>
    %618 = arith.mulf %5, %617 : vector<8x256xf32>
    %619 = arith.addf %613, %618 : vector<8x256xf32>
    %c3_i32_138 = arith.constant 3 : i32
    %620 = arith.addi %603, %c3_i32_138 : i32
    %621 = arith.index_cast %620 : i32 to index
    %622 = memref.load %arg2[%621] : memref<128xf32, #tpu.memory_space<smem>>
    %623 = vector.broadcast %622 : f32 to vector<8x256xf32>
    %624 = arith.mulf %6, %623 : vector<8x256xf32>
    %625 = arith.addf %619, %624 : vector<8x256xf32>
    %c18_i32_139 = arith.constant 18 : i32
    %626 = arith.addi %7, %c18_i32_139 : i32
    %627 = arith.index_cast %626 : i32 to index
    %628 = memref.load %arg3[%627] : memref<32xf32, #tpu.memory_space<smem>>
    %629 = vector.broadcast %628 : f32 to vector<8x256xf32>
    %630 = arith.addf %625, %629 : vector<8x256xf32>
    %cst_140 = arith.constant 0.000000e+00 : f32
    %631 = vector.broadcast %cst_140 : f32 to vector<8x256xf32>
    %632 = arith.maximumf %630, %631 : vector<8x256xf32>
    %633 = arith.truncf %632 : vector<8x256xf32> to vector<8x256xbf16>
    %c0_141 = arith.constant 0 : index
    %c4608 = arith.constant 4608 : index
    %634 = vector.load %arg7[%c0_141, %c4608] : memref<8x8192xbf16, #tpu.memory_space<vmem>>, vector<8x256xbf16>
    tpu.vector_store %arg7[%c0_141, %c4608], %633 {strides = array<i32>} : memref<8x8192xbf16, #tpu.memory_space<vmem>>, vector<8x256xbf16>,
    %c19_i32 = arith.constant 19 : i32
    %635 = arith.addi %7, %c19_i32 : i32
    %c4_i32_142 = arith.constant 4 : i32
    %636 = arith.muli %635, %c4_i32_142 : i32
    %637 = arith.index_cast %636 : i32 to index
    %638 = memref.load %arg2[%637] : memref<128xf32, #tpu.memory_space<smem>>
    %639 = vector.broadcast %638 : f32 to vector<8x256xf32>
    %640 = arith.mulf %3, %639 : vector<8x256xf32>
    %c1_i32_143 = arith.constant 1 : i32
    %641 = arith.addi %636, %c1_i32_143 : i32
    %642 = arith.index_cast %641 : i32 to index
    %643 = memref.load %arg2[%642] : memref<128xf32, #tpu.memory_space<smem>>
    %644 = vector.broadcast %643 : f32 to vector<8x256xf32>
    %645 = arith.mulf %4, %644 : vector<8x256xf32>
    %646 = arith.addf %640, %645 : vector<8x256xf32>
    %c2_i32_144 = arith.constant 2 : i32
    %647 = arith.addi %636, %c2_i32_144 : i32
    %648 = arith.index_cast %647 : i32 to index
    %649 = memref.load %arg2[%648] : memref<128xf32, #tpu.memory_space<smem>>
    %650 = vector.broadcast %649 : f32 to vector<8x256xf32>
    %651 = arith.mulf %5, %650 : vector<8x256xf32>
    %652 = arith.addf %646, %651 : vector<8x256xf32>
    %c3_i32_145 = arith.constant 3 : i32
    %653 = arith.addi %636, %c3_i32_145 : i32
    %654 = arith.index_cast %653 : i32 to index
    %655 = memref.load %arg2[%654] : memref<128xf32, #tpu.memory_space<smem>>
    %656 = vector.broadcast %655 : f32 to vector<8x256xf32>
    %657 = arith.mulf %6, %656 : vector<8x256xf32>
    %658 = arith.addf %652, %657 : vector<8x256xf32>
    %c19_i32_146 = arith.constant 19 : i32
    %659 = arith.addi %7, %c19_i32_146 : i32
    %660 = arith.index_cast %659 : i32 to index
    %661 = memref.load %arg3[%660] : memref<32xf32, #tpu.memory_space<smem>>
    %662 = vector.broadcast %661 : f32 to vector<8x256xf32>
    %663 = arith.addf %658, %662 : vector<8x256xf32>
    %cst_147 = arith.constant 0.000000e+00 : f32
    %664 = vector.broadcast %cst_147 : f32 to vector<8x256xf32>
    %665 = arith.maximumf %663, %664 : vector<8x256xf32>
    %666 = arith.truncf %665 : vector<8x256xf32> to vector<8x256xbf16>
    %c0_148 = arith.constant 0 : index
    %c4864 = arith.constant 4864 : index
    %667 = vector.load %arg7[%c0_148, %c4864] : memref<8x8192xbf16, #tpu.memory_space<vmem>>, vector<8x256xbf16>
    tpu.vector_store %arg7[%c0_148, %c4864], %666 {strides = array<i32>} : memref<8x8192xbf16, #tpu.memory_space<vmem>>, vector<8x256xbf16>,
    %c20_i32 = arith.constant 20 : i32
    %668 = arith.addi %7, %c20_i32 : i32
    %c4_i32_149 = arith.constant 4 : i32
    %669 = arith.muli %668, %c4_i32_149 : i32
    %670 = arith.index_cast %669 : i32 to index
    %671 = memref.load %arg2[%670] : memref<128xf32, #tpu.memory_space<smem>>
    %672 = vector.broadcast %671 : f32 to vector<8x256xf32>
    %673 = arith.mulf %3, %672 : vector<8x256xf32>
    %c1_i32_150 = arith.constant 1 : i32
    %674 = arith.addi %669, %c1_i32_150 : i32
    %675 = arith.index_cast %674 : i32 to index
    %676 = memref.load %arg2[%675] : memref<128xf32, #tpu.memory_space<smem>>
    %677 = vector.broadcast %676 : f32 to vector<8x256xf32>
    %678 = arith.mulf %4, %677 : vector<8x256xf32>
    %679 = arith.addf %673, %678 : vector<8x256xf32>
    %c2_i32_151 = arith.constant 2 : i32
    %680 = arith.addi %669, %c2_i32_151 : i32
    %681 = arith.index_cast %680 : i32 to index
    %682 = memref.load %arg2[%681] : memref<128xf32, #tpu.memory_space<smem>>
    %683 = vector.broadcast %682 : f32 to vector<8x256xf32>
    %684 = arith.mulf %5, %683 : vector<8x256xf32>
    %685 = arith.addf %679, %684 : vector<8x256xf32>
    %c3_i32_152 = arith.constant 3 : i32
    %686 = arith.addi %669, %c3_i32_152 : i32
    %687 = arith.index_cast %686 : i32 to index
    %688 = memref.load %arg2[%687] : memref<128xf32, #tpu.memory_space<smem>>
    %689 = vector.broadcast %688 : f32 to vector<8x256xf32>
    %690 = arith.mulf %6, %689 : vector<8x256xf32>
    %691 = arith.addf %685, %690 : vector<8x256xf32>
    %c20_i32_153 = arith.constant 20 : i32
    %692 = arith.addi %7, %c20_i32_153 : i32
    %693 = arith.index_cast %692 : i32 to index
    %694 = memref.load %arg3[%693] : memref<32xf32, #tpu.memory_space<smem>>
    %695 = vector.broadcast %694 : f32 to vector<8x256xf32>
    %696 = arith.addf %691, %695 : vector<8x256xf32>
    %cst_154 = arith.constant 0.000000e+00 : f32
    %697 = vector.broadcast %cst_154 : f32 to vector<8x256xf32>
    %698 = arith.maximumf %696, %697 : vector<8x256xf32>
    %699 = arith.truncf %698 : vector<8x256xf32> to vector<8x256xbf16>
    %c0_155 = arith.constant 0 : index
    %c5120 = arith.constant 5120 : index
    %700 = vector.load %arg7[%c0_155, %c5120] : memref<8x8192xbf16, #tpu.memory_space<vmem>>, vector<8x256xbf16>
    tpu.vector_store %arg7[%c0_155, %c5120], %699 {strides = array<i32>} : memref<8x8192xbf16, #tpu.memory_space<vmem>>, vector<8x256xbf16>,
    %c21_i32 = arith.constant 21 : i32
    %701 = arith.addi %7, %c21_i32 : i32
    %c4_i32_156 = arith.constant 4 : i32
    %702 = arith.muli %701, %c4_i32_156 : i32
    %703 = arith.index_cast %702 : i32 to index
    %704 = memref.load %arg2[%703] : memref<128xf32, #tpu.memory_space<smem>>
    %705 = vector.broadcast %704 : f32 to vector<8x256xf32>
    %706 = arith.mulf %3, %705 : vector<8x256xf32>
    %c1_i32_157 = arith.constant 1 : i32
    %707 = arith.addi %702, %c1_i32_157 : i32
    %708 = arith.index_cast %707 : i32 to index
    %709 = memref.load %arg2[%708] : memref<128xf32, #tpu.memory_space<smem>>
    %710 = vector.broadcast %709 : f32 to vector<8x256xf32>
    %711 = arith.mulf %4, %710 : vector<8x256xf32>
    %712 = arith.addf %706, %711 : vector<8x256xf32>
    %c2_i32_158 = arith.constant 2 : i32
    %713 = arith.addi %702, %c2_i32_158 : i32
    %714 = arith.index_cast %713 : i32 to index
    %715 = memref.load %arg2[%714] : memref<128xf32, #tpu.memory_space<smem>>
    %716 = vector.broadcast %715 : f32 to vector<8x256xf32>
    %717 = arith.mulf %5, %716 : vector<8x256xf32>
    %718 = arith.addf %712, %717 : vector<8x256xf32>
    %c3_i32_159 = arith.constant 3 : i32
    %719 = arith.addi %702, %c3_i32_159 : i32
    %720 = arith.index_cast %719 : i32 to index
    %721 = memref.load %arg2[%720] : memref<128xf32, #tpu.memory_space<smem>>
    %722 = vector.broadcast %721 : f32 to vector<8x256xf32>
    %723 = arith.mulf %6, %722 : vector<8x256xf32>
    %724 = arith.addf %718, %723 : vector<8x256xf32>
    %c21_i32_160 = arith.constant 21 : i32
    %725 = arith.addi %7, %c21_i32_160 : i32
    %726 = arith.index_cast %725 : i32 to index
    %727 = memref.load %arg3[%726] : memref<32xf32, #tpu.memory_space<smem>>
    %728 = vector.broadcast %727 : f32 to vector<8x256xf32>
    %729 = arith.addf %724, %728 : vector<8x256xf32>
    %cst_161 = arith.constant 0.000000e+00 : f32
    %730 = vector.broadcast %cst_161 : f32 to vector<8x256xf32>
    %731 = arith.maximumf %729, %730 : vector<8x256xf32>
    %732 = arith.truncf %731 : vector<8x256xf32> to vector<8x256xbf16>
    %c0_162 = arith.constant 0 : index
    %c5376 = arith.constant 5376 : index
    %733 = vector.load %arg7[%c0_162, %c5376] : memref<8x8192xbf16, #tpu.memory_space<vmem>>, vector<8x256xbf16>
    tpu.vector_store %arg7[%c0_162, %c5376], %732 {strides = array<i32>} : memref<8x8192xbf16, #tpu.memory_space<vmem>>, vector<8x256xbf16>,
    %c22_i32 = arith.constant 22 : i32
    %734 = arith.addi %7, %c22_i32 : i32
    %c4_i32_163 = arith.constant 4 : i32
    %735 = arith.muli %734, %c4_i32_163 : i32
    %736 = arith.index_cast %735 : i32 to index
    %737 = memref.load %arg2[%736] : memref<128xf32, #tpu.memory_space<smem>>
    %738 = vector.broadcast %737 : f32 to vector<8x256xf32>
    %739 = arith.mulf %3, %738 : vector<8x256xf32>
    %c1_i32_164 = arith.constant 1 : i32
    %740 = arith.addi %735, %c1_i32_164 : i32
    %741 = arith.index_cast %740 : i32 to index
    %742 = memref.load %arg2[%741] : memref<128xf32, #tpu.memory_space<smem>>
    %743 = vector.broadcast %742 : f32 to vector<8x256xf32>
    %744 = arith.mulf %4, %743 : vector<8x256xf32>
    %745 = arith.addf %739, %744 : vector<8x256xf32>
    %c2_i32_165 = arith.constant 2 : i32
    %746 = arith.addi %735, %c2_i32_165 : i32
    %747 = arith.index_cast %746 : i32 to index
    %748 = memref.load %arg2[%747] : memref<128xf32, #tpu.memory_space<smem>>
    %749 = vector.broadcast %748 : f32 to vector<8x256xf32>
    %750 = arith.mulf %5, %749 : vector<8x256xf32>
    %751 = arith.addf %745, %750 : vector<8x256xf32>
    %c3_i32_166 = arith.constant 3 : i32
    %752 = arith.addi %735, %c3_i32_166 : i32
    %753 = arith.index_cast %752 : i32 to index
    %754 = memref.load %arg2[%753] : memref<128xf32, #tpu.memory_space<smem>>
    %755 = vector.broadcast %754 : f32 to vector<8x256xf32>
    %756 = arith.mulf %6, %755 : vector<8x256xf32>
    %757 = arith.addf %751, %756 : vector<8x256xf32>
    %c22_i32_167 = arith.constant 22 : i32
    %758 = arith.addi %7, %c22_i32_167 : i32
    %759 = arith.index_cast %758 : i32 to index
    %760 = memref.load %arg3[%759] : memref<32xf32, #tpu.memory_space<smem>>
    %761 = vector.broadcast %760 : f32 to vector<8x256xf32>
    %762 = arith.addf %757, %761 : vector<8x256xf32>
    %cst_168 = arith.constant 0.000000e+00 : f32
    %763 = vector.broadcast %cst_168 : f32 to vector<8x256xf32>
    %764 = arith.maximumf %762, %763 : vector<8x256xf32>
    %765 = arith.truncf %764 : vector<8x256xf32> to vector<8x256xbf16>
    %c0_169 = arith.constant 0 : index
    %c5632 = arith.constant 5632 : index
    %766 = vector.load %arg7[%c0_169, %c5632] : memref<8x8192xbf16, #tpu.memory_space<vmem>>, vector<8x256xbf16>
    tpu.vector_store %arg7[%c0_169, %c5632], %765 {strides = array<i32>} : memref<8x8192xbf16, #tpu.memory_space<vmem>>, vector<8x256xbf16>,
    %c23_i32 = arith.constant 23 : i32
    %767 = arith.addi %7, %c23_i32 : i32
    %c4_i32_170 = arith.constant 4 : i32
    %768 = arith.muli %767, %c4_i32_170 : i32
    %769 = arith.index_cast %768 : i32 to index
    %770 = memref.load %arg2[%769] : memref<128xf32, #tpu.memory_space<smem>>
    %771 = vector.broadcast %770 : f32 to vector<8x256xf32>
    %772 = arith.mulf %3, %771 : vector<8x256xf32>
    %c1_i32_171 = arith.constant 1 : i32
    %773 = arith.addi %768, %c1_i32_171 : i32
    %774 = arith.index_cast %773 : i32 to index
    %775 = memref.load %arg2[%774] : memref<128xf32, #tpu.memory_space<smem>>
    %776 = vector.broadcast %775 : f32 to vector<8x256xf32>
    %777 = arith.mulf %4, %776 : vector<8x256xf32>
    %778 = arith.addf %772, %777 : vector<8x256xf32>
    %c2_i32_172 = arith.constant 2 : i32
    %779 = arith.addi %768, %c2_i32_172 : i32
    %780 = arith.index_cast %779 : i32 to index
    %781 = memref.load %arg2[%780] : memref<128xf32, #tpu.memory_space<smem>>
    %782 = vector.broadcast %781 : f32 to vector<8x256xf32>
    %783 = arith.mulf %5, %782 : vector<8x256xf32>
    %784 = arith.addf %778, %783 : vector<8x256xf32>
    %c3_i32_173 = arith.constant 3 : i32
    %785 = arith.addi %768, %c3_i32_173 : i32
    %786 = arith.index_cast %785 : i32 to index
    %787 = memref.load %arg2[%786] : memref<128xf32, #tpu.memory_space<smem>>
    %788 = vector.broadcast %787 : f32 to vector<8x256xf32>
    %789 = arith.mulf %6, %788 : vector<8x256xf32>
    %790 = arith.addf %784, %789 : vector<8x256xf32>
    %c23_i32_174 = arith.constant 23 : i32
    %791 = arith.addi %7, %c23_i32_174 : i32
    %792 = arith.index_cast %791 : i32 to index
    %793 = memref.load %arg3[%792] : memref<32xf32, #tpu.memory_space<smem>>
    %794 = vector.broadcast %793 : f32 to vector<8x256xf32>
    %795 = arith.addf %790, %794 : vector<8x256xf32>
    %cst_175 = arith.constant 0.000000e+00 : f32
    %796 = vector.broadcast %cst_175 : f32 to vector<8x256xf32>
    %797 = arith.maximumf %795, %796 : vector<8x256xf32>
    %798 = arith.truncf %797 : vector<8x256xf32> to vector<8x256xbf16>
    %c0_176 = arith.constant 0 : index
    %c5888 = arith.constant 5888 : index
    %799 = vector.load %arg7[%c0_176, %c5888] : memref<8x8192xbf16, #tpu.memory_space<vmem>>, vector<8x256xbf16>
    tpu.vector_store %arg7[%c0_176, %c5888], %798 {strides = array<i32>} : memref<8x8192xbf16, #tpu.memory_space<vmem>>, vector<8x256xbf16>,
    %c24_i32 = arith.constant 24 : i32
    %800 = arith.addi %7, %c24_i32 : i32
    %c4_i32_177 = arith.constant 4 : i32
    %801 = arith.muli %800, %c4_i32_177 : i32
    %802 = arith.index_cast %801 : i32 to index
    %803 = memref.load %arg2[%802] : memref<128xf32, #tpu.memory_space<smem>>
    %804 = vector.broadcast %803 : f32 to vector<8x256xf32>
    %805 = arith.mulf %3, %804 : vector<8x256xf32>
    %c1_i32_178 = arith.constant 1 : i32
    %806 = arith.addi %801, %c1_i32_178 : i32
    %807 = arith.index_cast %806 : i32 to index
    %808 = memref.load %arg2[%807] : memref<128xf32, #tpu.memory_space<smem>>
    %809 = vector.broadcast %808 : f32 to vector<8x256xf32>
    %810 = arith.mulf %4, %809 : vector<8x256xf32>
    %811 = arith.addf %805, %810 : vector<8x256xf32>
    %c2_i32_179 = arith.constant 2 : i32
    %812 = arith.addi %801, %c2_i32_179 : i32
    %813 = arith.index_cast %812 : i32 to index
    %814 = memref.load %arg2[%813] : memref<128xf32, #tpu.memory_space<smem>>
    %815 = vector.broadcast %814 : f32 to vector<8x256xf32>
    %816 = arith.mulf %5, %815 : vector<8x256xf32>
    %817 = arith.addf %811, %816 : vector<8x256xf32>
    %c3_i32_180 = arith.constant 3 : i32
    %818 = arith.addi %801, %c3_i32_180 : i32
    %819 = arith.index_cast %818 : i32 to index
    %820 = memref.load %arg2[%819] : memref<128xf32, #tpu.memory_space<smem>>
    %821 = vector.broadcast %820 : f32 to vector<8x256xf32>
    %822 = arith.mulf %6, %821 : vector<8x256xf32>
    %823 = arith.addf %817, %822 : vector<8x256xf32>
    %c24_i32_181 = arith.constant 24 : i32
    %824 = arith.addi %7, %c24_i32_181 : i32
    %825 = arith.index_cast %824 : i32 to index
    %826 = memref.load %arg3[%825] : memref<32xf32, #tpu.memory_space<smem>>
    %827 = vector.broadcast %826 : f32 to vector<8x256xf32>
    %828 = arith.addf %823, %827 : vector<8x256xf32>
    %cst_182 = arith.constant 0.000000e+00 : f32
    %829 = vector.broadcast %cst_182 : f32 to vector<8x256xf32>
    %830 = arith.maximumf %828, %829 : vector<8x256xf32>
    %831 = arith.truncf %830 : vector<8x256xf32> to vector<8x256xbf16>
    %c0_183 = arith.constant 0 : index
    %c6144 = arith.constant 6144 : index
    %832 = vector.load %arg7[%c0_183, %c6144] : memref<8x8192xbf16, #tpu.memory_space<vmem>>, vector<8x256xbf16>
    tpu.vector_store %arg7[%c0_183, %c6144], %831 {strides = array<i32>} : memref<8x8192xbf16, #tpu.memory_space<vmem>>, vector<8x256xbf16>,
    %c25_i32 = arith.constant 25 : i32
    %833 = arith.addi %7, %c25_i32 : i32
    %c4_i32_184 = arith.constant 4 : i32
    %834 = arith.muli %833, %c4_i32_184 : i32
    %835 = arith.index_cast %834 : i32 to index
    %836 = memref.load %arg2[%835] : memref<128xf32, #tpu.memory_space<smem>>
    %837 = vector.broadcast %836 : f32 to vector<8x256xf32>
    %838 = arith.mulf %3, %837 : vector<8x256xf32>
    %c1_i32_185 = arith.constant 1 : i32
    %839 = arith.addi %834, %c1_i32_185 : i32
    %840 = arith.index_cast %839 : i32 to index
    %841 = memref.load %arg2[%840] : memref<128xf32, #tpu.memory_space<smem>>
    %842 = vector.broadcast %841 : f32 to vector<8x256xf32>
    %843 = arith.mulf %4, %842 : vector<8x256xf32>
    %844 = arith.addf %838, %843 : vector<8x256xf32>
    %c2_i32_186 = arith.constant 2 : i32
    %845 = arith.addi %834, %c2_i32_186 : i32
    %846 = arith.index_cast %845 : i32 to index
    %847 = memref.load %arg2[%846] : memref<128xf32, #tpu.memory_space<smem>>
    %848 = vector.broadcast %847 : f32 to vector<8x256xf32>
    %849 = arith.mulf %5, %848 : vector<8x256xf32>
    %850 = arith.addf %844, %849 : vector<8x256xf32>
    %c3_i32_187 = arith.constant 3 : i32
    %851 = arith.addi %834, %c3_i32_187 : i32
    %852 = arith.index_cast %851 : i32 to index
    %853 = memref.load %arg2[%852] : memref<128xf32, #tpu.memory_space<smem>>
    %854 = vector.broadcast %853 : f32 to vector<8x256xf32>
    %855 = arith.mulf %6, %854 : vector<8x256xf32>
    %856 = arith.addf %850, %855 : vector<8x256xf32>
    %c25_i32_188 = arith.constant 25 : i32
    %857 = arith.addi %7, %c25_i32_188 : i32
    %858 = arith.index_cast %857 : i32 to index
    %859 = memref.load %arg3[%858] : memref<32xf32, #tpu.memory_space<smem>>
    %860 = vector.broadcast %859 : f32 to vector<8x256xf32>
    %861 = arith.addf %856, %860 : vector<8x256xf32>
    %cst_189 = arith.constant 0.000000e+00 : f32
    %862 = vector.broadcast %cst_189 : f32 to vector<8x256xf32>
    %863 = arith.maximumf %861, %862 : vector<8x256xf32>
    %864 = arith.truncf %863 : vector<8x256xf32> to vector<8x256xbf16>
    %c0_190 = arith.constant 0 : index
    %c6400 = arith.constant 6400 : index
    %865 = vector.load %arg7[%c0_190, %c6400] : memref<8x8192xbf16, #tpu.memory_space<vmem>>, vector<8x256xbf16>
    tpu.vector_store %arg7[%c0_190, %c6400], %864 {strides = array<i32>} : memref<8x8192xbf16, #tpu.memory_space<vmem>>, vector<8x256xbf16>,
    %c26_i32 = arith.constant 26 : i32
    %866 = arith.addi %7, %c26_i32 : i32
    %c4_i32_191 = arith.constant 4 : i32
    %867 = arith.muli %866, %c4_i32_191 : i32
    %868 = arith.index_cast %867 : i32 to index
    %869 = memref.load %arg2[%868] : memref<128xf32, #tpu.memory_space<smem>>
    %870 = vector.broadcast %869 : f32 to vector<8x256xf32>
    %871 = arith.mulf %3, %870 : vector<8x256xf32>
    %c1_i32_192 = arith.constant 1 : i32
    %872 = arith.addi %867, %c1_i32_192 : i32
    %873 = arith.index_cast %872 : i32 to index
    %874 = memref.load %arg2[%873] : memref<128xf32, #tpu.memory_space<smem>>
    %875 = vector.broadcast %874 : f32 to vector<8x256xf32>
    %876 = arith.mulf %4, %875 : vector<8x256xf32>
    %877 = arith.addf %871, %876 : vector<8x256xf32>
    %c2_i32_193 = arith.constant 2 : i32
    %878 = arith.addi %867, %c2_i32_193 : i32
    %879 = arith.index_cast %878 : i32 to index
    %880 = memref.load %arg2[%879] : memref<128xf32, #tpu.memory_space<smem>>
    %881 = vector.broadcast %880 : f32 to vector<8x256xf32>
    %882 = arith.mulf %5, %881 : vector<8x256xf32>
    %883 = arith.addf %877, %882 : vector<8x256xf32>
    %c3_i32_194 = arith.constant 3 : i32
    %884 = arith.addi %867, %c3_i32_194 : i32
    %885 = arith.index_cast %884 : i32 to index
    %886 = memref.load %arg2[%885] : memref<128xf32, #tpu.memory_space<smem>>
    %887 = vector.broadcast %886 : f32 to vector<8x256xf32>
    %888 = arith.mulf %6, %887 : vector<8x256xf32>
    %889 = arith.addf %883, %888 : vector<8x256xf32>
    %c26_i32_195 = arith.constant 26 : i32
    %890 = arith.addi %7, %c26_i32_195 : i32
    %891 = arith.index_cast %890 : i32 to index
    %892 = memref.load %arg3[%891] : memref<32xf32, #tpu.memory_space<smem>>
    %893 = vector.broadcast %892 : f32 to vector<8x256xf32>
    %894 = arith.addf %889, %893 : vector<8x256xf32>
    %cst_196 = arith.constant 0.000000e+00 : f32
    %895 = vector.broadcast %cst_196 : f32 to vector<8x256xf32>
    %896 = arith.maximumf %894, %895 : vector<8x256xf32>
    %897 = arith.truncf %896 : vector<8x256xf32> to vector<8x256xbf16>
    %c0_197 = arith.constant 0 : index
    %c6656 = arith.constant 6656 : index
    %898 = vector.load %arg7[%c0_197, %c6656] : memref<8x8192xbf16, #tpu.memory_space<vmem>>, vector<8x256xbf16>
    tpu.vector_store %arg7[%c0_197, %c6656], %897 {strides = array<i32>} : memref<8x8192xbf16, #tpu.memory_space<vmem>>, vector<8x256xbf16>,
    %c27_i32 = arith.constant 27 : i32
    %899 = arith.addi %7, %c27_i32 : i32
    %c4_i32_198 = arith.constant 4 : i32
    %900 = arith.muli %899, %c4_i32_198 : i32
    %901 = arith.index_cast %900 : i32 to index
    %902 = memref.load %arg2[%901] : memref<128xf32, #tpu.memory_space<smem>>
    %903 = vector.broadcast %902 : f32 to vector<8x256xf32>
    %904 = arith.mulf %3, %903 : vector<8x256xf32>
    %c1_i32_199 = arith.constant 1 : i32
    %905 = arith.addi %900, %c1_i32_199 : i32
    %906 = arith.index_cast %905 : i32 to index
    %907 = memref.load %arg2[%906] : memref<128xf32, #tpu.memory_space<smem>>
    %908 = vector.broadcast %907 : f32 to vector<8x256xf32>
    %909 = arith.mulf %4, %908 : vector<8x256xf32>
    %910 = arith.addf %904, %909 : vector<8x256xf32>
    %c2_i32_200 = arith.constant 2 : i32
    %911 = arith.addi %900, %c2_i32_200 : i32
    %912 = arith.index_cast %911 : i32 to index
    %913 = memref.load %arg2[%912] : memref<128xf32, #tpu.memory_space<smem>>
    %914 = vector.broadcast %913 : f32 to vector<8x256xf32>
    %915 = arith.mulf %5, %914 : vector<8x256xf32>
    %916 = arith.addf %910, %915 : vector<8x256xf32>
    %c3_i32_201 = arith.constant 3 : i32
    %917 = arith.addi %900, %c3_i32_201 : i32
    %918 = arith.index_cast %917 : i32 to index
    %919 = memref.load %arg2[%918] : memref<128xf32, #tpu.memory_space<smem>>
    %920 = vector.broadcast %919 : f32 to vector<8x256xf32>
    %921 = arith.mulf %6, %920 : vector<8x256xf32>
    %922 = arith.addf %916, %921 : vector<8x256xf32>
    %c27_i32_202 = arith.constant 27 : i32
    %923 = arith.addi %7, %c27_i32_202 : i32
    %924 = arith.index_cast %923 : i32 to index
    %925 = memref.load %arg3[%924] : memref<32xf32, #tpu.memory_space<smem>>
    %926 = vector.broadcast %925 : f32 to vector<8x256xf32>
    %927 = arith.addf %922, %926 : vector<8x256xf32>
    %cst_203 = arith.constant 0.000000e+00 : f32
    %928 = vector.broadcast %cst_203 : f32 to vector<8x256xf32>
    %929 = arith.maximumf %927, %928 : vector<8x256xf32>
    %930 = arith.truncf %929 : vector<8x256xf32> to vector<8x256xbf16>
    %c0_204 = arith.constant 0 : index
    %c6912 = arith.constant 6912 : index
    %931 = vector.load %arg7[%c0_204, %c6912] : memref<8x8192xbf16, #tpu.memory_space<vmem>>, vector<8x256xbf16>
    tpu.vector_store %arg7[%c0_204, %c6912], %930 {strides = array<i32>} : memref<8x8192xbf16, #tpu.memory_space<vmem>>, vector<8x256xbf16>,
    %c28_i32 = arith.constant 28 : i32
    %932 = arith.addi %7, %c28_i32 : i32
    %c4_i32_205 = arith.constant 4 : i32
    %933 = arith.muli %932, %c4_i32_205 : i32
    %934 = arith.index_cast %933 : i32 to index
    %935 = memref.load %arg2[%934] : memref<128xf32, #tpu.memory_space<smem>>
    %936 = vector.broadcast %935 : f32 to vector<8x256xf32>
    %937 = arith.mulf %3, %936 : vector<8x256xf32>
    %c1_i32_206 = arith.constant 1 : i32
    %938 = arith.addi %933, %c1_i32_206 : i32
    %939 = arith.index_cast %938 : i32 to index
    %940 = memref.load %arg2[%939] : memref<128xf32, #tpu.memory_space<smem>>
    %941 = vector.broadcast %940 : f32 to vector<8x256xf32>
    %942 = arith.mulf %4, %941 : vector<8x256xf32>
    %943 = arith.addf %937, %942 : vector<8x256xf32>
    %c2_i32_207 = arith.constant 2 : i32
    %944 = arith.addi %933, %c2_i32_207 : i32
    %945 = arith.index_cast %944 : i32 to index
    %946 = memref.load %arg2[%945] : memref<128xf32, #tpu.memory_space<smem>>
    %947 = vector.broadcast %946 : f32 to vector<8x256xf32>
    %948 = arith.mulf %5, %947 : vector<8x256xf32>
    %949 = arith.addf %943, %948 : vector<8x256xf32>
    %c3_i32_208 = arith.constant 3 : i32
    %950 = arith.addi %933, %c3_i32_208 : i32
    %951 = arith.index_cast %950 : i32 to index
    %952 = memref.load %arg2[%951] : memref<128xf32, #tpu.memory_space<smem>>
    %953 = vector.broadcast %952 : f32 to vector<8x256xf32>
    %954 = arith.mulf %6, %953 : vector<8x256xf32>
    %955 = arith.addf %949, %954 : vector<8x256xf32>
    %c28_i32_209 = arith.constant 28 : i32
    %956 = arith.addi %7, %c28_i32_209 : i32
    %957 = arith.index_cast %956 : i32 to index
    %958 = memref.load %arg3[%957] : memref<32xf32, #tpu.memory_space<smem>>
    %959 = vector.broadcast %958 : f32 to vector<8x256xf32>
    %960 = arith.addf %955, %959 : vector<8x256xf32>
    %cst_210 = arith.constant 0.000000e+00 : f32
    %961 = vector.broadcast %cst_210 : f32 to vector<8x256xf32>
    %962 = arith.maximumf %960, %961 : vector<8x256xf32>
    %963 = arith.truncf %962 : vector<8x256xf32> to vector<8x256xbf16>
    %c0_211 = arith.constant 0 : index
    %c7168 = arith.constant 7168 : index
    %964 = vector.load %arg7[%c0_211, %c7168] : memref<8x8192xbf16, #tpu.memory_space<vmem>>, vector<8x256xbf16>
    tpu.vector_store %arg7[%c0_211, %c7168], %963 {strides = array<i32>} : memref<8x8192xbf16, #tpu.memory_space<vmem>>, vector<8x256xbf16>,
    %c29_i32 = arith.constant 29 : i32
    %965 = arith.addi %7, %c29_i32 : i32
    %c4_i32_212 = arith.constant 4 : i32
    %966 = arith.muli %965, %c4_i32_212 : i32
    %967 = arith.index_cast %966 : i32 to index
    %968 = memref.load %arg2[%967] : memref<128xf32, #tpu.memory_space<smem>>
    %969 = vector.broadcast %968 : f32 to vector<8x256xf32>
    %970 = arith.mulf %3, %969 : vector<8x256xf32>
    %c1_i32_213 = arith.constant 1 : i32
    %971 = arith.addi %966, %c1_i32_213 : i32
    %972 = arith.index_cast %971 : i32 to index
    %973 = memref.load %arg2[%972] : memref<128xf32, #tpu.memory_space<smem>>
    %974 = vector.broadcast %973 : f32 to vector<8x256xf32>
    %975 = arith.mulf %4, %974 : vector<8x256xf32>
    %976 = arith.addf %970, %975 : vector<8x256xf32>
    %c2_i32_214 = arith.constant 2 : i32
    %977 = arith.addi %966, %c2_i32_214 : i32
    %978 = arith.index_cast %977 : i32 to index
    %979 = memref.load %arg2[%978] : memref<128xf32, #tpu.memory_space<smem>>
    %980 = vector.broadcast %979 : f32 to vector<8x256xf32>
    %981 = arith.mulf %5, %980 : vector<8x256xf32>
    %982 = arith.addf %976, %981 : vector<8x256xf32>
    %c3_i32_215 = arith.constant 3 : i32
    %983 = arith.addi %966, %c3_i32_215 : i32
    %984 = arith.index_cast %983 : i32 to index
    %985 = memref.load %arg2[%984] : memref<128xf32, #tpu.memory_space<smem>>
    %986 = vector.broadcast %985 : f32 to vector<8x256xf32>
    %987 = arith.mulf %6, %986 : vector<8x256xf32>
    %988 = arith.addf %982, %987 : vector<8x256xf32>
    %c29_i32_216 = arith.constant 29 : i32
    %989 = arith.addi %7, %c29_i32_216 : i32
    %990 = arith.index_cast %989 : i32 to index
    %991 = memref.load %arg3[%990] : memref<32xf32, #tpu.memory_space<smem>>
    %992 = vector.broadcast %991 : f32 to vector<8x256xf32>
    %993 = arith.addf %988, %992 : vector<8x256xf32>
    %cst_217 = arith.constant 0.000000e+00 : f32
    %994 = vector.broadcast %cst_217 : f32 to vector<8x256xf32>
    %995 = arith.maximumf %993, %994 : vector<8x256xf32>
    %996 = arith.truncf %995 : vector<8x256xf32> to vector<8x256xbf16>
    %c0_218 = arith.constant 0 : index
    %c7424 = arith.constant 7424 : index
    %997 = vector.load %arg7[%c0_218, %c7424] : memref<8x8192xbf16, #tpu.memory_space<vmem>>, vector<8x256xbf16>
    tpu.vector_store %arg7[%c0_218, %c7424], %996 {strides = array<i32>} : memref<8x8192xbf16, #tpu.memory_space<vmem>>, vector<8x256xbf16>,
    %c30_i32 = arith.constant 30 : i32
    %998 = arith.addi %7, %c30_i32 : i32
    %c4_i32_219 = arith.constant 4 : i32
    %999 = arith.muli %998, %c4_i32_219 : i32
    %1000 = arith.index_cast %999 : i32 to index
    %1001 = memref.load %arg2[%1000] : memref<128xf32, #tpu.memory_space<smem>>
    %1002 = vector.broadcast %1001 : f32 to vector<8x256xf32>
    %1003 = arith.mulf %3, %1002 : vector<8x256xf32>
    %c1_i32_220 = arith.constant 1 : i32
    %1004 = arith.addi %999, %c1_i32_220 : i32
    %1005 = arith.index_cast %1004 : i32 to index
    %1006 = memref.load %arg2[%1005] : memref<128xf32, #tpu.memory_space<smem>>
    %1007 = vector.broadcast %1006 : f32 to vector<8x256xf32>
    %1008 = arith.mulf %4, %1007 : vector<8x256xf32>
    %1009 = arith.addf %1003, %1008 : vector<8x256xf32>
    %c2_i32_221 = arith.constant 2 : i32
    %1010 = arith.addi %999, %c2_i32_221 : i32
    %1011 = arith.index_cast %1010 : i32 to index
    %1012 = memref.load %arg2[%1011] : memref<128xf32, #tpu.memory_space<smem>>
    %1013 = vector.broadcast %1012 : f32 to vector<8x256xf32>
    %1014 = arith.mulf %5, %1013 : vector<8x256xf32>
    %1015 = arith.addf %1009, %1014 : vector<8x256xf32>
    %c3_i32_222 = arith.constant 3 : i32
    %1016 = arith.addi %999, %c3_i32_222 : i32
    %1017 = arith.index_cast %1016 : i32 to index
    %1018 = memref.load %arg2[%1017] : memref<128xf32, #tpu.memory_space<smem>>
    %1019 = vector.broadcast %1018 : f32 to vector<8x256xf32>
    %1020 = arith.mulf %6, %1019 : vector<8x256xf32>
    %1021 = arith.addf %1015, %1020 : vector<8x256xf32>
    %c30_i32_223 = arith.constant 30 : i32
    %1022 = arith.addi %7, %c30_i32_223 : i32
    %1023 = arith.index_cast %1022 : i32 to index
    %1024 = memref.load %arg3[%1023] : memref<32xf32, #tpu.memory_space<smem>>
    %1025 = vector.broadcast %1024 : f32 to vector<8x256xf32>
    %1026 = arith.addf %1021, %1025 : vector<8x256xf32>
    %cst_224 = arith.constant 0.000000e+00 : f32
    %1027 = vector.broadcast %cst_224 : f32 to vector<8x256xf32>
    %1028 = arith.maximumf %1026, %1027 : vector<8x256xf32>
    %1029 = arith.truncf %1028 : vector<8x256xf32> to vector<8x256xbf16>
    %c0_225 = arith.constant 0 : index
    %c7680 = arith.constant 7680 : index
    %1030 = vector.load %arg7[%c0_225, %c7680] : memref<8x8192xbf16, #tpu.memory_space<vmem>>, vector<8x256xbf16>
    tpu.vector_store %arg7[%c0_225, %c7680], %1029 {strides = array<i32>} : memref<8x8192xbf16, #tpu.memory_space<vmem>>, vector<8x256xbf16>,
    %c31_i32 = arith.constant 31 : i32
    %1031 = arith.addi %7, %c31_i32 : i32
    %c4_i32_226 = arith.constant 4 : i32
    %1032 = arith.muli %1031, %c4_i32_226 : i32
    %1033 = arith.index_cast %1032 : i32 to index
    %1034 = memref.load %arg2[%1033] : memref<128xf32, #tpu.memory_space<smem>>
    %1035 = vector.broadcast %1034 : f32 to vector<8x256xf32>
    %1036 = arith.mulf %3, %1035 : vector<8x256xf32>
    %c1_i32_227 = arith.constant 1 : i32
    %1037 = arith.addi %1032, %c1_i32_227 : i32
    %1038 = arith.index_cast %1037 : i32 to index
    %1039 = memref.load %arg2[%1038] : memref<128xf32, #tpu.memory_space<smem>>
    %1040 = vector.broadcast %1039 : f32 to vector<8x256xf32>
    %1041 = arith.mulf %4, %1040 : vector<8x256xf32>
    %1042 = arith.addf %1036, %1041 : vector<8x256xf32>
    %c2_i32_228 = arith.constant 2 : i32
    %1043 = arith.addi %1032, %c2_i32_228 : i32
    %1044 = arith.index_cast %1043 : i32 to index
    %1045 = memref.load %arg2[%1044] : memref<128xf32, #tpu.memory_space<smem>>
    %1046 = vector.broadcast %1045 : f32 to vector<8x256xf32>
    %1047 = arith.mulf %5, %1046 : vector<8x256xf32>
    %1048 = arith.addf %1042, %1047 : vector<8x256xf32>
    %c3_i32_229 = arith.constant 3 : i32
    %1049 = arith.addi %1032, %c3_i32_229 : i32
    %1050 = arith.index_cast %1049 : i32 to index
    %1051 = memref.load %arg2[%1050] : memref<128xf32, #tpu.memory_space<smem>>
    %1052 = vector.broadcast %1051 : f32 to vector<8x256xf32>
    %1053 = arith.mulf %6, %1052 : vector<8x256xf32>
    %1054 = arith.addf %1048, %1053 : vector<8x256xf32>
    %c31_i32_230 = arith.constant 31 : i32
    %1055 = arith.addi %7, %c31_i32_230 : i32
    %1056 = arith.index_cast %1055 : i32 to index
    %1057 = memref.load %arg3[%1056] : memref<32xf32, #tpu.memory_space<smem>>
    %1058 = vector.broadcast %1057 : f32 to vector<8x256xf32>
    %1059 = arith.addf %1054, %1058 : vector<8x256xf32>
    %cst_231 = arith.constant 0.000000e+00 : f32
    %1060 = vector.broadcast %cst_231 : f32 to vector<8x256xf32>
    %1061 = arith.maximumf %1059, %1060 : vector<8x256xf32>
    %1062 = arith.truncf %1061 : vector<8x256xf32> to vector<8x256xbf16>
    %c0_232 = arith.constant 0 : index
    %c7936 = arith.constant 7936 : index
    %1063 = vector.load %arg7[%c0_232, %c7936] : memref<8x8192xbf16, #tpu.memory_space<vmem>>, vector<8x256xbf16>
    tpu.vector_store %arg7[%c0_232, %c7936], %1062 {strides = array<i32>} : memref<8x8192xbf16, #tpu.memory_space<vmem>>, vector<8x256xbf16>,
    %c0_233 = arith.constant 0 : index
    %c0_234 = arith.constant 0 : index
    %1064 = vector.load %arg8[%c0_233, %c0_234] : memref<8x128xf32, #tpu.memory_space<vmem>>, vector<8x128xf32>
    %c0_235 = arith.constant 0 : index
    %c0_236 = arith.constant 0 : index
    %1065 = vector.load %arg7[%c0_235, %c0_236] : memref<8x8192xbf16, #tpu.memory_space<vmem>>, vector<8x8192xbf16>
    %c0_237 = arith.constant 0 : index
    %c0_238 = arith.constant 0 : index
    %1066 = vector.load %arg4[%c0_237, %c0_238] : memref<8192x128xbf16, #tpu.memory_space<vmem>>, vector<8192x128xbf16>
    %cst_239 = arith.constant dense<0.000000e+00> : vector<8x128xf32>
    %1067 = tpu.matmul %1065, %1066, %cst_239 {dimension_numbers = #tpu.dot_dimension_numbers<[1], [0], [0], [1], [0, 0, 1, 1], [], []>} : vector<8x8192xbf16>, vector<8192x128xbf16>, vector<8x128xf32> -> vector<8x128xf32>
    %1068 = arith.addf %1064, %1067 : vector<8x128xf32>
    %c0_240 = arith.constant 0 : index
    %c0_241 = arith.constant 0 : index
    %1069 = vector.load %arg8[%c0_240, %c0_241] : memref<8x128xf32, #tpu.memory_space<vmem>>, vector<8x128xf32>
    tpu.vector_store %arg8[%c0_240, %c0_241], %1068 {strides = array<i32>} : memref<8x128xf32, #tpu.memory_space<vmem>>, vector<8x128xf32>,
    %c0_i32_242 = arith.constant 0 : i32
    %1070 = arith.cmpi eq, %arg0, %c0_i32_242 : i32
    %1071 = arith.extui %1070 : i1 to i32
    %c0_i32_243 = arith.constant 0 : i32
    %1072 = arith.cmpi ne, %1071, %c0_i32_243 : i32
    scf.if %1072 {
      %c0_244 = arith.constant 0 : index
      %c0_245 = arith.constant 0 : index
      %1073 = vector.load %arg8[%c0_244, %c0_245] : memref<8x128xf32, #tpu.memory_space<vmem>>, vector<8x128xf32>
      %c0_246 = arith.constant 0 : index
      %c0_247 = arith.constant 0 : index
      %1074 = vector.load %arg5[%c0_246, %c0_247] : memref<1x128xf32, #tpu.memory_space<vmem>>, vector<1x128xf32>
      %1075 = vector.broadcast %1074 : vector<1x128xf32> to vector<8x128xf32>
      %1076 = arith.addf %1073, %1075 : vector<8x128xf32>
      %cst_248 = arith.constant 0.000000e+00 : f32
      %1077 = vector.broadcast %cst_248 : f32 to vector<8x128xf32>
      %1078 = arith.maximumf %1076, %1077 : vector<8x128xf32>
      %c0_249 = arith.constant 0 : index
      %c0_250 = arith.constant 0 : index
      %1079 = vector.load %arg6[%c0_249, %c0_250] : memref<8x128xf32, #tpu.memory_space<vmem>>, vector<8x128xf32>
      tpu.vector_store %arg6[%c0_249, %c0_250], %1078 {strides = array<i32>} : memref<8x128xf32, #tpu.memory_space<vmem>>, vector<8x128xf32>,
    } else {
    }
    return
  }
  func.func @transform_0(%arg0: i32) -> (i32, i32) {
    %c0_i32 = arith.constant 0 : i32
    %c0_i32_0 = arith.constant 0 : i32
    %c0_i32_1 = arith.constant 0 : i32
    return %c0_i32, %c0_i32_0 : i32, i32
  }
  func.func @transform_1(%arg0: i32) -> i32 {
    %c0_i32 = arith.constant 0 : i32
    %c0_i32_0 = arith.constant 0 : i32
    return %c0_i32 : i32
  }
  func.func @transform_2(%arg0: i32) -> i32 {
    %c0_i32 = arith.constant 0 : i32
    %c0_i32_0 = arith.constant 0 : i32
    return %c0_i32 : i32
  }
  func.func @transform_3(%arg0: i32) -> (i32, i32) {
    %c0_i32 = arith.constant 0 : i32
    %c0_i32_0 = arith.constant 0 : i32
    return %arg0, %c0_i32 : i32, i32
  }
  func.func @transform_4(%arg0: i32) -> (i32, i32) {
    %c0_i32 = arith.constant 0 : i32
    %c0_i32_0 = arith.constant 0 : i32
    %c0_i32_1 = arith.constant 0 : i32
    return %c0_i32, %c0_i32_0 : i32, i32
  }
  func.func @transform_5(%arg0: i32) -> (i32, i32) {
    %c0_i32 = arith.constant 0 : i32
    %c0_i32_0 = arith.constant 0 : i32
    %c0_i32_1 = arith.constant 0 : i32
    return %c0_i32, %c0_i32_0 : i32, i32
  }
}

</mosaic_0001>

<bundles_post_ra>
// kernel: state_encoder_forward.1
= control target key start
LH: loop header
LB: loop body
LE: loop exit
PB: predicated region body
PF: predicated region fallthrough
CT: control target
= control target key end

     0   :  { %10 = vsyncpa [#allocation6], 0  ;;  %s10244_s0 = inlined_call_operand.vmem [shape: f32[8,1024], index: 0, kind: input, shape index: {}]   ;;  %s10245_s1 = inlined_call_operand.hbm [shape: f32[128], index: 1, kind: input, shape index: {}]   ;;  %s10246_s2 = inlined_call_operand.hbm [shape: f32[32], index: 2, kind: input, shape index: {}]   ;;  %s10247_s3 = inlined_call_operand.hbm [shape: bf16[8192,128], index: 3, kind: input, shape index: {}]   ;;  %s10248_s4 = inlined_call_operand.hbm [shape: f32[1,128], index: 4, kind: input, shape index: {}]   ;;  %s10249_s5 = inlined_call_operand.vmem [shape: f32[8,128], index: 5, kind: output, shape index: {}]  }
   0x1   :  { %11 = vsyncpa [#allocation8], 0 }
   0x2   :  { %12 = vsyncpa [#allocation5], 0  ;;  %s21_s20 = sshll.u32 %s10245_s1, 4  ;;  %s22_s20 = int_to_ptr.hbm [resolvable:$true] %s21_s20 }
   0x3   :  { %13 = vsyncpa [#allocation11], 0  ;;  %s30_s23 = sshll.u32 %s10246_s2, 4  ;;  %s9243_s24 = smov [#allocation4]   ;;  %s31_s23 = int_to_ptr.hbm [resolvable:$true] %s30_s23 }
   0x4   :  { %24 = dma.hbm_to_smem %s22_s20, 16, %s9243_s24, [#allocation6]  }
   0x5   :  { %s9244_s25 = smov [#allocation7]   ;;  %s38_s28 = sshll.u32 %s10247_s3, 4  ;;  %s39_s28 = int_to_ptr.hbm [resolvable:$true] %s38_s28 }
   0x6   :  { %33 = dma.hbm_to_smem %s31_s23, 16, %s9244_s25, [#allocation8]  }
   0x7   :  { %s9245_s29 = smov [#allocation9]   ;;  %s52_s7 = sshll.u32 %s10248_s4, 4  ;;  %s53_s7 = int_to_ptr.hbm [resolvable:$true] %s52_s7 }
   0x8   :  { %s40_s30 = sshll.u32 %s9245_s29, 4  ;;  %s9246_s8 = smov 64   ;;  %s41_s30 = int_to_ptr.vmem [resolvable:$true] %s40_s30 }
   0x9   :  { %s9247_s9 = smov 4   ;;  %s9248_s2 = smov [#allocation10]  }
   0xa   :  { %46 = dma.hbm_to_vmem [thread:$0]  %s39_s28, 65536, %s41_s30, [#allocation5], %s9246_s8, %s9246_s8, %s9247_s9  }
   0xb   :  { %s54_s10 = sshll.u32 %s9248_s2, 4  ;;  %s55_s10 = int_to_ptr.vmem [resolvable:$true] %s54_s10 }
   0xc   :  { %57 = dma.hbm_to_vmem [thread:$0]  %s53_s7, 16, %s55_s10, [#allocation11]  }
   0xd   :  { %9235 = dma.done.wait [#allocation6], 16  }
   0xe   :  { %9236 = vsyncadd [#allocation6], 4294967280 }
   0xf   :  { %9237 = dma.done.wait [#allocation8], 16  }
  0x10   :  { %9238 = vsyncadd [#allocation8], 4294967280 }
  0x11   :  { %9239 = dma.done.wait [#allocation5], 65536  }
  0x12   :  { %9240 = vsyncadd [#allocation5], 4294901760 }
  0x13   :  { %9241 = dma.done.wait [#allocation11], 16  }
  0x14   :  { %9242 = vsyncadd [#allocation11], 4294967280 }
  0x15   :  { %74 = sfence }
  0x16   :  { %v8627_v0 = vld [vmem:[#allocation9 + $0x38] sm:$0xff]  ;;  %s9291_s3 = sld [smem:[#allocation4 + $0x4]]  ;;  %v8626_v4 = vld [vmem:[#allocation9 + $0x30] sm:$0xff]  ;;  %v8625_v8 = vld [vmem:[#allocation9 + $0x28] sm:$0xff] }
  0x17   :  { %v8635_v1 = vld [vmem:[#allocation9 + $0x78] sm:$0xff]  ;;  %5561 = vmatpush.bf16.msra.mxu0 %v8627_v0  ;;  %v8634_v5 = vld [vmem:[#allocation9 + $0x70] sm:$0xff]  ;;  %s9293_s4 = sld [smem:[#allocation4 + $0x5]]  ;;  %v8633_v9 = vld [vmem:[#allocation9 + $0x68] sm:$0xff] }
  0x18   :  { %v8643_v2 = vld [vmem:[#allocation9 + $0xb8] sm:$0xff]  ;;  %5574 = vmatpush.bf16.msra.mxu1 %v8635_v1  ;;  %v8642_v6 = vld [vmem:[#allocation9 + $0xb0] sm:$0xff]  ;;  %s9295_s11 = sld [smem:[#allocation4 + $0x6]]  ;;  %v8641_v10 = vld [vmem:[#allocation9 + $0xa8] sm:$0xff] }
  0x19   :  { %v8651_v3 = vld [vmem:[#allocation9 + $0xf8] sm:$0xff]  ;;  %5587 = vmatpush.bf16.msra.mxu2 %v8643_v2  ;;  %v8650_v7 = vld [vmem:[#allocation9 + $0xf0] sm:$0xff]  ;;  %s9297_s12 = sld [smem:[#allocation4 + $0x7]]  ;;  %v8649_v11 = vld [vmem:[#allocation9 + $0xe8] sm:$0xff] }
  0x1a   :  { %5600 = vmatpush.bf16.msra.mxu3 %v8651_v3  ;;  %s9299_s13 = sld [smem:[#allocation7 + $0x1]]  ;;  %v8624_v12 = vld [vmem:[#allocation9 + $0x20] sm:$0xff]  ;;  %v8623_v16 = vld [vmem:[#allocation9 + $0x18] sm:$0xff]  ;;  %v8622_v23 = vld [vmem:[#allocation9 + $0x10] sm:$0xff] }
  0x1b   :  { %5562 = vmatpush.bf16.msra.mxu0 %v8626_v4  ;;  %s9301_s14 = sld [smem:[#allocation4]]  ;;  %v8632_v13 = vld [vmem:[#allocation9 + $0x60] sm:$0xff]  ;;  %v8631_v17 = vld [vmem:[#allocation9 + $0x58] sm:$0xff]  ;;  %v8630_v24 = vld [vmem:[#allocation9 + $0x50] sm:$0xff] }
  0x1c   :  { %5575 = vmatpush.bf16.msra.mxu1 %v8634_v5  ;;  %s9303_s15 = sld [smem:[#allocation4 + $0x1]]  ;;  %v8640_v14 = vld [vmem:[#allocation9 + $0xa0] sm:$0xff]  ;;  %v8639_v18 = vld [vmem:[#allocation9 + $0x98] sm:$0xff]  ;;  %v126_v20 = vstv %s9291_s3  ;;  %v8638_v29 = vld [vmem:[#allocation9 + $0x90] sm:$0xff] }
  0x1d   :  { %5588 = vmatpush.bf16.msra.mxu2 %v8642_v6  ;;  %s9305_s16 = sld [smem:[#allocation4 + $0x2]]  ;;  %v8648_v15 = vld [vmem:[#allocation9 + $0xe0] sm:$0xff]  ;;  %v8647_v19 = vld [vmem:[#allocation9 + $0xd8] sm:$0xff]  ;;  %v131_v21 = vstv %s9293_s4  ;;  %v8646_v30 = vld [vmem:[#allocation9 + $0xd0] sm:$0xff] }
  0x1e   :  { %5601 = vmatpush.bf16.msra.mxu3 %v8650_v7  ;;  %s9307_s17 = sld [smem:[#allocation4 + $0x3]]  ;;  %v138_v25 = vstv %s9295_s11  ;;  %v9327_v31 = vld [vmem:[%s10244_s0] sm:$0xff]  ;;  %v9332_v32 = vld [vmem:[%s10244_s0 + $0x8] sm:$0xff]  ;;  %v9339_v35 = vld [vmem:[%s10244_s0 + $0x10] sm:$0xff] }
  0x1f   :  { %5563 = vmatpush.bf16.msra.mxu0 %v8625_v8  ;;  %s9309_s18 = sld [smem:[#allocation7]]  ;;  %v145_v26 = vstv %s9297_s12  ;;  %v9344_v36 = vld [vmem:[%s10244_s0 + $0x18] sm:$0xff]  ;;  %v9349_v37 = vld [vmem:[%s10244_s0 + $0x20] sm:$0xff]  ;;  %v127_v38 = vmul.f32 %v126_v20, %v9327_v31  ;;  %v128_v39 = vmul.f32 %v126_v20, %v9332_v32  ;;  %v9360_v42 = vld [vmem:[%s10244_s0 + $0x28] sm:$0xff]  ;;  %v132_v45 = vmul.f32 %v131_v21, %v9339_v35 }
  0x20   :  { %5576 = vmatpush.bf16.msra.mxu1 %v8633_v9  ;;  %s9311_s19 = sld [smem:[#allocation4 + $0xc]]  ;;  %v151_v27 = vstv %s9299_s13  ;;  %v9365_v43 = vld [vmem:[%s10244_s0 + $0x30] sm:$0xff]  ;;  %v9370_v44 = vld [vmem:[%s10244_s0 + $0x38] sm:$0xff]  ;;  %v133_v46 = vmul.f32 %v131_v21, %v9344_v36  ;;  %v139_v47 = vmul.f32 %v138_v25, %v9349_v37  ;;  %v140_v49 = vmul.f32 %v138_v25, %v9360_v42  ;;  %v8621_v57 = vld [vmem:[#allocation9 + $0x8] sm:$0xff] }
  0x21   :  { %5589 = vmatpush.bf16.msra.mxu2 %v8641_v10  ;;  %s9313_s20 = sld [smem:[#allocation4 + $0xd]]  ;;  %v91_v22 = vstv %s9301_s14  ;;  %v146_v50 = vmul.f32 %v145_v26, %v9365_v43  ;;  %v147_v51 = vmul.f32 %v145_v26, %v9370_v44  ;;  %v134_v53 = vadd.f32 %v132_v45, %v127_v38  ;;  %v8629_v58 = vld [vmem:[#allocation9 + $0x48] sm:$0xff]  ;;  %v8644_v20 = vld [vmem:[#allocation9 + $0xc0] sm:$0xff]  ;;  %v8659_v25 = vld [vmem:[#allocation9 + $0x138] sm:$0xff] }
  0x22   :  { %5602 = vmatpush.bf16.msra.mxu3 %v8649_v11  ;;  %s9318_s21 = sld [smem:[#allocation4 + $0xe]]  ;;  %v96_v28 = vstv %s9303_s15  ;;  %v92_v40 = vmul.f32 %v91_v22, %v9327_v31  ;;  %v93_v52 = vmul.f32 %v91_v22, %v9332_v32  ;;  %v135_v54 = vadd.f32 %v133_v46, %v128_v39  ;;  %v8637_v63 = vld [vmem:[#allocation9 + $0x88] sm:$0xff]  ;;  %v8667_v26 = vld [vmem:[#allocation9 + $0x178] sm:$0xff] }
  0x23   :  { %5564 = vmatpush.bf16.msra.mxu0 %v8624_v12  ;;  %v103_v33 = vstv %s9305_s16  ;;  %s9355_s6 = sld [smem:[#allocation4 + $0xf]]  ;;  %v97_v55 = vmul.f32 %v96_v28, %v9339_v35  ;;  %v98_v56 = vmul.f32 %v96_v28, %v9344_v36  ;;  %v8645_v0 = vld [vmem:[#allocation9 + $0xc8] sm:$0xff]  ;;  %v141_v1 = vadd.f32 %v139_v47, %v134_v53  ;;  %v8683_v38 = vld [vmem:[#allocation9 + $0x1f8] sm:$0xff]  ;;  %v8666_v53 = vld [vmem:[#allocation9 + $0x170] sm:$0xff] }
  0x24   :  { %5577 = vmatpush.bf16.msra.mxu1 %v8632_v13  ;;  %v110_v34 = vstv %s9307_s17  ;;  %s9376_s4 = sld [smem:[#allocation4 + $0x8]]  ;;  %v104_v59 = vmul.f32 %v103_v33, %v9349_v37  ;;  %v105_v60 = vmul.f32 %v103_v33, %v9360_v42  ;;  %v142_v2 = vadd.f32 %v140_v49, %v135_v54  ;;  %v8620_v13 = vld [vmem:[#allocation9] sm:$0xff] }
  0x25   :  { %5590 = vmatpush.bf16.msra.mxu2 %v8640_v14  ;;  %v116_v41 = vstv %s9309_s18  ;;  %v111_v61 = vmul.f32 %v110_v34, %v9365_v43  ;;  %s9388_s11 = sld [smem:[#allocation4 + $0x9]]  ;;  %v99_v3 = vadd.f32 %v97_v55, %v92_v40  ;;  %v100_v5 = vadd.f32 %v98_v56, %v93_v52  ;;  %v8628_v14 = vld [vmem:[#allocation9 + $0x40] sm:$0xff]  ;;  %v8658_v52 = vld [vmem:[#allocation9 + $0x130] sm:$0xff] }
  0x26   :  { %5603 = vmatpush.bf16.msra.mxu3 %v8648_v15  ;;  %v196_v48 = vstv %s9311_s19  ;;  %v112_v6 = vmul.f32 %v110_v34, %v9370_v44  ;;  %v148_v9 = vadd.f32 %v146_v50, %v141_v1  ;;  %v149_v10 = vadd.f32 %v147_v51, %v142_v2  ;;  %s9398_s12 = sld [smem:[#allocation4 + $0xa]]  ;;  %v8675_v34 = vld [vmem:[#allocation9 + $0x1b8] sm:$0xff] }
  0x27   :  { %5565 = vmatpush.bf16.msra.mxu0 %v8623_v16  ;;  %v201_v62 = vstv %s9313_s20  ;;  %v197_v7 = vmul.f32 %v196_v48, %v9327_v31  ;;  %v198_v8 = vmul.f32 %v196_v48, %v9332_v32  ;;  %v106_v11 = vadd.f32 %v104_v59, %v99_v3  ;;  %s9406_s14 = sld [smem:[#allocation7 + $0x3]] }
  0x28   :  { %5578 = vmatpush.bf16.msra.mxu1 %v8631_v17  ;;  %v208_v4 = vstv %s9318_s21  ;;  %v202_v12 = vmul.f32 %v201_v62, %v9339_v35  ;;  %v107_v15 = vadd.f32 %v105_v60, %v100_v5  ;;  %v203_v16 = vmul.f32 %v201_v62, %v9344_v36  ;;  %s9410_s13 = sld [smem:[#allocation4 + $0xb]]  ;;  %v8657_v5 = vld [vmem:[#allocation9 + $0x128] sm:$0xff] }
  0x29   :  { %5591 = vmatpush.bf16.msra.mxu2 %v8639_v18  ;;  %v209_v17 = vmul.f32 %v208_v4, %v9349_v37  ;;  %v215_v18 = vstv %s9355_s6  ;;  %v152_v21 = vadd.f32 %v151_v27, %v148_v9  ;;  %v153_v22 = vadd.f32 %v151_v27, %v149_v10  ;;  %s9419_s15 = sld [smem:[#allocation7 + $0x2]] }
  0x2a   :  { %5604 = vmatpush.bf16.msra.mxu3 %v8647_v19  ;;  %v8636_v19 = vld [vmem:[#allocation9 + $0x80] sm:$0xff]  ;;  %v114_v28 = vadd.f32 %v112_v6, %v107_v15  ;;  %v210_v33 = vmul.f32 %v208_v4, %v9360_v42  ;;  %v216_v46 = vmul.f32 %v215_v18, %v9365_v43  ;;  %v8665_v6 = vld [vmem:[#allocation9 + $0x168] sm:$0xff]  ;;  %s9431_s16 = sld [smem:[#allocation4 + $0x10]] }
  0x2b   :  { %5566 = vmatpush.bf16.msra.mxu0 %v8622_v23  ;;  %v113_v23 = vadd.f32 %v111_v61, %v106_v11  ;;  %v154_v39 = vmax.f32 %v152_v21, 0.0  ;;  %v155_v40 = vmax.f32 %v153_v22, 0.0  ;;  %v166_v47 = vstv %s9388_s11  ;;  %v8673_v11 = vld [vmem:[#allocation9 + $0x1a8] sm:$0xff]  ;;  %s9433_s17 = sld [smem:[#allocation4 + $0x11]] }
  0x2c   :  { %5579 = vmatpush.bf16.msra.mxu1 %v8630_v24  ;;  %v161_v24 = vstv %s9376_s4  ;;  %v118_v27 = vadd.f32 %v116_v41, %v114_v28  ;;  %v217_v61 = vmul.f32 %v215_v18, %v9370_v44  ;;  %v168_v62 = vmul.f32 %v166_v47, %v9344_v36  ;;  %v8672_v28 = vld [vmem:[#allocation9 + $0x1a0] sm:$0xff]  ;;  %s9435_s18 = sld [smem:[#allocation4 + $0x14]] }
  0x2d   :  { %5592 = vmatpush.bf16.msra.mxu2 %v8638_v29  ;;  %v204_v29 = vadd.f32 %v202_v12, %v197_v7  ;;  %v117_v45 = vadd.f32 %v116_v41, %v113_v23  ;;  %v156_v48 = vpack.c.bf16 %v155_v40, %v154_v39  ;;  %v162_v51 = vmul.f32 %v161_v24, %v9327_v31  ;;  %v8681_v12 = vld [vmem:[#allocation9 + $0x1e8] sm:$0xff]  ;;  %v8656_v23 = vld [vmem:[#allocation9 + $0x120] sm:$0xff]  ;;  %v8655_v40 = vld [vmem:[#allocation9 + $0x118] sm:$0xff]  ;;  %s9437_s19 = sld [smem:[#allocation4 + $0x15]] }
  0x2e   :  { %5605 = vmatpush.bf16.msra.mxu3 %v8646_v30  ;;  %v205_v30 = vadd.f32 %v203_v16, %v198_v8  ;;  %v120_v54 = vmax.f32 %v118_v27, 0.0  ;;  %v163_v56 = vmul.f32 %v161_v24, %v9332_v32  ;;  %v167_v41 = vmul.f32 %v166_v47, %v9339_v35  ;;  %v8664_v24 = vld [vmem:[#allocation9 + $0x160] sm:$0xff]  ;;  %v8671_v27 = vld [vmem:[#allocation9 + $0x198] sm:$0xff]  ;;  %s9439_s20 = sld [smem:[#allocation4 + $0x12]] }
  0x2f   :  { %5567 = vmatpush.bf16.msra.mxu0 %v8621_v57  ;;  %v119_v49 = vmax.f32 %v117_v45, 0.0  ;;  %v211_v50 = vadd.f32 %v209_v17, %v204_v29  ;;  %v8674_v57 = vld [vmem:[#allocation9 + $0x1b0] sm:$0xff]  ;;  %v2299_v59 = vunpack.c.l.b16 %v156_v48  ;;  %v2300_v60 = vunpack.c.h.b16 %v156_v48  ;;  %v8680_v29 = vld [vmem:[#allocation9 + $0x1e0] sm:$0xff]  ;;  %v8663_v45 = vld [vmem:[#allocation9 + $0x158] sm:$0xff]  ;;  %s9441_s21 = sld [smem:[#allocation4 + $0x16]] }
  0x30   :  { %5580 = vmatpush.bf16.msra.mxu1 %v8629_v58  ;;  %v212_v55 = vadd.f32 %v210_v33, %v205_v30  ;;  %v8682_v58 = vld [vmem:[#allocation9 + $0x1f0] sm:$0xff]  ;;  %v173_v1 = vstv %s9398_s12  ;;  %v170_v4 = vadd.f32 %v168_v62, %v163_v56  ;;  %v180_v16 = vstv %s9410_s13  ;;  %s9445_s22 = sld [smem:[#allocation4 + $0x13]]  ;;  %v8669_v62 = vld [vmem:[#allocation9 + $0x188] sm:$0xff] }
  0x31   :  { %5593 = vmatpush.bf16.msra.mxu2 %v8637_v63  ;;  %v121_v63 = vpack.c.bf16 %v120_v54, %v119_v49  ;;  %v2363_v2 = vpack.c.b16 %v2299_v59, %v2299_v59  ;;  %v2364_v3 = vpack.c.b16 %v2300_v60, %v2300_v60  ;;  %v218_v9 = vadd.f32 %v216_v46, %v211_v50  ;;  %v8679_v46 = vld [vmem:[#allocation9 + $0x1d8] sm:$0xff]  ;;  %v8678_v54 = vld [vmem:[#allocation9 + $0x1d0] sm:$0xff]  ;;  %v8661_v59 = vld [vmem:[#allocation9 + $0x148] sm:$0xff]  ;;  %s9449_s23 = sld [smem:[#allocation4 + $0x17]] }
  0x32   :  { %5606 = vmatpush.bf16.msra.mxu3 %v8645_v0  ;;  %v169_v0 = vadd.f32 %v167_v41, %v162_v51  ;;  %v174_v10 = vmul.f32 %v173_v1, %v9349_v37  ;;  %v175_v15 = vmul.f32 %v173_v1, %v9360_v42  ;;  %v181_v21 = vmul.f32 %v180_v16, %v9365_v43  ;;  %v8654_v51 = vld [vmem:[#allocation9 + $0x110] sm:$0xff]  ;;  %s9464_s24 = sld [smem:[#allocation7 + $0x4]] }
  0x33   :  { %5568 = vmatpush.bf16.msra.mxu0 %v8620_v13  ;;  %v2297_v7 = vunpack.c.l.b16 %v121_v63  ;;  %v2298_v8 = vunpack.c.h.b16 %v121_v63  ;;  %v219_v13 = vadd.f32 %v217_v61, %v212_v55  ;;  %v182_v22 = vmul.f32 %v180_v16, %v9370_v44  ;;  %v8677_v63 = vld [vmem:[#allocation9 + $0x1c8] sm:$0xff]  ;;  %s9469_s25 = sld [smem:[#allocation7 + $0x5]] }
  0x34   :  { %5581 = vmatpush.bf16.msra.mxu1 %v8628_v14  ;;  %v221_v14 = vstv %s9406_s14  ;;  %v231_v41 = vstv %s9431_s16  ;;  %v266_v60 = vstv %s9435_s18  ;;  %v271_v61 = vstv %s9437_s19  ;;  %s9477_s26 = sld [smem:[#allocation4 + $0x18]] }
  0x35   :  { %5594 = vmatpush.bf16.msra.mxu2 %v8636_v19  ;;  %v2361_v17 = vpack.c.b16 %v2297_v7, %v2297_v7  ;;  %v2362_v18 = vpack.c.b16 %v2298_v8, %v2298_v8  ;;  %v176_v19 = vadd.f32 %v174_v10, %v169_v0  ;;  %v223_v30 = vadd.f32 %v221_v14, %v219_v13  ;;  %v8660_v10 = vld [vmem:[#allocation9 + $0x140] sm:$0xff]  ;;  %s9479_s27 = sld [smem:[#allocation4 + $0x19]] }
  0x36   :  { %5607 = vmatpush.bf16.msra.mxu3 %v8644_v20  ;;  %v177_v20 = vadd.f32 %v175_v15, %v170_v4  ;;  %v232_v1 = vmul.f32 %v231_v41, %v9327_v31  ;;  %v267_v7 = vmul.f32 %v266_v60, %v9327_v31  ;;  %v272_v8 = vmul.f32 %v271_v61, %v9339_v35  ;;  %v8668_v13 = vld [vmem:[#allocation9 + $0x180] sm:$0xff]  ;;  %s9481_s28 = sld [smem:[#allocation4 + $0x1c]] }
  0x37   :  { %5613 = vmatpush.bf16.msrb.mxu0 %v8659_v25  ;;  %v222_v25 = vadd.f32 %v221_v14, %v218_v9  ;;  %v183_v33 = vadd.f32 %v181_v21, %v176_v19  ;;  %5582 = vmatmul.bf16.vlgmr.msra.gmra.mxu1 %v2362_v18  ;;  %v225_v48 = vmax.f32 %v223_v30, 0.0  ;;  %v8652_v9 = vld [vmem:[#allocation9 + $0x100] sm:$0xff]  ;;  %v8691_v18 = vld [vmem:[#allocation9 + $0x238] sm:$0xff]  ;;  %s9483_s29 = sld [smem:[#allocation4 + $0x1d]] }
  0x38   :  { %5626 = vmatpush.bf16.msrb.mxu1 %v8667_v26  ;;  %5595 = vmatmul.bf16.vlgmr.msra.gmra.mxu2 %v2363_v2  ;;  %v186_v26 = vstv %s9419_s15  ;;  %v233_v2 = vmul.f32 %v231_v41, %v9332_v32  ;;  %v8676_v14 = vld [vmem:[#allocation9 + $0x1c0] sm:$0xff]  ;;  %v8699_v19 = vld [vmem:[#allocation9 + $0x278] sm:$0xff]  ;;  %v274_v30 = vadd.f32 %v272_v8, %v267_v7  ;;  %v8689_v41 = vld [vmem:[#allocation9 + $0x228] sm:$0xff]  ;;  %s9485_s30 = sld [smem:[#allocation4 + $0x1a]] }
  0x39   :  { %5639 = vmatpush.bf16.msrb.mxu2 %v8675_v34  ;;  %5608 = vmatmul.bf16.vlgmr.msra.gmra.mxu3 %v2364_v3  ;;  %v184_v34 = vadd.f32 %v182_v22, %v177_v20  ;;  %v224_v47 = vmax.f32 %v222_v25, 0.0  ;;  %v8715_v25 = vld [vmem:[#allocation9 + $0x2f8] sm:$0xff]  ;;  %s9487_s1 = sld [smem:[#allocation4 + $0x1e]] }
  0x3a   :  { %5652 = vmatpush.bf16.msrb.mxu3 %v8683_v38  ;;  %5569 = vmatmul.bf16.vlgmr.msra.gmra.mxu0 %v2361_v17  ;;  %v187_v38 = vadd.f32 %v186_v26, %v183_v33  ;;  %v278_v17 = vstv %s9441_s21  ;;  %s9491_s6 = sld [smem:[#allocation4 + $0x1b]] }
  0x3b   :  { %5614 = vmatpush.bf16.msrb.mxu0 %v8658_v52  ;;  %v188_v39 = vadd.f32 %v186_v26, %v184_v34  ;;  %v8662_v52 = vld [vmem:[#allocation9 + $0x150] sm:$0xff]  ;;  %v226_v55 = vpack.c.bf16 %v225_v48, %v224_v47  ;;  %v279_v34 = vmul.f32 %v278_v17, %v9349_v37  ;;  %s9495_s7 = sld [smem:[#allocation4 + $0x1f]] }
  0x3c   :  { %5627 = vmatpush.bf16.msrb.mxu1 %v8666_v53  ;;  %v189_v49 = vmax.f32 %v187_v38, 0.0  ;;  %v8670_v53 = vld [vmem:[#allocation9 + $0x190] sm:$0xff]  ;;  %v280_v38 = vmul.f32 %v278_v17, %v9360_v42  ;;  %s9510_s8 = sld [smem:[#allocation7 + $0x6]] }
  0x3d   :  { %5640 = vmatpush.bf16.msrb.mxu2 %v8674_v57  ;;  %v190_v50 = vmax.f32 %v188_v39, 0.0  ;;  %v236_v57 = vstv %s9433_s17  ;;  %v2303_v0 = vunpack.c.l.b16 %v226_v55  ;;  %v2304_v15 = vunpack.c.h.b16 %v226_v55  ;;  %s9515_s9 = sld [smem:[#allocation7 + $0x7]] }
  0x3e   :  { %5653 = vmatpush.bf16.msrb.mxu3 %v8682_v58  ;;  %v8653_v58 = vld [vmem:[#allocation9 + $0x108] sm:$0xff]  ;;  %v237_v3 = vmul.f32 %v236_v57, %v9339_v35  ;;  %v238_v4 = vmul.f32 %v236_v57, %v9344_v36  ;;  %v285_v39 = vstv %s9449_s23  ;;  %s9523_s2 = sld [smem:[#allocation4 + $0x20]] }
  0x3f   :  { %5615 = vmatpush.bf16.msrb.mxu0 %v8657_v5  ;;  %v191_v56 = vpack.c.bf16 %v190_v50, %v189_v49  ;;  %v2367_v20 = vpack.c.b16 %v2303_v0, %v2303_v0  ;;  %v8706_v49 = vld [vmem:[#allocation9 + $0x2b0] sm:$0xff]  ;;  %v8697_v57 = vld [vmem:[#allocation9 + $0x268] sm:$0xff]  ;;  %s9525_s10 = sld [smem:[#allocation4 + $0x21]] }
  0x40   :  { %5628 = vmatpush.bf16.msrb.mxu1 %v8665_v6  ;;  %v243_v6 = vstv %s9439_s20  ;;  %v239_v21 = vadd.f32 %v237_v3, %v232_v1  ;;  %v8714_v50 = vld [vmem:[#allocation9 + $0x2f0] sm:$0xff]  ;;  %v291_v1 = vstv %s9469_s25  ;;  %v8696_v3 = vld [vmem:[#allocation9 + $0x260] sm:$0xff]  ;;  %s9527_s3 = sld [smem:[#allocation4 + $0x24]] }
  0x41   :  { %5641 = vmatpush.bf16.msrb.mxu2 %v8673_v11  ;;  %v2301_v5 = vunpack.c.l.b16 %v191_v56  ;;  %v268_v11 = vmul.f32 %v266_v60, %v9332_v32  ;;  %v2302_v16 = vunpack.c.h.b16 %v191_v56  ;;  %v244_v22 = vmul.f32 %v243_v6, %v9349_v37  ;;  %s9529_s4 = sld [smem:[#allocation4 + $0x25]] }
  0x42   :  { %5654 = vmatpush.bf16.msrb.mxu3 %v8681_v12  ;;  %v273_v12 = vmul.f32 %v271_v61, %v9344_v36  ;;  %v287_v56 = vmul.f32 %v285_v39, %v9370_v44  ;;  %s9531_s11 = sld [smem:[#allocation4 + $0x22]] }
  0x43   :  { %5616 = vmatpush.bf16.msrb.mxu0 %v8656_v23  ;;  %v245_v23 = vmul.f32 %v243_v6, %v9360_v42  ;;  %v2365_v26 = vpack.c.b16 %v2301_v5, %v2301_v5  ;;  %v8712_v5 = vld [vmem:[#allocation9 + $0x2e0] sm:$0xff]  ;;  %s9533_s12 = sld [smem:[#allocation4 + $0x26]] }
  0x44   :  { %5629 = vmatpush.bf16.msrb.mxu1 %v8664_v24  ;;  %v8707_v24 = vld [vmem:[#allocation9 + $0x2b8] sm:$0xff]  ;;  %v275_v33 = vadd.f32 %v273_v12, %v268_v11  ;;  %s9537_s14 = sld [smem:[#allocation4 + $0x23]] }
  0x45   :  { %5642 = vmatpush.bf16.msrb.mxu2 %v8672_v28  ;;  %v240_v28 = vadd.f32 %v238_v4, %v233_v2  ;;  %v8688_v2 = vld [vmem:[#allocation9 + $0x220] sm:$0xff]  ;;  %v8695_v11 = vld [vmem:[#allocation9 + $0x258] sm:$0xff]  ;;  %s9541_s13 = sld [smem:[#allocation4 + $0x27]] }
  0x46   :  { %5655 = vmatpush.bf16.msrb.mxu3 %v8680_v29  ;;  %v250_v29 = vstv %s9445_s22  ;;  %v282_v55 = vadd.f32 %v280_v38, %v275_v33  ;;  %v8704_v4 = vld [vmem:[#allocation9 + $0x2a0] sm:$0xff]  ;;  %v8703_v12 = vld [vmem:[#allocation9 + $0x298] sm:$0xff]  ;;  %v8701_v33 = vld [vmem:[#allocation9 + $0x288] sm:$0xff]  ;;  %s9556_s15 = sld [smem:[#allocation7 + $0x8]] }
  0x47   :  { %5617 = vmatpush.bf16.msrb.mxu0 %v8655_v40  ;;  %v2368_v40 = vpack.c.b16 %v2304_v15, %v2304_v15  ;;  %v251_v47 = vmul.f32 %v250_v29, %v9365_v43  ;;  %v252_v48 = vmul.f32 %v250_v29, %v9370_v44  ;;  %v336_v29 = vstv %s9481_s28  ;;  %s9561_s16 = sld [smem:[#allocation7 + $0x9]] }
  0x48   :  { %5630 = vmatpush.bf16.msrb.mxu1 %v8663_v45  ;;  %v2366_v45 = vpack.c.b16 %v2302_v16, %v2302_v16  ;;  %v289_v0 = vadd.f32 %v287_v56, %v282_v55  ;;  %v8708_v55 = vld [vmem:[#allocation9 + $0x2c0] sm:$0xff]  ;;  %s9579_s21 = sld [smem:[#allocation4 + $0x28]] }
  0x49   :  { %5643 = vmatpush.bf16.msrb.mxu2 %v8671_v27  ;;  %v8690_v27 = vld [vmem:[#allocation9 + $0x230] sm:$0xff]  ;;  %s9581_s22 = sld [smem:[#allocation4 + $0x29]] }
  0x4a   :  { %5656 = vmatpush.bf16.msrb.mxu3 %v8679_v46  ;;  %v8698_v46 = vld [vmem:[#allocation9 + $0x270] sm:$0xff]  ;;  %s9583_s23 = sld [smem:[#allocation4 + $0x2c]] }
  0x4b   :  { %5618 = vmatpush.bf16.msrb.mxu0 %v8654_v51  ;;  %v246_v51 = vadd.f32 %v244_v22, %v239_v21  ;;  %v8710_v21 = vld [vmem:[#allocation9 + $0x2d0] sm:$0xff]  ;;  %s9587_s25 = sld [smem:[#allocation4 + $0x2a]] }
  0x4c   :  { %5631 = vmatpush.bf16.msrb.mxu1 %v8662_v52  ;;  %v247_v52 = vadd.f32 %v245_v23, %v240_v28  ;;  %v8693_v28 = vld [vmem:[#allocation9 + $0x248] sm:$0xff]  ;;  %s9601_s28 = sld [smem:[#allocation4 + $0x2f]] }
  0x4d   :  { %5644 = vmatpush.bf16.msrb.mxu2 %v8670_v53  ;;  %v286_v53 = vmul.f32 %v285_v39, %v9365_v43  ;;  %v253_v60 = vadd.f32 %v251_v47, %v246_v51  ;;  %v313_v47 = vstv %s9485_s30  ;;  %v8692_v51 = vld [vmem:[#allocation9 + $0x240] sm:$0xff]  ;;  %s9669_s17 = sld [smem:[#allocation4 + $0x35]] }
  0x4e   :  { %5657 = vmatpush.bf16.msrb.mxu3 %v8678_v54  ;;  %v281_v54 = vadd.f32 %v279_v34, %v274_v30  ;;  %v254_v61 = vadd.f32 %v252_v48, %v247_v52  ;;  %v341_v30 = vstv %s9483_s29  ;;  %v8709_v34 = vld [vmem:[#allocation9 + $0x2c8] sm:$0xff]  ;;  %v337_v48 = vmul.f32 %v336_v29, %v9327_v31  ;;  %s9671_s18 = sld [smem:[#allocation4 + $0x32]] }
  0x4f   :  { %5619 = vmatpush.bf16.msrb.mxu0 %v8653_v58  ;;  %v8705_v58 = vld [vmem:[#allocation9 + $0x2a8] sm:$0xff]  ;;  %v338_v52 = vmul.f32 %v336_v29, %v9332_v32  ;;  %s9673_s19 = sld [smem:[#allocation4 + $0x36]] }
  0x50   :  { %5632 = vmatpush.bf16.msrb.mxu1 %v8661_v59  ;;  %v8713_v59 = vld [vmem:[#allocation9 + $0x2e8] sm:$0xff]  ;;  %s9679_s20 = sld [smem:[#allocation4 + $0x33]] }
  0x51   :  { %5645 = vmatpush.bf16.msrb.mxu2 %v8669_v62  ;;  %v256_v62 = vstv %s9464_s24  ;;  %s9585_s24 = sld [smem:[#allocation4 + $0x2d]] }
  0x52   :  { %5658 = vmatpush.bf16.msrb.mxu3 %v8677_v63  ;;  %v288_v63 = vadd.f32 %v286_v53, %v281_v54  ;;  %v257_v6 = vadd.f32 %v256_v62, %v253_v60  ;;  %v258_v7 = vadd.f32 %v256_v62, %v254_v61  ;;  %v343_v53 = vmul.f32 %v341_v30, %v9344_v36  ;;  %v8700_v54 = vld [vmem:[#allocation9 + $0x280] sm:$0xff]  ;;  %s9724_s29 = sld [smem:[#allocation4 + $0x3e]] }
  0x53   :  { %5620 = vmatpush.bf16.msrb.mxu0 %v8652_v9  ;;  %v293_v9 = vadd.f32 %v291_v1, %v289_v0  ;;  %v8739_v0 = vld [vmem:[#allocation9 + $0x3b8] sm:$0xff]  ;;  %s9728_s30 = sld [smem:[#allocation4 + $0x3b]] }
  0x54   :  { %5633 = vmatpush.bf16.msrb.mxu1 %v8660_v10  ;;  %v292_v8 = vadd.f32 %v291_v1, %v288_v63  ;;  %v8687_v10 = vld [vmem:[#allocation9 + $0x218] sm:$0xff]  ;;  %v260_v15 = vmax.f32 %v258_v7, 0.0  ;;  %v314_v63 = vmul.f32 %v313_v47, %v9349_v37 }
  0x55   :  { %5646 = vmatpush.bf16.msrb.mxu2 %v8668_v13  ;;  %v8711_v13 = vld [vmem:[#allocation9 + $0x2d8] sm:$0xff]  ;;  %v295_v17 = vmax.f32 %v293_v9, 0.0  ;;  %v355_v9 = vstv %s9495_s7  ;;  %s9752_s7 = sld [smem:[#allocation7 + $0xf]] }
  0x56   :  { %5659 = vmatpush.bf16.msrb.mxu3 %v8676_v14  ;;  %5621 = vmatmul.bf16.vlgmr.msrb.gmra.mxu0 %v2365_v26  ;;  %v259_v14 = vmax.f32 %v257_v6, 0.0  ;;  %v294_v16 = vmax.f32 %v292_v8, 0.0  ;;  %v8685_v26 = vld [vmem:[#allocation9 + $0x208] sm:$0xff]  ;;  %v8747_v1 = vld [vmem:[#allocation9 + $0x3f8] sm:$0xff]  ;;  %v345_v6 = vadd.f32 %v343_v53, %v338_v52 }
  0x57   :  { %5665 = vmatpush.bf16.msra.mxu0 %v8691_v18  ;;  %5634 = vmatmul.bf16.vlgmr.msrb.gmra.mxu1 %v2366_v45  ;;  %v8686_v18 = vld [vmem:[#allocation9 + $0x210] sm:$0xff]  ;;  %v8735_v52 = vld [vmem:[#allocation9 + $0x398] sm:$0xff] }
  0x58   :  { %5678 = vmatpush.bf16.msra.mxu1 %v8699_v19  ;;  %5647 = vmatmul.bf16.vlgmr.msrb.gmra.mxu2 %v2367_v20  ;;  %v8694_v19 = vld [vmem:[#allocation9 + $0x250] sm:$0xff]  ;;  %v261_v22 = vpack.c.bf16 %v260_v15, %v259_v14  ;;  %v296_v23 = vpack.c.bf16 %v295_v17, %v294_v16  ;;  %v8743_v53 = vld [vmem:[#allocation9 + $0x3d8] sm:$0xff] }
  0x59   :  { %5691 = vmatpush.bf16.msra.mxu2 %v8707_v24  ;;  %5660 = vmatmul.bf16.vlgmr.msrb.gmra.mxu3 %v2368_v40  ;;  %v8702_v20 = vld [vmem:[#allocation9 + $0x290] sm:$0xff]  ;;  %v301_v24 = vstv %s9477_s26  ;;  %s9591_s26 = sld [smem:[#allocation4 + $0x2e]] }
  0x5a   :  { %5704 = vmatpush.bf16.msra.mxu3 %v8715_v25  ;;  %v306_v25 = vstv %s9479_s27  ;;  %v2305_v38 = vunpack.c.l.b16 %v261_v22  ;;  %v2307_v39 = vunpack.c.l.b16 %v296_v23  ;;  %v302_v40 = vmul.f32 %v301_v24, %v9327_v31  ;;  %v8738_v16 = vld [vmem:[#allocation9 + $0x3b0] sm:$0xff]  ;;  %s9597_s27 = sld [smem:[#allocation4 + $0x2b]] }
  0x5b   :  { %5666 = vmatpush.bf16.msra.mxu0 %v8690_v27  ;;  %v303_v45 = vmul.f32 %v301_v24, %v9332_v32  ;;  %v307_v27 = vmul.f32 %v306_v25, %v9339_v35  ;;  %v2306_v56 = vunpack.c.h.b16 %v261_v22  ;;  %v8746_v17 = vld [vmem:[#allocation9 + $0x3f0] sm:$0xff]  ;;  %v8721_v24 = vld [vmem:[#allocation9 + $0x328] sm:$0xff] }
  0x5c   :  { %5679 = vmatpush.bf16.msra.mxu1 %v8698_v46  ;;  %v308_v46 = vmul.f32 %v306_v25, %v9344_v36  ;;  %v2369_v60 = vpack.c.b16 %v2305_v38, %v2305_v38  ;;  %v2371_v61 = vpack.c.b16 %v2307_v39, %v2307_v39  ;;  %v8729_v25 = vld [vmem:[#allocation9 + $0x368] sm:$0xff]  ;;  %v361_v39 = vstv %s9515_s9  ;;  %s9763_s9 = sld [smem:[#allocation4 + $0x41]] }
  0x5d   :  { %5692 = vmatpush.bf16.msra.mxu2 %v8706_v49  ;;  %v342_v49 = vmul.f32 %v341_v30, %v9339_v35  ;;  %v309_v62 = vadd.f32 %v307_v27, %v302_v40  ;;  %v8728_v40 = vld [vmem:[#allocation9 + $0x360] sm:$0xff] }
  0x5e   :  { %5705 = vmatpush.bf16.msra.mxu3 %v8714_v50  ;;  %v8684_v50 = vld [vmem:[#allocation9 + $0x200] sm:$0xff] }
  0x5f   :  { %5667 = vmatpush.bf16.msra.mxu0 %v8689_v41  ;;  %v2308_v41 = vunpack.c.h.b16 %v296_v23  ;;  %v316_v14 = vadd.f32 %v314_v63, %v309_v62  ;;  %v357_v23 = vmul.f32 %v355_v9, %v9370_v44  ;;  %v8744_v27 = vld [vmem:[#allocation9 + $0x3e0] sm:$0xff]  ;;  %v371_v63 = vstv %s9523_s2  ;;  %s9765_s2 = sld [smem:[#allocation4 + $0x44]] }
  0x60   :  { %5680 = vmatpush.bf16.msra.mxu1 %v8697_v57  ;;  %v348_v57 = vstv %s9487_s1  ;;  %s9732_s1 = sld [smem:[#allocation4 + $0x3f]] }
  0x61   :  { %5693 = vmatpush.bf16.msra.mxu2 %v8705_v58  ;;  %v8723_v58 = vld [vmem:[#allocation9 + $0x338] sm:$0xff]  ;;  %v349_v7 = vmul.f32 %v348_v57, %v9349_v37  ;;  %v350_v8 = vmul.f32 %v348_v57, %v9360_v42  ;;  %v8718_v57 = vld [vmem:[#allocation9 + $0x310] sm:$0xff] }
  0x62   :  { %5706 = vmatpush.bf16.msra.mxu3 %v8713_v59  ;;  %v8731_v59 = vld [vmem:[#allocation9 + $0x378] sm:$0xff] }
  0x63   :  { %5668 = vmatpush.bf16.msra.mxu0 %v8688_v2  ;;  %v310_v2 = vadd.f32 %v308_v46, %v303_v45  ;;  %v352_v22 = vadd.f32 %v350_v8, %v345_v6  ;;  %v8736_v45 = vld [vmem:[#allocation9 + $0x3a0] sm:$0xff]  ;;  %v8741_v6 = vld [vmem:[#allocation9 + $0x3c8] sm:$0xff] }
  0x64   :  { %5681 = vmatpush.bf16.msra.mxu1 %v8696_v3  ;;  %v315_v3 = vmul.f32 %v313_v47, %v9360_v42 }
  0x65   :  { %5694 = vmatpush.bf16.msra.mxu2 %v8704_v4  ;;  %v320_v4 = vstv %s9491_s6  ;;  %v359_v38 = vadd.f32 %v357_v23, %v352_v22  ;;  %s9748_s6 = sld [smem:[#allocation7 + $0xe]] }
  0x66   :  { %5707 = vmatpush.bf16.msra.mxu3 %v8712_v5  ;;  %v344_v5 = vadd.f32 %v342_v49, %v337_v48  ;;  %v321_v15 = vmul.f32 %v320_v4, %v9365_v43 }
  0x67   :  { %5669 = vmatpush.bf16.msra.mxu0 %v8687_v10  ;;  %v2370_v10 = vpack.c.b16 %v2306_v56, %v2306_v56  ;;  %v363_v49 = vadd.f32 %v361_v39, %v359_v38 }
  0x68   :  { %5682 = vmatpush.bf16.msra.mxu1 %v8695_v11  ;;  %v2372_v11 = vpack.c.b16 %v2308_v41, %v2308_v41  ;;  %v323_v29 = vadd.f32 %v321_v15, %v316_v14 }
  0x69   :  { %5695 = vmatpush.bf16.msra.mxu2 %v8703_v12  ;;  %v8722_v12 = vld [vmem:[#allocation9 + $0x330] sm:$0xff]  ;;  %v365_v41 = vmax.f32 %v363_v49, 0.0 }
  0x6a   :  { %5708 = vmatpush.bf16.msra.mxu3 %v8711_v13  ;;  %v8730_v13 = vld [vmem:[#allocation9 + $0x370] sm:$0xff] }
  0x6b   :  { %5670 = vmatpush.bf16.msra.mxu0 %v8686_v18  ;;  %v317_v18 = vadd.f32 %v315_v3, %v310_v2  ;;  %v8725_v2 = vld [vmem:[#allocation9 + $0x348] sm:$0xff]  ;;  %v406_v3 = vstv %s9527_s3  ;;  %s9771_s3 = sld [smem:[#allocation4 + $0x42]] }
  0x6c   :  { %5683 = vmatpush.bf16.msra.mxu1 %v8694_v19  ;;  %v322_v19 = vmul.f32 %v320_v4, %v9370_v44  ;;  %v8720_v44 = vld [vmem:[#allocation9 + $0x320] sm:$0xff]  ;;  %v411_v4 = vstv %s9529_s4  ;;  %v407_v14 = vmul.f32 %v406_v3, %v9327_v31  ;;  %s9773_s4 = sld [smem:[#allocation4 + $0x46]] }
  0x6d   :  { %5696 = vmatpush.bf16.msra.mxu2 %v8702_v20  ;;  %v356_v20 = vmul.f32 %v355_v9, %v9365_v43  ;;  %v372_v9 = vmul.f32 %v371_v63, %v9327_v31  ;;  %v412_v15 = vmul.f32 %v411_v4, %v9339_v35  ;;  %v8763_v31 = vld [vmem:[#allocation9 + $0x478] sm:$0xff] }
  0x6e   :  { %5709 = vmatpush.bf16.msra.mxu3 %v8710_v21  ;;  %v351_v21 = vadd.f32 %v349_v7, %v344_v5  ;;  %v324_v30 = vadd.f32 %v322_v19, %v317_v18  ;;  %v8733_v5 = vld [vmem:[#allocation9 + $0x388] sm:$0xff]  ;;  %v408_v18 = vmul.f32 %v406_v3, %v9332_v32  ;;  %v413_v19 = vmul.f32 %v411_v4, %v9344_v36  ;;  %v8752_v3 = vld [vmem:[#allocation9 + $0x420] sm:$0xff] }
  0x6f   :  { %5671 = vmatpush.bf16.msra.mxu0 %v8685_v26  ;;  %v8737_v26 = vld [vmem:[#allocation9 + $0x3a8] sm:$0xff]  ;;  %v414_v38 = vadd.f32 %v412_v15, %v407_v14  ;;  %v8760_v4 = vld [vmem:[#allocation9 + $0x460] sm:$0xff]  ;;  %v8775_v14 = vld [vmem:[#allocation9 + $0x4d8] sm:$0xff] }
  0x70   :  { %5684 = vmatpush.bf16.msra.mxu1 %v8693_v28  ;;  %v8745_v28 = vld [vmem:[#allocation9 + $0x3e8] sm:$0xff] }
  0x71   :  { %5697 = vmatpush.bf16.msra.mxu2 %v8701_v33  ;;  %v326_v33 = vstv %s9510_s8  ;;  %s9761_s8 = sld [smem:[#allocation4 + $0x40]] }
  0x72   :  { %5710 = vmatpush.bf16.msra.mxu3 %v8709_v34  ;;  %v358_v34 = vadd.f32 %v356_v20, %v351_v21  ;;  %v327_v46 = vadd.f32 %v326_v33, %v323_v29  ;;  %v328_v47 = vadd.f32 %v326_v33, %v324_v30  ;;  %v8732_v20 = vld [vmem:[#allocation9 + $0x380] sm:$0xff]  ;;  %v8771_v30 = vld [vmem:[#allocation9 + $0x4b8] sm:$0xff] }
  0x73   :  { %5672 = vmatpush.bf16.msra.mxu0 %v8684_v50  ;;  %v8719_v50 = vld [vmem:[#allocation9 + $0x318] sm:$0xff]  ;;  %v8740_v21 = vld [vmem:[#allocation9 + $0x3c0] sm:$0xff] }
  0x74   :  { %5685 = vmatpush.bf16.msra.mxu1 %v8692_v51  ;;  %v362_v48 = vadd.f32 %v361_v39, %v358_v34  ;;  %v8727_v51 = vld [vmem:[#allocation9 + $0x358] sm:$0xff]  ;;  %v390_v34 = vstv %s9537_s14  ;;  %v415_v39 = vadd.f32 %v413_v19, %v408_v18  ;;  %v8750_v19 = vld [vmem:[#allocation9 + $0x410] sm:$0xff]  ;;  %s9655_s14 = sld [smem:[#allocation7 + $0xb]] }
  0x75   :  { %5698 = vmatpush.bf16.msra.mxu2 %v8700_v54  ;;  %v329_v54 = vmax.f32 %v327_v46, 0.0 }
  0x76   :  { %5711 = vmatpush.bf16.msra.mxu3 %v8708_v55  ;;  %5673 = vmatmul.bf16.vlgmr.msra.gmra.mxu0 %v2369_v60  ;;  %v330_v55 = vmax.f32 %v328_v47, 0.0  ;;  %v364_v56 = vmax.f32 %v362_v48, 0.0  ;;  %v8742_v60 = vld [vmem:[#allocation9 + $0x3d0] sm:$0xff] }
  0x77   :  { %5717 = vmatpush.bf16.msrb.mxu0 %v8723_v58  ;;  %5686 = vmatmul.bf16.vlgmr.msra.gmra.mxu1 %v2370_v10  ;;  %v8726_v58 = vld [vmem:[#allocation9 + $0x350] sm:$0xff]  ;;  %v373_v10 = vmul.f32 %v371_v63, %v9332_v32  ;;  %v8779_v32 = vld [vmem:[#allocation9 + $0x4f8] sm:$0xff]  ;;  %v396_v63 = vstv %s9556_s15  ;;  %s9665_s15 = sld [smem:[#allocation4 + $0x31]] }
  0x78   :  { %5730 = vmatpush.bf16.msrb.mxu1 %v8731_v59  ;;  %5699 = vmatmul.bf16.vlgmr.msra.gmra.mxu2 %v2371_v61  ;;  %v8734_v59 = vld [vmem:[#allocation9 + $0x390] sm:$0xff]  ;;  %v331_v61 = vpack.c.bf16 %v330_v55, %v329_v54  ;;  %v366_v62 = vpack.c.bf16 %v365_v41, %v364_v56 }
  0x79   :  { %5743 = vmatpush.bf16.msrb.mxu2 %v8739_v0  ;;  %5712 = vmatmul.bf16.vlgmr.msra.gmra.mxu3 %v2372_v11  ;;  %v376_v0 = vstv %s9525_s10  ;;  %v8754_v47 = vld [vmem:[#allocation9 + $0x430] sm:$0xff]  ;;  %s9767_s10 = sld [smem:[#allocation4 + $0x45]] }
  0x7a   :  { %5756 = vmatpush.bf16.msrb.mxu3 %v8747_v1  ;;  %v8717_v1 = vld [vmem:[#allocation9 + $0x308] sm:$0xff]  ;;  %v2309_v7 = vunpack.c.l.b16 %v331_v61  ;;  %v2311_v8 = vunpack.c.l.b16 %v366_v62  ;;  %v377_v11 = vmul.f32 %v376_v0, %v9339_v35  ;;  %v2310_v22 = vunpack.c.h.b16 %v331_v61  ;;  %v8762_v48 = vld [vmem:[#allocation9 + $0x470] sm:$0xff] }
  0x7b   :  { %5718 = vmatpush.bf16.msrb.mxu0 %v8722_v12  ;;  %v378_v12 = vmul.f32 %v376_v0, %v9344_v36  ;;  %v2312_v23 = vunpack.c.h.b16 %v366_v62  ;;  %v9573_v54 = vld [vmem:[%s10244_s0 + $0x30] sm:$0xff] }
  0x7c   :  { %5731 = vmatpush.bf16.msrb.mxu1 %v8730_v13  ;;  %v383_v13 = vstv %s9531_s11  ;;  %v2375_v35 = vpack.c.b16 %v2311_v8, %v2311_v8  ;;  %s9777_s11 = sld [smem:[#allocation4 + $0x43]] }
  0x7d   :  { %5744 = vmatpush.bf16.msrb.mxu2 %v8738_v16  ;;  %v8716_v16 = vld [vmem:[#allocation9 + $0x300] sm:$0xff]  ;;  %v384_v29 = vmul.f32 %v383_v13, %v9349_v37  ;;  %v380_v33 = vadd.f32 %v378_v12, %v373_v10  ;;  %v385_v36 = vmul.f32 %v383_v13, %v9360_v42  ;;  %v2376_v46 = vpack.c.b16 %v2312_v23, %v2312_v23  ;;  %v8759_v12 = vld [vmem:[#allocation9 + $0x458] sm:$0xff] }
  0x7e   :  { %5757 = vmatpush.bf16.msrb.mxu3 %v8746_v17  ;;  %v8724_v17 = vld [vmem:[#allocation9 + $0x340] sm:$0xff]  ;;  %v8767_v13 = vld [vmem:[#allocation9 + $0x498] sm:$0xff] }
  0x7f   :  { %5719 = vmatpush.bf16.msrb.mxu0 %v8721_v24  ;;  %v418_v24 = vstv %s9533_s12  ;;  %s9650_s12 = sld [smem:[#allocation7 + $0xa]] }
  0x80   :  { %5732 = vmatpush.bf16.msrb.mxu1 %v8729_v25  ;;  %v8755_v25 = vld [vmem:[#allocation9 + $0x438] sm:$0xff] }
  0x81   :  { %5745 = vmatpush.bf16.msrb.mxu2 %v8737_v26  ;;  %v2373_v26 = vpack.c.b16 %v2309_v7, %v2309_v7 }
  0x82   :  { %5758 = vmatpush.bf16.msrb.mxu3 %v8745_v28  ;;  %v379_v28 = vadd.f32 %v377_v11, %v372_v9  ;;  %v8751_v11 = vld [vmem:[#allocation9 + $0x418] sm:$0xff] }
  0x83   :  { %5720 = vmatpush.bf16.msrb.mxu0 %v8720_v44  ;;  %v419_v44 = vmul.f32 %v418_v24, %v9349_v37  ;;  %v8778_v37 = vld [vmem:[#allocation9 + $0x4f0] sm:$0xff] }
  0x84   :  { %5733 = vmatpush.bf16.msrb.mxu1 %v8728_v40  ;;  %v420_v40 = vmul.f32 %v418_v24, %v9360_v42  ;;  %v386_v49 = vadd.f32 %v384_v29, %v379_v28  ;;  %v9567_v42 = vld [vmem:[%s10244_s0 + $0x38] sm:$0xff]  ;;  %v476_v28 = vstv %s9583_s23  ;;  %v481_v29 = vstv %s9585_s24  ;;  %s9703_s23 = sld [smem:[#allocation7 + $0xd]] }
  0x85   :  { %5746 = vmatpush.bf16.msrb.mxu2 %v8736_v45  ;;  %v425_v45 = vstv %s9541_s13  ;;  %s9663_s13 = sld [smem:[#allocation4 + $0x30]] }
  0x86   :  { %5759 = vmatpush.bf16.msrb.mxu3 %v8744_v27  ;;  %v2374_v27 = vpack.c.b16 %v2310_v22, %v2310_v22  ;;  %v426_v55 = vmul.f32 %v9573_v54, %v425_v45  ;;  %v422_v56 = vadd.f32 %v420_v40, %v415_v39  ;;  %v427_v41 = vmul.f32 %v9567_v42, %v425_v45  ;;  %v8774_v22 = vld [vmem:[#allocation9 + $0x4d0] sm:$0xff]  ;;  %v9614_v39 = vld [vmem:[%s10244_s0 + $0x8] sm:$0xff]  ;;  %s9712_s24 = sld [smem:[#allocation4 + $0x38]] }
  0x87   :  { %5721 = vmatpush.bf16.msrb.mxu0 %v8719_v50  ;;  %v391_v50 = vmul.f32 %v390_v34, %v9365_v43  ;;  %v421_v43 = vadd.f32 %v419_v44, %v414_v38  ;;  %v9620_v40 = vld [vmem:[%s10244_s0 + $0x10] sm:$0xff] }
  0x88   :  { %5734 = vmatpush.bf16.msrb.mxu1 %v8727_v51  ;;  %v8770_v51 = vld [vmem:[#allocation9 + $0x4b0] sm:$0xff] }
  0x89   :  { %5747 = vmatpush.bf16.msrb.mxu2 %v8735_v52  ;;  %v387_v52 = vadd.f32 %v385_v36, %v380_v33  ;;  %v393_v61 = vadd.f32 %v391_v50, %v386_v49  ;;  %v428_v0 = vadd.f32 %v426_v55, %v421_v43  ;;  %v482_v49 = vmul.f32 %v9620_v40, %v481_v29  ;;  %v8748_v50 = vld [vmem:[#allocation9 + $0x400] sm:$0xff] }
  0x8a   :  { %5760 = vmatpush.bf16.msrb.mxu3 %v8743_v53  ;;  %v392_v53 = vmul.f32 %v9567_v42, %v390_v34  ;;  %v9608_v34 = vld [vmem:[%s10244_s0] sm:$0xff] }
  0x8b   :  { %5722 = vmatpush.bf16.msrb.mxu0 %v8718_v57  ;;  %v8753_v57 = vld [vmem:[#allocation9 + $0x428] sm:$0xff]  ;;  %v397_v7 = vadd.f32 %v396_v63, %v393_v61  ;;  %v8772_v55 = vld [vmem:[#allocation9 + $0x4c0] sm:$0xff] }
  0x8c   :  { %5735 = vmatpush.bf16.msrb.mxu1 %v8726_v58  ;;  %v8761_v58 = vld [vmem:[#allocation9 + $0x468] sm:$0xff]  ;;  %v394_v62 = vadd.f32 %v392_v53, %v387_v52  ;;  %v8764_v53 = vld [vmem:[#allocation9 + $0x480] sm:$0xff] }
  0x8d   :  { %5748 = vmatpush.bf16.msrb.mxu2 %v8734_v59  ;;  %v8769_v59 = vld [vmem:[#allocation9 + $0x4a8] sm:$0xff]  ;;  %v399_v15 = vmax.f32 %v397_v7, 0.0 }
  0x8e   :  { %5761 = vmatpush.bf16.msrb.mxu3 %v8742_v60  ;;  %v8777_v60 = vld [vmem:[#allocation9 + $0x4e8] sm:$0xff]  ;;  %v398_v8 = vadd.f32 %v396_v63, %v394_v62  ;;  %v9640_v62 = vld [vmem:[%s10244_s0 + $0x20] sm:$0xff] }
  0x8f   :  { %5723 = vmatpush.bf16.msrb.mxu0 %v8717_v1  ;;  %v429_v1 = vadd.f32 %v427_v41, %v422_v56  ;;  %v488_v41 = vstv %s9591_s26  ;;  %s9716_s26 = sld [smem:[#allocation4 + $0x3c]] }
  0x90   :  { %5736 = vmatpush.bf16.msrb.mxu1 %v8725_v2  ;;  %v431_v2 = vstv %s9561_s16  ;;  %s9667_s16 = sld [smem:[#allocation4 + $0x34]] }
  0x91   :  { %5749 = vmatpush.bf16.msrb.mxu2 %v8733_v5  ;;  %v8768_v5 = vld [vmem:[#allocation9 + $0x4a0] sm:$0xff]  ;;  %v432_v9 = vadd.f32 %v431_v2, %v428_v0  ;;  %v433_v10 = vadd.f32 %v431_v2, %v429_v1  ;;  %v8803_v0 = vld [vmem:[#allocation9 + $0x5b8] sm:$0xff] }
  0x92   :  { %5762 = vmatpush.bf16.msrb.mxu3 %v8741_v6  ;;  %v8776_v6 = vld [vmem:[#allocation9 + $0x4e0] sm:$0xff]  ;;  %v8811_v1 = vld [vmem:[#allocation9 + $0x5f8] sm:$0xff] }
  0x93   :  { %5724 = vmatpush.bf16.msrb.mxu0 %v8716_v16  ;;  %v400_v16 = vmax.f32 %v398_v8, 0.0  ;;  %v435_v18 = vmax.f32 %v433_v10, 0.0  ;;  %v489_v8 = vmul.f32 %v9640_v62, %v488_v41  ;;  %v495_v10 = vstv %s9601_s28  ;;  %s9722_s28 = sld [smem:[#allocation4 + $0x3a]] }
  0x94   :  { %5737 = vmatpush.bf16.msrb.mxu1 %v8724_v17  ;;  %v434_v17 = vmax.f32 %v432_v9, 0.0 }
  0x95   :  { %5750 = vmatpush.bf16.msrb.mxu2 %v8732_v20  ;;  %v8758_v20 = vld [vmem:[#allocation9 + $0x450] sm:$0xff]  ;;  %v9589_v23 = vpack.c.bf16 %v400_v16, %v399_v15 }
  0x96   :  { %5763 = vmatpush.bf16.msrb.mxu3 %v8740_v21  ;;  %5725 = vmatmul.bf16.vlgmr.msrb.gmra.mxu0 %v2373_v26  ;;  %v8766_v21 = vld [vmem:[#allocation9 + $0x490] sm:$0xff]  ;;  %v9593_v24 = vpack.c.bf16 %v435_v18, %v434_v17  ;;  %v8749_v26 = vld [vmem:[#allocation9 + $0x408] sm:$0xff] }
  0x97   :  { %5769 = vmatpush.bf16.msra.mxu0 %v8755_v25  ;;  %5738 = vmatmul.bf16.vlgmr.msrb.gmra.mxu1 %v2374_v27  ;;  %v441_v25 = vstv %s9579_s21  ;;  %v2313_v33 = vunpack.c.l.b16 %v9589_v23  ;;  %v9626_v27 = vld [vmem:[%s10244_s0 + $0x18] sm:$0xff]  ;;  %v2314_v43 = vunpack.c.h.b16 %v9589_v23  ;;  %v8802_v17 = vld [vmem:[#allocation9 + $0x5b0] sm:$0xff]  ;;  %s9683_s21 = sld [smem:[#allocation4 + $0x37]] }
  0x98   :  { %5782 = vmatpush.bf16.msra.mxu1 %v8763_v31  ;;  %5751 = vmatmul.bf16.vlgmr.msrb.gmra.mxu2 %v2375_v35  ;;  %v446_v31 = vstv %s9581_s22  ;;  %v8757_v35 = vld [vmem:[#allocation9 + $0x448] sm:$0xff]  ;;  %v2315_v36 = vunpack.c.l.b16 %v9593_v24  ;;  %v442_v38 = vmul.f32 %v9608_v34, %v441_v25  ;;  %v443_v44 = vmul.f32 %v9614_v39, %v441_v25  ;;  %v8810_v18 = vld [vmem:[#allocation9 + $0x5f0] sm:$0xff]  ;;  %s9698_s22 = sld [smem:[#allocation7 + $0xc]] }
  0x99   :  { %5795 = vmatpush.bf16.msra.mxu2 %v8771_v30  ;;  %5764 = vmatmul.bf16.vlgmr.msrb.gmra.mxu3 %v2376_v46  ;;  %v8765_v30 = vld [vmem:[#allocation9 + $0x488] sm:$0xff]  ;;  %v447_v45 = vmul.f32 %v9620_v40, %v446_v31  ;;  %v448_v46 = vmul.f32 %v9626_v27, %v446_v31  ;;  %v483_v52 = vmul.f32 %v9626_v27, %v481_v29  ;;  %v2316_v56 = vunpack.c.h.b16 %v9593_v24 }
  0x9a   :  { %5808 = vmatpush.bf16.msra.mxu3 %v8779_v32  ;;  %v8773_v32 = vld [vmem:[#allocation9 + $0x4c8] sm:$0xff]  ;;  %v497_v24 = vmul.f32 %v9567_v42, %v495_v10 }
  0x9b   :  { %5770 = vmatpush.bf16.msra.mxu0 %v8754_v47  ;;  %v453_v47 = vstv %s9587_s25  ;;  %v449_v61 = vadd.f32 %v447_v45, %v442_v38  ;;  %v450_v2 = vadd.f32 %v448_v46, %v443_v44  ;;  %v8785_v25 = vld [vmem:[#allocation9 + $0x528] sm:$0xff]  ;;  %v8784_v38 = vld [vmem:[#allocation9 + $0x520] sm:$0xff]  ;;  %s9714_s25 = sld [smem:[#allocation4 + $0x39]] }
  0x9c   :  { %5783 = vmatpush.bf16.msra.mxu1 %v8762_v48  ;;  %v477_v48 = vmul.f32 %v9608_v34, %v476_v28  ;;  %v454_v63 = vmul.f32 %v9640_v62, %v453_v47  ;;  %v8793_v31 = vld [vmem:[#allocation9 + $0x568] sm:$0xff]  ;;  %v8792_v44 = vld [vmem:[#allocation9 + $0x560] sm:$0xff] }
  0x9d   :  { %5796 = vmatpush.bf16.msra.mxu2 %v8770_v51  ;;  %v8756_v51 = vld [vmem:[#allocation9 + $0x440] sm:$0xff] }
  0x9e   :  { %5809 = vmatpush.bf16.msra.mxu3 %v8778_v37  ;;  %v478_v37 = vmul.f32 %v9614_v39, %v476_v28  ;;  %v456_v15 = vadd.f32 %v454_v63, %v449_v61  ;;  %v8800_v45 = vld [vmem:[#allocation9 + $0x5a0] sm:$0xff]  ;;  %v8798_v63 = vld [vmem:[#allocation9 + $0x590] sm:$0xff] }
  0x9f   :  { %5771 = vmatpush.bf16.msra.mxu0 %v8753_v57  ;;  %v8787_v57 = vld [vmem:[#allocation9 + $0x538] sm:$0xff]  ;;  %v8808_v46 = vld [vmem:[#allocation9 + $0x5e0] sm:$0xff] }
  0xa0   :  { %5784 = vmatpush.bf16.msra.mxu1 %v8761_v58  ;;  %v8795_v58 = vld [vmem:[#allocation9 + $0x578] sm:$0xff]  ;;  %v485_v7 = vadd.f32 %v483_v52, %v478_v37 }
  0xa1   :  { %5797 = vmatpush.bf16.msra.mxu2 %v8769_v59  ;;  %v2377_v59 = vpack.c.b16 %v2313_v33, %v2313_v33  ;;  %v466_v33 = vstv %s9650_s12  ;;  %v8791_v37 = vld [vmem:[#allocation9 + $0x558] sm:$0xff]  ;;  %s9781_s12 = sld [smem:[#allocation4 + $0x47]] }
  0xa2   :  { %5810 = vmatpush.bf16.msra.mxu3 %v8777_v60  ;;  %v2379_v60 = vpack.c.b16 %v2315_v36, %v2315_v36  ;;  %v501_v36 = vstv %s9655_s14  ;;  %v8799_v52 = vld [vmem:[#allocation9 + $0x598] sm:$0xff]  ;;  %s9797_s14 = sld [smem:[#allocation7 + $0x10]] }
  0xa3   :  { %5772 = vmatpush.bf16.msra.mxu0 %v8752_v3  ;;  %v9646_v3 = vld [vmem:[%s10244_s0 + $0x28] sm:$0xff] }
  0xa4   :  { %5785 = vmatpush.bf16.msra.mxu1 %v8760_v4  ;;  %v455_v4 = vmul.f32 %v9646_v3, %v453_v47  ;;  %v490_v9 = vmul.f32 %v9646_v3, %v488_v41 }
  0xa5   :  { %5798 = vmatpush.bf16.msra.mxu2 %v8768_v5  ;;  %v460_v5 = vstv %s9597_s27  ;;  %s9718_s27 = sld [smem:[#allocation4 + $0x3d]] }
  0xa6   :  { %5811 = vmatpush.bf16.msra.mxu3 %v8776_v6  ;;  %v484_v6 = vadd.f32 %v482_v49, %v477_v48  ;;  %v461_v16 = vmul.f32 %v9573_v54, %v460_v5  ;;  %v492_v23 = vadd.f32 %v490_v9, %v485_v7  ;;  %v8781_v7 = vld [vmem:[#allocation9 + $0x508] sm:$0xff] }
  0xa7   :  { %5773 = vmatpush.bf16.msra.mxu0 %v8751_v11  ;;  %v2378_v11 = vpack.c.b16 %v2314_v43, %v2314_v43 }
  0xa8   :  { %5786 = vmatpush.bf16.msra.mxu1 %v8759_v12  ;;  %v2380_v12 = vpack.c.b16 %v2316_v56, %v2316_v56  ;;  %v463_v28 = vadd.f32 %v461_v16, %v456_v15  ;;  %v551_v15 = vstv %s9669_s17  ;;  %s9915_s17 = sld [smem:[#allocation4 + $0x56]] }
  0xa9   :  { %5799 = vmatpush.bf16.msra.mxu2 %v8767_v13  ;;  %v8786_v13 = vld [vmem:[#allocation9 + $0x530] sm:$0xff] }
  0xaa   :  { %5812 = vmatpush.bf16.msra.mxu3 %v8775_v14  ;;  %v8794_v14 = vld [vmem:[#allocation9 + $0x570] sm:$0xff]  ;;  %v467_v47 = vadd.f32 %v466_v33, %v463_v28 }
  0xab   :  { %5774 = vmatpush.bf16.msra.mxu0 %v8750_v19  ;;  %v457_v19 = vadd.f32 %v455_v4, %v450_v2 }
  0xac   :  { %5787 = vmatpush.bf16.msra.mxu1 %v8758_v20  ;;  %v462_v20 = vmul.f32 %v9567_v42, %v460_v5 }
  0xad   :  { %5800 = vmatpush.bf16.msra.mxu2 %v8766_v21  ;;  %v496_v21 = vmul.f32 %v9573_v54, %v495_v10  ;;  %v511_v10 = vstv %s9663_s13  ;;  %s9801_s13 = sld [smem:[#allocation7 + $0x11]] }
  0xae   :  { %5813 = vmatpush.bf16.msra.mxu3 %v8774_v22  ;;  %v491_v22 = vadd.f32 %v489_v8, %v484_v6  ;;  %v464_v29 = vadd.f32 %v462_v20, %v457_v19  ;;  %v8789_v8 = vld [vmem:[#allocation9 + $0x548] sm:$0xff] }
  0xaf   :  { %5775 = vmatpush.bf16.msra.mxu0 %v8749_v26  ;;  %v8801_v26 = vld [vmem:[#allocation9 + $0x5a8] sm:$0xff] }
  0xb0   :  { %5788 = vmatpush.bf16.msra.mxu1 %v8757_v35  ;;  %v8809_v35 = vld [vmem:[#allocation9 + $0x5e8] sm:$0xff]  ;;  %v468_v48 = vadd.f32 %v466_v33, %v464_v29  ;;  %v552_v29 = vmul.f32 %v9620_v40, %v551_v15 }
  0xb1   :  { %5801 = vmatpush.bf16.msra.mxu2 %v8765_v30  ;;  %v498_v30 = vadd.f32 %v496_v21, %v491_v22  ;;  %v512_v22 = vmul.f32 %v9608_v34, %v511_v10 }
  0xb2   :  { %5814 = vmatpush.bf16.msra.mxu3 %v8773_v32  ;;  %v499_v32 = vadd.f32 %v497_v24, %v492_v23  ;;  %v470_v43 = vmax.f32 %v468_v48, 0.0  ;;  %v513_v23 = vmul.f32 %v9614_v39, %v511_v10 }
  0xb3   :  { %5776 = vmatpush.bf16.msra.mxu0 %v8748_v50  ;;  %v502_v49 = vadd.f32 %v501_v36, %v498_v30  ;;  %v8796_v30 = vld [vmem:[#allocation9 + $0x580] sm:$0xff] }
  0xb4   :  { %5789 = vmatpush.bf16.msra.mxu1 %v8756_v51  ;;  %v503_v50 = vadd.f32 %v501_v36, %v499_v32  ;;  %v8783_v51 = vld [vmem:[#allocation9 + $0x518] sm:$0xff]  ;;  %v8804_v32 = vld [vmem:[#allocation9 + $0x5c0] sm:$0xff] }
  0xb5   :  { %5802 = vmatpush.bf16.msra.mxu2 %v8764_v53  ;;  %v8807_v53 = vld [vmem:[#allocation9 + $0x5d8] sm:$0xff]  ;;  %v504_v56 = vmax.f32 %v502_v49, 0.0  ;;  %v558_v49 = vstv %s9673_s19  ;;  %s9820_s19 = sld [smem:[#allocation4 + $0x48]] }
  0xb6   :  { %5815 = vmatpush.bf16.msra.mxu3 %v8772_v55  ;;  %5777 = vmatmul.bf16.vlgmr.msra.gmra.mxu0 %v2377_v59  ;;  %v469_v55 = vmax.f32 %v467_v47, 0.0  ;;  %v505_v41 = vmax.f32 %v503_v50, 0.0  ;;  %v8782_v59 = vld [vmem:[#allocation9 + $0x510] sm:$0xff]  ;;  %v8835_v50 = vld [vmem:[#allocation9 + $0x6b8] sm:$0xff] }
  0xb7   :  { %5821 = vmatpush.bf16.msrb.mxu0 %v8787_v57  ;;  %5790 = vmatmul.bf16.vlgmr.msra.gmra.mxu1 %v2378_v11  ;;  %v5570_v57 = vpop.f32.mrf.mxu0  ;;  %v516_v11 = vstv %s9665_s15  ;;  %s9909_s15 = sld [smem:[#allocation4 + $0x55]] }
  0xb8   :  { %5834 = vmatpush.bf16.msrb.mxu1 %v8795_v58  ;;  %5803 = vmatmul.bf16.vlgmr.msra.gmra.mxu2 %v2379_v60  ;;  %v5583_v58 = vpop.f32.mrf.mxu1  ;;  %v8790_v60 = vld [vmem:[#allocation9 + $0x550] sm:$0xff]  ;;  %v471_v4 = vpack.c.bf16 %v470_v43, %v469_v55  ;;  %v506_v5 = vpack.c.bf16 %v505_v41, %v504_v56  ;;  %v517_v24 = vmul.f32 %v9620_v40, %v516_v11  ;;  %v530_v41 = vstv %s9679_s20  ;;  %s9822_s20 = sld [smem:[#allocation4 + $0x49]] }
  0xb9   :  { %5847 = vmatpush.bf16.msrb.mxu2 %v8803_v0  ;;  %5816 = vmatmul.bf16.vlgmr.msra.gmra.mxu3 %v2380_v12  ;;  %v5584_v61 = vadd.f32 %v5583_v58, %v5570_v57  ;;  %v8806_v0 = vld [vmem:[#allocation9 + $0x5d0] sm:$0xff]  ;;  %v8797_v12 = vld [vmem:[#allocation9 + $0x588] sm:$0xff] }
  0xba   :  { %5860 = vmatpush.bf16.msrb.mxu3 %v8811_v1  ;;  %v2317_v16 = vunpack.c.l.b16 %v471_v4  ;;  %v2320_v19 = vunpack.c.h.b16 %v506_v5 }
  0xbb   :  { %5822 = vmatpush.bf16.msrb.mxu0 %v8786_v13  ;;  %v5596_v1 = vpop.f32.mrf.mxu2  ;;  %v8805_v13 = vld [vmem:[#allocation9 + $0x5c8] sm:$0xff] }
  0xbc   :  { %5835 = vmatpush.bf16.msrb.mxu1 %v8794_v14  ;;  %v5609_v2 = vpop.f32.mrf.mxu3  ;;  %v5597_v6 = vadd.f32 %v5596_v1, %v5584_v61  ;;  %v546_v14 = vstv %s9667_s16  ;;  %v2381_v47 = vpack.c.b16 %v2317_v16, %v2317_v16  ;;  %v565_v61 = vstv %s9683_s21  ;;  %v8834_v1 = vld [vmem:[#allocation9 + $0x6b0] sm:$0xff]  ;;  %v8841_v16 = vld [vmem:[#allocation9 + $0x6e8] sm:$0xff]  ;;  %s9824_s21 = sld [smem:[#allocation4 + $0x4c]] }
  0xbd   :  { %5848 = vmatpush.bf16.msrb.mxu2 %v8802_v17  ;;  %v2319_v17 = vunpack.c.l.b16 %v506_v5  ;;  %v547_v28 = vmul.f32 %v9608_v34, %v546_v14  ;;  %v531_v5 = vmul.f32 %v9573_v54, %v530_v41  ;;  %s9913_s16 = sld [smem:[#allocation4 + $0x52]] }
  0xbe   :  { %5861 = vmatpush.bf16.msrb.mxu3 %v8810_v18  ;;  %v9675_v9 = vadd.f32 %v5609_v2, %v5597_v6  ;;  %v2318_v18 = vunpack.c.h.b16 %v471_v4  ;;  %v8842_v2 = vld [vmem:[#allocation9 + $0x6f0] sm:$0xff] }
  0xbf   :  { %5823 = vmatpush.bf16.msrb.mxu0 %v8785_v25  ;;  %v5572_v20 = vpop.f32.mrf.mxu0  ;;  %v8780_v25 = vld [vmem:[#allocation9 + $0x500] sm:$0xff]  ;;  %v554_v57 = vadd.f32 %v552_v29, %v547_v28 }
  0xc0   :  { %5836 = vmatpush.bf16.msrb.mxu1 %v8793_v31  ;;  %v5585_v21 = vpop.f32.mrf.mxu1  ;;  %v8788_v31 = vld [vmem:[#allocation9 + $0x540] sm:$0xff]  ;;  %v2382_v48 = vpack.c.b16 %v2318_v18, %v2318_v18  ;;  %v536_v20 = vstv %s9698_s22  ;;  %s9826_s22 = sld [smem:[#allocation4 + $0x4d]] }
  0xc1   :  { %5849 = vmatpush.bf16.msrb.mxu2 %v8801_v26  ;;  %v518_v26 = vmul.f32 %v9626_v27, %v516_v11  ;;  %v8840_v28 = vld [vmem:[#allocation9 + $0x6e0] sm:$0xff] }
  0xc2   :  { %5862 = vmatpush.bf16.msrb.mxu3 %v8809_v35  ;;  %v523_v35 = vstv %s9671_s18  ;;  %s9919_s18 = sld [smem:[#allocation4 + $0x53]] }
  0xc3   :  { %5824 = vmatpush.bf16.msrb.mxu0 %v8784_v38  ;;  %v5598_v33 = vpop.f32.mrf.mxu2  ;;  %v548_v38 = vmul.f32 %v9614_v39, %v546_v14  ;;  %v524_v55 = vmul.f32 %v9640_v62, %v523_v35  ;;  %v520_v43 = vadd.f32 %v518_v26, %v513_v23  ;;  %v525_v56 = vmul.f32 %v9646_v3, %v523_v35  ;;  %v8825_v14 = vld [vmem:[#allocation9 + $0x668] sm:$0xff]  ;;  %v8816_v23 = vld [vmem:[#allocation9 + $0x620] sm:$0xff] }
  0xc4   :  { %5837 = vmatpush.bf16.msrb.mxu1 %v8792_v44  ;;  %v5611_v36 = vpop.f32.mrf.mxu3  ;;  %v553_v44 = vmul.f32 %v9626_v27, %v551_v15  ;;  %v8833_v15 = vld [vmem:[#allocation9 + $0x6a8] sm:$0xff]  ;;  %v571_v26 = vstv %s9703_s23  ;;  %v8832_v35 = vld [vmem:[#allocation9 + $0x6a0] sm:$0xff]  ;;  %s9830_s23 = sld [smem:[#allocation4 + $0x4a]] }
  0xc5   :  { %5850 = vmatpush.bf16.msrb.mxu2 %v8800_v45  ;;  %v8819_v45 = vld [vmem:[#allocation9 + $0x638] sm:$0xff]  ;;  %v527_v6 = vadd.f32 %v525_v56, %v520_v43 }
  0xc6   :  { %5863 = vmatpush.bf16.msrb.mxu3 %v8808_v46  ;;  %v8827_v46 = vld [vmem:[#allocation9 + $0x678] sm:$0xff]  ;;  %v555_v58 = vadd.f32 %v553_v44, %v548_v38 }
  0xc7   :  { %5825 = vmatpush.bf16.msrb.mxu0 %v8783_v51  ;;  %v8843_v51 = vld [vmem:[#allocation9 + $0x6f8] sm:$0xff] }
  0xc8   :  { %5838 = vmatpush.bf16.msrb.mxu1 %v8791_v37  ;;  %v2383_v37 = vpack.c.b16 %v2319_v17, %v2319_v17  ;;  %v8815_v38 = vld [vmem:[#allocation9 + $0x618] sm:$0xff] }
  0xc9   :  { %5851 = vmatpush.bf16.msrb.mxu2 %v8799_v52  ;;  %v2384_v52 = vpack.c.b16 %v2320_v19, %v2320_v19  ;;  %v8823_v44 = vld [vmem:[#allocation9 + $0x658] sm:$0xff] }
  0xca   :  { %5864 = vmatpush.bf16.msrb.mxu3 %v8807_v53  ;;  %v519_v53 = vadd.f32 %v517_v24, %v512_v22  ;;  %v8824_v24 = vld [vmem:[#allocation9 + $0x660] sm:$0xff] }
  0xcb   :  { %5826 = vmatpush.bf16.msrb.mxu0 %v8782_v59  ;;  %v559_v59 = vmul.f32 %v9640_v62, %v558_v49 }
  0xcc   :  { %5839 = vmatpush.bf16.msrb.mxu1 %v8790_v60  ;;  %v560_v60 = vmul.f32 %v9646_v3, %v558_v49  ;;  %v526_v4 = vadd.f32 %v524_v55, %v519_v53  ;;  %v8814_v53 = vld [vmem:[#allocation9 + $0x610] sm:$0xff] }
  0xcd   :  { %5852 = vmatpush.bf16.msrb.mxu2 %v8798_v63  ;;  %v8818_v63 = vld [vmem:[#allocation9 + $0x630] sm:$0xff]  ;;  %v561_v10 = vadd.f32 %v559_v59, %v554_v57 }
  0xce   :  { %5865 = vmatpush.bf16.msrb.mxu3 %v8806_v0  ;;  %v8826_v0 = vld [vmem:[#allocation9 + $0x670] sm:$0xff]  ;;  %v562_v11 = vadd.f32 %v560_v60, %v555_v58  ;;  %v533_v17 = vadd.f32 %v531_v5, %v526_v4  ;;  %v8813_v60 = vld [vmem:[#allocation9 + $0x608] sm:$0xff]  ;;  %v616_v5 = vstv %s9716_s26  ;;  %s9842_s26 = sld [smem:[#allocation4 + $0x4f]] }
  0xcf   :  { %5827 = vmatpush.bf16.msrb.mxu0 %v8781_v7  ;;  %v532_v7 = vmul.f32 %v9567_v42, %v530_v41  ;;  %v8822_v55 = vld [vmem:[#allocation9 + $0x650] sm:$0xff] }
  0xd0   :  { %5840 = vmatpush.bf16.msrb.mxu1 %v8789_v8  ;;  %v566_v8 = vmul.f32 %v9573_v54, %v565_v61  ;;  %v8830_v41 = vld [vmem:[#allocation9 + $0x690] sm:$0xff] }
  0xd1   :  { %5853 = vmatpush.bf16.msrb.mxu2 %v8797_v12  ;;  %v567_v12 = vmul.f32 %v9567_v42, %v565_v61  ;;  %v534_v18 = vadd.f32 %v532_v7, %v527_v6  ;;  %v8838_v57 = vld [vmem:[#allocation9 + $0x6d0] sm:$0xff]  ;;  %v8821_v61 = vld [vmem:[#allocation9 + $0x648] sm:$0xff]  ;;  %v621_v6 = vstv %s9718_s27  ;;  %s9964_s27 = sld [smem:[#allocation4 + $0x5e]] }
  0xd2   :  { %5866 = vmatpush.bf16.msrb.mxu3 %v8805_v13  ;;  %v8817_v13 = vld [vmem:[#allocation9 + $0x628] sm:$0xff]  ;;  %v568_v21 = vadd.f32 %v566_v8, %v561_v10 }
  0xd3   :  { %5828 = vmatpush.bf16.msrb.mxu0 %v8780_v25  ;;  %v5622_v19 = vpop.f32.mrf.mxu0  ;;  %v569_v22 = vadd.f32 %v567_v12, %v562_v11 }
  0xd4   :  { %5841 = vmatpush.bf16.msrb.mxu1 %v8788_v31  ;;  %v5623_v25 = vadd.f32 %v5622_v19, %v9675_v9  ;;  %v5635_v31 = vpop.f32.mrf.mxu1  ;;  %v572_v33 = vadd.f32 %v571_v26, %v568_v21  ;;  %v8831_v9 = vld [vmem:[#allocation9 + $0x698] sm:$0xff]  ;;  %v617_v19 = vmul.f32 %v9608_v34, %v616_v5  ;;  %v8828_v21 = vld [vmem:[#allocation9 + $0x680] sm:$0xff] }
  0xd5   :  { %5854 = vmatpush.bf16.msrb.mxu2 %v8796_v30  ;;  %v537_v30 = vadd.f32 %v536_v20, %v533_v17  ;;  %v573_v36 = vadd.f32 %v571_v26, %v569_v22  ;;  %v8836_v22 = vld [vmem:[#allocation9 + $0x6c0] sm:$0xff]  ;;  %v8851_v26 = vld [vmem:[#allocation9 + $0x738] sm:$0xff] }
  0xd6   :  { %5867 = vmatpush.bf16.msrb.mxu3 %v8804_v32  ;;  %5829 = vmatmul.bf16.vlgmr.msrb.gmra.mxu0 %v2381_v47  ;;  %v5636_v29 = vadd.f32 %v5635_v31, %v5623_v25  ;;  %v538_v32 = vadd.f32 %v536_v20, %v534_v18  ;;  %v593_v18 = vstv %s9722_s28  ;;  %v622_v20 = vmul.f32 %v9620_v40, %v621_v6  ;;  %s9968_s28 = sld [smem:[#allocation4 + $0x5b]] }
  0xd7   :  { %5873 = vmatpush.bf16.msra.mxu0 %v8819_v45  ;;  %5842 = vmatmul.bf16.vlgmr.msrb.gmra.mxu1 %v2382_v48  ;;  %v8839_v45 = vld [vmem:[#allocation9 + $0x6d8] sm:$0xff]  ;;  %v539_v49 = vmax.f32 %v537_v30, 0.0  ;;  %v623_v25 = vmul.f32 %v9626_v27, %v621_v6  ;;  %v628_v31 = vstv %s9724_s29  ;;  %s9972_s29 = sld [smem:[#allocation4 + $0x5f]] }
  0xd8   :  { %5886 = vmatpush.bf16.msra.mxu1 %v8827_v46  ;;  %5855 = vmatmul.bf16.vlgmr.msrb.gmra.mxu2 %v2383_v37  ;;  %v575_v37 = vmax.f32 %v573_v36, 0.0  ;;  %v8867_v30 = vld [vmem:[#allocation9 + $0x7b8] sm:$0xff] }
  0xd9   :  { %5899 = vmatpush.bf16.msra.mxu2 %v8835_v50  ;;  %5868 = vmatmul.bf16.vlgmr.msrb.gmra.mxu3 %v2384_v52  ;;  %v540_v50 = vmax.f32 %v538_v32, 0.0  ;;  %v8875_v32 = vld [vmem:[#allocation9 + $0x7f8] sm:$0xff] }
  0xda   :  { %5912 = vmatpush.bf16.msra.mxu3 %v8843_v51  ;;  %v574_v51 = vmax.f32 %v572_v33, 0.0 }
  0xdb   :  { %5874 = vmatpush.bf16.msra.mxu0 %v8818_v63  ;;  %v5648_v46 = vpop.f32.mrf.mxu2  ;;  %v5624_v52 = vpop.f32.mrf.mxu0  ;;  %v541_v58 = vpack.c.bf16 %v540_v50, %v539_v49  ;;  %v581_v63 = vstv %s9712_s24  ;;  %v630_v50 = vmul.f32 %v9646_v3, %v628_v31  ;;  %s9832_s24 = sld [smem:[#allocation4 + $0x4e]] }
  0xdc   :  { %5887 = vmatpush.bf16.msra.mxu1 %v8826_v0  ;;  %v5649_v47 = vadd.f32 %v5648_v46, %v5636_v29  ;;  %v5661_v48 = vpop.f32.mrf.mxu3  ;;  %v5637_v56 = vpop.f32.mrf.mxu1  ;;  %v576_v59 = vpack.c.bf16 %v575_v37, %v574_v51  ;;  %v586_v0 = vstv %s9714_s25  ;;  %v582_v12 = vmul.f32 %v9608_v34, %v581_v63  ;;  %v8850_v51 = vld [vmem:[#allocation9 + $0x730] sm:$0xff]  ;;  %s9838_s25 = sld [smem:[#allocation4 + $0x4b]] }
  0xdd   :  { %5900 = vmatpush.bf16.msra.mxu2 %v8834_v1  ;;  %v8829_v1 = vld [vmem:[#allocation9 + $0x688] sm:$0xff]  ;;  %v2321_v7 = vunpack.c.l.b16 %v541_v58  ;;  %v2322_v8 = vunpack.c.h.b16 %v541_v58  ;;  %v588_v17 = vmul.f32 %v9626_v27, %v586_v0  ;;  %v624_v46 = vadd.f32 %v622_v20, %v617_v19  ;;  %v8858_v37 = vld [vmem:[#allocation9 + $0x770] sm:$0xff] }
  0xde   :  { %5913 = vmatpush.bf16.msra.mxu3 %v8842_v2  ;;  %v9720_v43 = vadd.f32 %v5661_v48, %v5649_v47  ;;  %v8837_v2 = vld [vmem:[#allocation9 + $0x6c8] sm:$0xff]  ;;  %v2323_v11 = vunpack.c.l.b16 %v576_v59  ;;  %v629_v47 = vmul.f32 %v9640_v62, %v628_v31  ;;  %v635_v52 = vstv %s9732_s1  ;;  %s9992_s1 = sld [smem:[#allocation7 + $0x17]] }
  0xdf   :  { %5875 = vmatpush.bf16.msra.mxu0 %v8817_v13  ;;  %v583_v13 = vmul.f32 %v9614_v39, %v581_v63  ;;  %v2386_v29 = vpack.c.b16 %v2322_v8, %v2322_v8  ;;  %v637_v63 = vmul.f32 %v9567_v42, %v635_v52  ;;  %v606_v8 = vstv %s9748_s6  ;;  %s10001_s6 = sld [smem:[#allocation4 + $0x60]] }
  0xe0   :  { %5888 = vmatpush.bf16.msra.mxu1 %v8825_v14  ;;  %v587_v14 = vmul.f32 %v9620_v40, %v586_v0  ;;  %v2387_v33 = vpack.c.b16 %v2323_v11, %v2323_v11  ;;  %v8849_v0 = vld [vmem:[#allocation9 + $0x728] sm:$0xff] }
  0xe1   :  { %5901 = vmatpush.bf16.msra.mxu2 %v8833_v15  ;;  %v8812_v15 = vld [vmem:[#allocation9 + $0x600] sm:$0xff] }
  0xe2   :  { %5914 = vmatpush.bf16.msra.mxu3 %v8841_v16  ;;  %v8820_v16 = vld [vmem:[#allocation9 + $0x640] sm:$0xff]  ;;  %v589_v36 = vadd.f32 %v587_v14, %v582_v12  ;;  %v641_v14 = vstv %s9752_s7  ;;  %s10003_s7 = sld [smem:[#allocation4 + $0x61]] }
  0xe3   :  { %5876 = vmatpush.bf16.msra.mxu0 %v8816_v23  ;;  %v5650_v4 = vpop.f32.mrf.mxu2  ;;  %v2324_v23 = vunpack.c.h.b16 %v576_v59  ;;  %v631_v59 = vadd.f32 %v629_v47, %v624_v46  ;;  %v8856_v12 = vld [vmem:[#allocation9 + $0x760] sm:$0xff] }
  0xe4   :  { %5889 = vmatpush.bf16.msra.mxu1 %v8824_v24  ;;  %v5663_v10 = vpop.f32.mrf.mxu3  ;;  %v618_v24 = vmul.f32 %v9614_v39, %v616_v5  ;;  %v8873_v4 = vld [vmem:[#allocation9 + $0x7e8] sm:$0xff] }
  0xe5   :  { %5902 = vmatpush.bf16.msra.mxu2 %v8832_v35  ;;  %v8859_v35 = vld [vmem:[#allocation9 + $0x778] sm:$0xff]  ;;  %v2388_v48 = vpack.c.b16 %v2324_v23, %v2324_v23 }
  0xe6   :  { %5915 = vmatpush.bf16.msra.mxu3 %v8840_v28  ;;  %v2385_v28 = vpack.c.b16 %v2321_v7, %v2321_v7  ;;  %v625_v49 = vadd.f32 %v623_v25, %v618_v24  ;;  %v8863_v23 = vld [vmem:[#allocation9 + $0x798] sm:$0xff] }
  0xe7   :  { %5877 = vmatpush.bf16.msra.mxu0 %v8815_v38  ;;  %v594_v38 = vmul.f32 %v9640_v62, %v593_v18  ;;  %v8871_v24 = vld [vmem:[#allocation9 + $0x7d8] sm:$0xff] }
  0xe8   :  { %5890 = vmatpush.bf16.msra.mxu1 %v8823_v44  ;;  %v595_v44 = vmul.f32 %v9646_v3, %v593_v18 }
  0xe9   :  { %5903 = vmatpush.bf16.msra.mxu2 %v8831_v9  ;;  %v590_v9 = vadd.f32 %v588_v17, %v583_v13  ;;  %v596_v56 = vadd.f32 %v594_v38, %v589_v36  ;;  %v8846_v36 = vld [vmem:[#allocation9 + $0x710] sm:$0xff] }
  0xea   :  { %5916 = vmatpush.bf16.msra.mxu3 %v8839_v45  ;;  %v600_v45 = vstv %s9728_s30  ;;  %v8854_v38 = vld [vmem:[#allocation9 + $0x750] sm:$0xff]  ;;  %s9988_s30 = sld [smem:[#allocation7 + $0x16]] }
  0xeb   :  { %5878 = vmatpush.bf16.msra.mxu0 %v8814_v53  ;;  %v8866_v53 = vld [vmem:[#allocation9 + $0x7b0] sm:$0xff]  ;;  %v602_v58 = vmul.f32 %v9567_v42, %v600_v45  ;;  %v8848_v42 = vld [vmem:[#allocation9 + $0x720] sm:$0xff] }
  0xec   :  { %5891 = vmatpush.bf16.msra.mxu1 %v8822_v55  ;;  %v8874_v55 = vld [vmem:[#allocation9 + $0x7f0] sm:$0xff] }
  0xed   :  { %5904 = vmatpush.bf16.msra.mxu2 %v8830_v41  ;;  %v601_v41 = vmul.f32 %v9573_v54, %v600_v45  ;;  %v8870_v45 = vld [vmem:[#allocation9 + $0x7d0] sm:$0xff] }
  0xee   :  { %5917 = vmatpush.bf16.msra.mxu3 %v8838_v57  ;;  %v597_v57 = vadd.f32 %v595_v44, %v590_v9  ;;  %v8862_v9 = vld [vmem:[#allocation9 + $0x790] sm:$0xff] }
  0xef   :  { %5879 = vmatpush.bf16.msra.mxu0 %v8813_v60  ;;  %v632_v60 = vadd.f32 %v630_v50, %v625_v49  ;;  %v603_v5 = vadd.f32 %v601_v41, %v596_v56  ;;  %v8853_v49 = vld [vmem:[#allocation9 + $0x748] sm:$0xff]  ;;  %v651_v50 = vstv %s9761_s8  ;;  %v691_v56 = vstv %s9767_s10  ;;  %s10005_s8 = sld [smem:[#allocation4 + $0x64]] }
  0xf0   :  { %5892 = vmatpush.bf16.msra.mxu1 %v8821_v61  ;;  %v636_v61 = vmul.f32 %v9573_v54, %v635_v52  ;;  %v604_v6 = vadd.f32 %v602_v58, %v597_v57  ;;  %v8869_v52 = vld [vmem:[#allocation9 + $0x7c8] sm:$0xff]  ;;  %s10013_s10 = sld [smem:[#allocation4 + $0x66]] }
  0xf1   :  { %5905 = vmatpush.bf16.msra.mxu2 %v8829_v1  ;;  %v8857_v1 = vld [vmem:[#allocation9 + $0x768] sm:$0xff]  ;;  %v639_v11 = vadd.f32 %v637_v63, %v632_v60  ;;  %v607_v18 = vadd.f32 %v606_v8, %v603_v5  ;;  %v652_v60 = vmul.f32 %v9608_v34, %v651_v50 }
  0xf2   :  { %5918 = vmatpush.bf16.msra.mxu3 %v8837_v2  ;;  %v8865_v2 = vld [vmem:[#allocation9 + $0x7a8] sm:$0xff]  ;;  %v638_v10 = vadd.f32 %v636_v61, %v631_v59  ;;  %v608_v19 = vadd.f32 %v606_v8, %v604_v6  ;;  %v653_v61 = vmul.f32 %v9614_v39, %v651_v50  ;;  %v692_v6 = vmul.f32 %v9620_v40, %v691_v56  ;;  %v8868_v8 = vld [vmem:[#allocation9 + $0x7c0] sm:$0xff] }
  0xf3   :  { %5880 = vmatpush.bf16.msra.mxu0 %v8812_v15  ;;  %v5674_v7 = vpop.f32.mrf.mxu0  ;;  %v8864_v15 = vld [vmem:[#allocation9 + $0x7a0] sm:$0xff] }
  0xf4   :  { %5893 = vmatpush.bf16.msra.mxu1 %v8820_v16  ;;  %v5675_v54 = vadd.f32 %v5674_v7, %v9720_v43  ;;  %v5687_v13 = vpop.f32.mrf.mxu1  ;;  %v8872_v16 = vld [vmem:[#allocation9 + $0x7e0] sm:$0xff]  ;;  %v642_v20 = vadd.f32 %v641_v14, %v638_v10  ;;  %v8847_v43 = vld [vmem:[#allocation9 + $0x718] sm:$0xff] }
  0xf5   :  { %5906 = vmatpush.bf16.msra.mxu2 %v8828_v21  ;;  %v643_v21 = vadd.f32 %v641_v14, %v639_v11  ;;  %v8860_v7 = vld [vmem:[#allocation9 + $0x780] sm:$0xff] }
  0xf6   :  { %5919 = vmatpush.bf16.msra.mxu3 %v8836_v22  ;;  %5881 = vmatmul.bf16.vlgmr.msra.gmra.mxu0 %v2385_v28  ;;  %v5688_v17 = vadd.f32 %v5687_v13, %v5675_v54  ;;  %v8855_v22 = vld [vmem:[#allocation9 + $0x758] sm:$0xff]  ;;  %v610_v28 = vmax.f32 %v608_v19, 0.0  ;;  %v693_v54 = vmul.f32 %v9626_v27, %v691_v56  ;;  %v8880_v56 = vld [vmem:[#allocation9 + $0x820] sm:$0xff] }
  0xf7   :  { %5925 = vmatpush.bf16.msrb.mxu0 %v8851_v26  ;;  %5894 = vmatmul.bf16.vlgmr.msra.gmra.mxu1 %v2386_v29  ;;  %v644_v29 = vmax.f32 %v642_v20, 0.0  ;;  %v8891_v13 = vld [vmem:[#allocation9 + $0x878] sm:$0xff]  ;;  %v670_v20 = vstv %s9777_s11  ;;  %s9894_s11 = sld [smem:[#allocation7 + $0x13]] }
  0xf8   :  { %5938 = vmatpush.bf16.msrb.mxu1 %v8859_v35  ;;  %5907 = vmatmul.bf16.vlgmr.msra.gmra.mxu2 %v2387_v33  ;;  %v609_v35 = vmax.f32 %v607_v18, 0.0 }
  0xf9   :  { %5951 = vmatpush.bf16.msrb.mxu2 %v8867_v30  ;;  %5920 = vmatmul.bf16.vlgmr.msra.gmra.mxu3 %v2388_v48  ;;  %v645_v30 = vmax.f32 %v643_v21, 0.0  ;;  %v8845_v48 = vld [vmem:[#allocation9 + $0x708] sm:$0xff] }
  0xfa   :  { %5964 = vmatpush.bf16.msrb.mxu3 %v8875_v32  ;;  %v611_v46 = vpack.c.bf16 %v610_v28, %v609_v35  ;;  %v8906_v35 = vld [vmem:[#allocation9 + $0x8f0] sm:$0xff] }
  0xfb   :  { %5926 = vmatpush.bf16.msrb.mxu0 %v8850_v51  ;;  %v5700_v25 = vpop.f32.mrf.mxu2  ;;  %v5676_v32 = vpop.f32.mrf.mxu0  ;;  %v646_v47 = vpack.c.bf16 %v645_v30, %v644_v29  ;;  %v656_v51 = vstv %s9763_s9  ;;  %v9806_v28 = vld [vmem:[%s10244_s0 + $0x30] sm:$0xff]  ;;  %v9812_v30 = vld [vmem:[%s10244_s0 + $0x38] sm:$0xff]  ;;  %s10007_s9 = sld [smem:[#allocation4 + $0x65]] }
  0xfc   :  { %5939 = vmatpush.bf16.msrb.mxu1 %v8858_v37  ;;  %v5701_v31 = vadd.f32 %v5700_v25, %v5688_v17  ;;  %v5713_v26 = vpop.f32.mrf.mxu3  ;;  %v5689_v44 = vpop.f32.mrf.mxu1  ;;  %v8861_v37 = vld [vmem:[#allocation9 + $0x788] sm:$0xff]  ;;  %v2325_v41 = vunpack.c.l.b16 %v611_v46  ;;  %v2326_v57 = vunpack.c.h.b16 %v611_v46  ;;  %v657_v63 = vmul.f32 %v9620_v40, %v656_v51  ;;  %v8907_v17 = vld [vmem:[#allocation9 + $0x8f8] sm:$0xff]  ;;  %v8890_v25 = vld [vmem:[#allocation9 + $0x870] sm:$0xff] }
  0xfd   :  { %5952 = vmatpush.bf16.msrb.mxu2 %v8866_v53  ;;  %v2327_v59 = vunpack.c.l.b16 %v646_v47  ;;  %v2328_v10 = vunpack.c.h.b16 %v646_v47  ;;  %v671_v29 = vmul.f32 %v9806_v28, %v670_v20  ;;  %v672_v32 = vmul.f32 %v9812_v30, %v670_v20  ;;  %v8889_v46 = vld [vmem:[#allocation9 + $0x868] sm:$0xff] }
  0xfe   :  { %5965 = vmatpush.bf16.msrb.mxu3 %v8874_v55  ;;  %v9769_v33 = vadd.f32 %v5713_v26, %v5701_v31  ;;  %v686_v55 = vstv %s9765_s2  ;;  %v2389_v14 = vpack.c.b16 %v2325_v41, %v2325_v41  ;;  %v659_v18 = vadd.f32 %v657_v63, %v652_v60  ;;  %v8898_v26 = vld [vmem:[#allocation9 + $0x8b0] sm:$0xff]  ;;  %v8897_v47 = vld [vmem:[#allocation9 + $0x8a8] sm:$0xff]  ;;  %v8888_v41 = vld [vmem:[#allocation9 + $0x860] sm:$0xff]  ;;  %s10011_s2 = sld [smem:[#allocation4 + $0x62]] }
  0xff   :  { %5927 = vmatpush.bf16.msrb.mxu0 %v8849_v0  ;;  %v8844_v0 = vld [vmem:[#allocation9 + $0x700] sm:$0xff]  ;;  %v687_v5 = vmul.f32 %v9608_v34, %v686_v55  ;;  %v688_v11 = vmul.f32 %v9614_v39, %v686_v55  ;;  %v2391_v34 = vpack.c.b16 %v2327_v59, %v2327_v59  ;;  %v705_v31 = vstv %s9781_s12  ;;  %v8885_v20 = vld [vmem:[#allocation9 + $0x848] sm:$0xff]  ;;  %s9903_s12 = sld [smem:[#allocation4 + $0x50]] }
 0x100   :  { %5940 = vmatpush.bf16.msrb.mxu1 %v8857_v1  ;;  %v8852_v1 = vld [vmem:[#allocation9 + $0x740] sm:$0xff]  ;;  %v706_v44 = vmul.f32 %v9806_v28, %v705_v31 }
 0x101   :  { %5953 = vmatpush.bf16.msrb.mxu2 %v8865_v2  ;;  %v658_v2 = vmul.f32 %v9626_v27, %v656_v51  ;;  %v694_v21 = vadd.f32 %v692_v6, %v687_v5  ;;  %v8896_v59 = vld [vmem:[#allocation9 + $0x8a0] sm:$0xff]  ;;  %v8895_v5 = vld [vmem:[#allocation9 + $0x898] sm:$0xff] }
 0x102   :  { %5966 = vmatpush.bf16.msrb.mxu3 %v8873_v4  ;;  %v663_v4 = vstv %s9771_s3  ;;  %v8904_v60 = vld [vmem:[#allocation9 + $0x8e0] sm:$0xff]  ;;  %v8903_v6 = vld [vmem:[#allocation9 + $0x8d8] sm:$0xff]  ;;  %s10017_s3 = sld [smem:[#allocation4 + $0x63]] }
 0x103   :  { %5928 = vmatpush.bf16.msrb.mxu0 %v8848_v42  ;;  %v5702_v53 = vpop.f32.mrf.mxu2  ;;  %v698_v42 = vstv %s9773_s4  ;;  %v664_v40 = vmul.f32 %v9640_v62, %v663_v4  ;;  %v665_v19 = vmul.f32 %v9646_v3, %v663_v4  ;;  %v660_v39 = vadd.f32 %v658_v2, %v653_v61  ;;  %v8887_v4 = vld [vmem:[#allocation9 + $0x858] sm:$0xff]  ;;  %s9890_s4 = sld [smem:[#allocation7 + $0x12]] }
 0x104   :  { %5941 = vmatpush.bf16.msrb.mxu1 %v8856_v12  ;;  %v5715_v58 = vpop.f32.mrf.mxu3  ;;  %v8883_v12 = vld [vmem:[#allocation9 + $0x838] sm:$0xff]  ;;  %v699_v27 = vmul.f32 %v9640_v62, %v698_v42 }
 0x105   :  { %5954 = vmatpush.bf16.msrb.mxu2 %v8864_v15  ;;  %v2390_v15 = vpack.c.b16 %v2326_v57, %v2326_v57  ;;  %v666_v62 = vadd.f32 %v664_v40, %v659_v18  ;;  %v711_v58 = vstv %s9801_s13  ;;  %v8902_v18 = vld [vmem:[#allocation9 + $0x8d0] sm:$0xff]  ;;  %s9907_s13 = sld [smem:[#allocation4 + $0x54]] }
 0x106   :  { %5967 = vmatpush.bf16.msrb.mxu3 %v8872_v16  ;;  %v8899_v16 = vld [vmem:[#allocation9 + $0x8b8] sm:$0xff] }
 0x107   :  { %5929 = vmatpush.bf16.msrb.mxu0 %v8847_v43  ;;  %v2392_v43 = vpack.c.b16 %v2328_v10, %v2328_v10 }
 0x108   :  { %5942 = vmatpush.bf16.msrb.mxu1 %v8855_v22  ;;  %v695_v22 = vadd.f32 %v693_v54, %v688_v11 }
 0x109   :  { %5955 = vmatpush.bf16.msrb.mxu2 %v8863_v23  ;;  %v700_v23 = vmul.f32 %v9646_v3, %v698_v42  ;;  %v667_v3 = vadd.f32 %v665_v19, %v660_v39  ;;  %v8877_v39 = vld [vmem:[#allocation9 + $0x808] sm:$0xff] }
 0x10a   :  { %5968 = vmatpush.bf16.msrb.mxu3 %v8871_v24  ;;  %v8882_v24 = vld [vmem:[#allocation9 + $0x830] sm:$0xff] }
 0x10b   :  { %5930 = vmatpush.bf16.msrb.mxu0 %v8846_v36  ;;  %v701_v36 = vadd.f32 %v699_v27, %v694_v21  ;;  %v674_v50 = vadd.f32 %v672_v32, %v667_v3  ;;  %v721_v21 = vstv %s9820_s19  ;;  %v726_v27 = vstv %s9822_s20  ;;  %v9854_v32 = vld [vmem:[%s10244_s0 + $0x8] sm:$0xff]  ;;  %s9923_s19 = sld [smem:[#allocation4 + $0x57]] }
 0x10c   :  { %5943 = vmatpush.bf16.msrb.mxu1 %v8854_v38  ;;  %v702_v38 = vadd.f32 %v700_v23, %v695_v22  ;;  %v8901_v22 = vld [vmem:[#allocation9 + $0x8c8] sm:$0xff]  ;;  %s9939_s20 = sld [smem:[#allocation7 + $0x14]] }
 0x10d   :  { %5956 = vmatpush.bf16.msrb.mxu2 %v8862_v9  ;;  %v707_v9 = vmul.f32 %v9812_v30, %v705_v31 }
 0x10e   :  { %5969 = vmatpush.bf16.msrb.mxu3 %v8870_v45  ;;  %v8881_v45 = vld [vmem:[#allocation9 + $0x828] sm:$0xff] }
 0x10f   :  { %5931 = vmatpush.bf16.msrb.mxu0 %v8845_v48  ;;  %v8905_v48 = vld [vmem:[#allocation9 + $0x8e8] sm:$0xff]  ;;  %v709_v53 = vadd.f32 %v707_v9, %v702_v38  ;;  %v9860_v38 = vld [vmem:[%s10244_s0 + $0x10] sm:$0xff]  ;;  %v8876_v9 = vld [vmem:[#allocation9 + $0x800] sm:$0xff] }
 0x110   :  { %5944 = vmatpush.bf16.msrb.mxu1 %v8853_v49  ;;  %v673_v49 = vadd.f32 %v671_v29, %v666_v62  ;;  %v9848_v29 = vld [vmem:[%s10244_s0] sm:$0xff] }
 0x111   :  { %5957 = vmatpush.bf16.msrb.mxu2 %v8861_v37  ;;  %v676_v37 = vstv %s9797_s14  ;;  %v713_v2 = vadd.f32 %v711_v58, %v709_v53  ;;  %v722_v3 = vmul.f32 %v9848_v29, %v721_v21  ;;  %s9905_s14 = sld [smem:[#allocation4 + $0x51]] }
 0x112   :  { %5970 = vmatpush.bf16.msrb.mxu3 %v8869_v52  ;;  %v708_v52 = vadd.f32 %v706_v44, %v701_v36  ;;  %v677_v63 = vadd.f32 %v676_v37, %v673_v49  ;;  %v723_v36 = vmul.f32 %v9854_v32, %v721_v21  ;;  %v727_v44 = vmul.f32 %v9860_v38, %v726_v27 }
 0x113   :  { %5932 = vmatpush.bf16.msrb.mxu0 %v8844_v0  ;;  %v5726_v51 = vpop.f32.mrf.mxu0  ;;  %v678_v0 = vadd.f32 %v676_v37, %v674_v50  ;;  %v8900_v37 = vld [vmem:[#allocation9 + $0x8c0] sm:$0xff] }
 0x114   :  { %5945 = vmatpush.bf16.msrb.mxu1 %v8852_v1  ;;  %v5727_v55 = vadd.f32 %v5726_v51, %v9769_v33  ;;  %v5739_v57 = vpop.f32.mrf.mxu1  ;;  %v712_v1 = vadd.f32 %v711_v58, %v708_v52  ;;  %v8879_v33 = vld [vmem:[#allocation9 + $0x818] sm:$0xff]  ;;  %v679_v11 = vmax.f32 %v677_v63, 0.0  ;;  %v8892_v51 = vld [vmem:[#allocation9 + $0x880] sm:$0xff] }
 0x115   :  { %5958 = vmatpush.bf16.msrb.mxu2 %v8860_v7  ;;  %v680_v54 = vmax.f32 %v678_v0, 0.0  ;;  %v729_v0 = vadd.f32 %v727_v44, %v722_v3  ;;  %v8920_v44 = vld [vmem:[#allocation9 + $0x960] sm:$0xff] }
 0x116   :  { %5971 = vmatpush.bf16.msrb.mxu3 %v8868_v8  ;;  %5933 = vmatmul.bf16.vlgmr.msrb.gmra.mxu0 %v2389_v14  ;;  %v5740_v61 = vadd.f32 %v5739_v57, %v5727_v55  ;;  %v714_v42 = vmax.f32 %v712_v1, 0.0  ;;  %v8923_v57 = vld [vmem:[#allocation9 + $0x978] sm:$0xff]  ;;  %v9879_v1 = vld [vmem:[%s10244_s0 + $0x20] sm:$0xff] }
 0x117   :  { %5977 = vmatpush.bf16.msra.mxu0 %v8883_v12  ;;  %5946 = vmatmul.bf16.vlgmr.msrb.gmra.mxu1 %v2390_v15  ;;  %v715_v12 = vmax.f32 %v713_v2, 0.0  ;;  %v8878_v15 = vld [vmem:[#allocation9 + $0x810] sm:$0xff]  ;;  %v681_v40 = vpack.c.bf16 %v680_v54, %v679_v11 }
 0x118   :  { %5990 = vmatpush.bf16.msra.mxu1 %v8891_v13  ;;  %5959 = vmatmul.bf16.vlgmr.msrb.gmra.mxu2 %v2391_v34  ;;  %v8894_v34 = vld [vmem:[#allocation9 + $0x890] sm:$0xff] }
 0x119   :  { %6003 = vmatpush.bf16.msra.mxu2 %v8899_v16  ;;  %5972 = vmatmul.bf16.vlgmr.msrb.gmra.mxu3 %v2392_v43  ;;  %v8886_v16 = vld [vmem:[#allocation9 + $0x850] sm:$0xff]  ;;  %v9834_v19 = vpack.c.bf16 %v715_v12, %v714_v42  ;;  %v8893_v43 = vld [vmem:[#allocation9 + $0x888] sm:$0xff]  ;;  %v2329_v31 = vunpack.c.l.b16 %v681_v40 }
 0x11a   :  { %6016 = vmatpush.bf16.msra.mxu3 %v8907_v17  ;;  %v8914_v42 = vld [vmem:[#allocation9 + $0x930] sm:$0xff] }
 0x11b   :  { %5978 = vmatpush.bf16.msra.mxu0 %v8882_v24  ;;  %v5752_v7 = vpop.f32.mrf.mxu2  ;;  %v5728_v13 = vpop.f32.mrf.mxu0  ;;  %v756_v24 = vstv %s9824_s21  ;;  %v2331_v62 = vunpack.c.l.b16 %v9834_v19  ;;  %v2332_v52 = vunpack.c.h.b16 %v9834_v19  ;;  %v2393_v58 = vpack.c.b16 %v2329_v31, %v2329_v31  ;;  %v8922_v12 = vld [vmem:[#allocation9 + $0x970] sm:$0xff]  ;;  %s9943_s21 = sld [smem:[#allocation7 + $0x15]] }
 0x11c   :  { %5991 = vmatpush.bf16.msra.mxu1 %v8890_v25  ;;  %v5753_v8 = vadd.f32 %v5752_v7, %v5740_v61  ;;  %v5765_v10 = vpop.f32.mrf.mxu3  ;;  %v5741_v17 = vpop.f32.mrf.mxu1  ;;  %v761_v25 = vstv %s9826_s22  ;;  %v757_v49 = vmul.f32 %v9848_v29, %v756_v24  ;;  %v758_v53 = vmul.f32 %v9854_v32, %v756_v24  ;;  %v8939_v61 = vld [vmem:[#allocation9 + $0x9f8] sm:$0xff]  ;;  %s9952_s22 = sld [smem:[#allocation4 + $0x58]] }
 0x11d   :  { %6004 = vmatpush.bf16.msra.mxu2 %v8898_v26  ;;  %v2330_v26 = vunpack.c.h.b16 %v681_v40  ;;  %v762_v50 = vmul.f32 %v9860_v38, %v761_v25  ;;  %v2395_v63 = vpack.c.b16 %v2331_v62, %v2331_v62  ;;  %v775_v13 = vstv %s9842_s26  ;;  %s9962_s26 = sld [smem:[#allocation4 + $0x5a]] }
 0x11e   :  { %6017 = vmatpush.bf16.msra.mxu3 %v8906_v35  ;;  %v9828_v14 = vadd.f32 %v5765_v10, %v5753_v8  ;;  %v2396_v10 = vpack.c.b16 %v2332_v52, %v2332_v52  ;;  %v777_v21 = vmul.f32 %v9812_v30, %v775_v13 }
 0x11f   :  { %5979 = vmatpush.bf16.msra.mxu0 %v8881_v45  ;;  %v8884_v45 = vld [vmem:[#allocation9 + $0x840] sm:$0xff]  ;;  %v764_v7 = vadd.f32 %v762_v50, %v757_v49 }
 0x120   :  { %5992 = vmatpush.bf16.msra.mxu1 %v8889_v46  ;;  %v9866_v46 = vld [vmem:[%s10244_s0 + $0x18] sm:$0xff] }
 0x121   :  { %6005 = vmatpush.bf16.msra.mxu2 %v8897_v47  ;;  %v728_v47 = vmul.f32 %v9866_v46, %v726_v27  ;;  %v763_v55 = vmul.f32 %v9866_v46, %v761_v25  ;;  %v8913_v27 = vld [vmem:[#allocation9 + $0x928] sm:$0xff] }
 0x122   :  { %6018 = vmatpush.bf16.msra.mxu3 %v8905_v48  ;;  %v733_v48 = vstv %s9830_s23  ;;  %s9954_s23 = sld [smem:[#allocation4 + $0x59]] }
 0x123   :  { %5980 = vmatpush.bf16.msra.mxu0 %v8880_v56  ;;  %v5754_v23 = vpop.f32.mrf.mxu2  ;;  %v768_v56 = vstv %s9832_s24  ;;  %v734_v2 = vmul.f32 %v9879_v1, %v733_v48  ;;  %v765_v11 = vadd.f32 %v763_v55, %v758_v53  ;;  %v8919_v53 = vld [vmem:[#allocation9 + $0x958] sm:$0xff]  ;;  %s9956_s24 = sld [smem:[#allocation4 + $0x5c]] }
 0x124   :  { %5993 = vmatpush.bf16.msra.mxu1 %v8888_v41  ;;  %v5767_v35 = vpop.f32.mrf.mxu3  ;;  %v8915_v41 = vld [vmem:[#allocation9 + $0x938] sm:$0xff]  ;;  %v769_v8 = vmul.f32 %v9879_v1, %v768_v56  ;;  %v8937_v23 = vld [vmem:[#allocation9 + $0x9e8] sm:$0xff] }
 0x125   :  { %6006 = vmatpush.bf16.msra.mxu2 %v8896_v59  ;;  %v2394_v59 = vpack.c.b16 %v2330_v26, %v2330_v26  ;;  %v736_v17 = vadd.f32 %v734_v2, %v729_v0  ;;  %v746_v26 = vstv %s9890_s4  ;;  %v8927_v55 = vld [vmem:[#allocation9 + $0x998] sm:$0xff]  ;;  %s10021_s4 = sld [smem:[#allocation4 + $0x67]] }
 0x126   :  { %6019 = vmatpush.bf16.msra.mxu3 %v8904_v60  ;;  %v8931_v60 = vld [vmem:[#allocation9 + $0x9b8] sm:$0xff]  ;;  %v771_v19 = vadd.f32 %v769_v8, %v764_v7  ;;  %v8926_v7 = vld [vmem:[#allocation9 + $0x990] sm:$0xff] }
 0x127   :  { %5981 = vmatpush.bf16.msra.mxu0 %v8879_v33  ;;  %v9885_v33 = vld [vmem:[%s10244_s0 + $0x28] sm:$0xff]  ;;  %v8934_v8 = vld [vmem:[#allocation9 + $0x9d0] sm:$0xff] }
 0x128   :  { %5994 = vmatpush.bf16.msra.mxu1 %v8887_v4  ;;  %v735_v4 = vmul.f32 %v9885_v33, %v733_v48  ;;  %v770_v54 = vmul.f32 %v9885_v33, %v768_v56  ;;  %v8936_v48 = vld [vmem:[#allocation9 + $0x9e0] sm:$0xff]  ;;  %v8935_v56 = vld [vmem:[#allocation9 + $0x9d8] sm:$0xff] }
 0x129   :  { %6007 = vmatpush.bf16.msra.mxu2 %v8895_v5  ;;  %v730_v5 = vadd.f32 %v728_v47, %v723_v36  ;;  %v8912_v36 = vld [vmem:[#allocation9 + $0x920] sm:$0xff] }
 0x12a   :  { %6020 = vmatpush.bf16.msra.mxu3 %v8903_v6  ;;  %v740_v6 = vstv %s9838_s25  ;;  %v8928_v47 = vld [vmem:[#allocation9 + $0x9a0] sm:$0xff]  ;;  %s9958_s25 = sld [smem:[#allocation4 + $0x5d]] }
 0x12b   :  { %5982 = vmatpush.bf16.msra.mxu0 %v8878_v15  ;;  %v8930_v15 = vld [vmem:[#allocation9 + $0x9b0] sm:$0xff]  ;;  %v742_v40 = vmul.f32 %v9812_v30, %v740_v6 }
 0x12c   :  { %5995 = vmatpush.bf16.msra.mxu1 %v8886_v16  ;;  %v8938_v16 = vld [vmem:[#allocation9 + $0x9f0] sm:$0xff] }
 0x12d   :  { %6008 = vmatpush.bf16.msra.mxu2 %v8894_v34  ;;  %v741_v34 = vmul.f32 %v9806_v28, %v740_v6 }
 0x12e   :  { %6021 = vmatpush.bf16.msra.mxu3 %v8902_v18  ;;  %v737_v18 = vadd.f32 %v735_v4, %v730_v5  ;;  %v8910_v4 = vld [vmem:[#allocation9 + $0x910] sm:$0xff] }
 0x12f   :  { %5983 = vmatpush.bf16.msra.mxu0 %v8877_v39  ;;  %v772_v39 = vadd.f32 %v770_v54, %v765_v11  ;;  %v743_v24 = vadd.f32 %v741_v34, %v736_v17  ;;  %v8918_v5 = vld [vmem:[#allocation9 + $0x950] sm:$0xff]  ;;  %v8909_v54 = vld [vmem:[#allocation9 + $0x908] sm:$0xff]  ;;  %v826_v34 = vstv %s9907_s13  ;;  %s10155_s13 = sld [smem:[#allocation4 + $0x76]] }
 0x130   :  { %5996 = vmatpush.bf16.msra.mxu1 %v8885_v20  ;;  %v776_v20 = vmul.f32 %v9806_v28, %v775_v13  ;;  %v744_v25 = vadd.f32 %v742_v40, %v737_v18  ;;  %v796_v13 = vstv %s9905_s14  ;;  %v831_v18 = vstv %s9909_s15  ;;  %s10153_s14 = sld [smem:[#allocation4 + $0x72]] }
 0x131   :  { %6009 = vmatpush.bf16.msra.mxu2 %v8893_v43  ;;  %v8921_v43 = vld [vmem:[#allocation9 + $0x968] sm:$0xff]  ;;  %v779_v62 = vadd.f32 %v777_v21, %v772_v39  ;;  %v747_v50 = vadd.f32 %v746_v26, %v743_v24  ;;  %v798_v24 = vmul.f32 %v9866_v46, %v796_v13  ;;  %s10159_s15 = sld [smem:[#allocation4 + $0x73]] }
 0x132   :  { %6022 = vmatpush.bf16.msra.mxu3 %v8901_v22  ;;  %v8929_v22 = vld [vmem:[#allocation9 + $0x9a8] sm:$0xff]  ;;  %v778_v35 = vadd.f32 %v776_v20, %v771_v19 }
 0x133   :  { %5984 = vmatpush.bf16.msra.mxu0 %v8876_v9  ;;  %v5778_v31 = vpop.f32.mrf.mxu0 }
 0x134   :  { %5997 = vmatpush.bf16.msra.mxu1 %v8884_v45  ;;  %v5779_v3 = vadd.f32 %v5778_v31, %v9828_v14  ;;  %v5791_v9 = vpop.f32.mrf.mxu1  ;;  %v781_v45 = vstv %s9894_s11  ;;  %v8911_v14 = vld [vmem:[#allocation9 + $0x918] sm:$0xff]  ;;  %v827_v31 = vmul.f32 %v9848_v29, %v826_v34  ;;  %s10037_s11 = sld [smem:[#allocation7 + $0x18]] }
 0x135   :  { %6010 = vmatpush.bf16.msra.mxu2 %v8892_v51  ;;  %v748_v51 = vadd.f32 %v746_v26, %v744_v25  ;;  %v783_v52 = vadd.f32 %v781_v45, %v779_v62  ;;  %v803_v25 = vstv %s9913_s16  ;;  %v832_v26 = vmul.f32 %v9860_v38, %v831_v18  ;;  %v8932_v62 = vld [vmem:[#allocation9 + $0x9c0] sm:$0xff]  ;;  %s10163_s16 = sld [smem:[#allocation4 + $0x77]] }
 0x136   :  { %6023 = vmatpush.bf16.msra.mxu3 %v8900_v37  ;;  %5985 = vmatmul.bf16.vlgmr.msra.gmra.mxu0 %v2393_v58  ;;  %v5792_v49 = vadd.f32 %v5791_v9, %v5779_v3  ;;  %v782_v37 = vadd.f32 %v781_v45, %v778_v35  ;;  %v8924_v35 = vld [vmem:[#allocation9 + $0x980] sm:$0xff]  ;;  %v838_v9 = vstv %s9915_s17  ;;  %v8947_v45 = vld [vmem:[#allocation9 + $0xa38] sm:$0xff]  ;;  %s10060_s17 = sld [smem:[#allocation4 + $0x68]] }
 0x137   :  { %6029 = vmatpush.bf16.msrb.mxu0 %v8915_v41  ;;  %5998 = vmatmul.bf16.vlgmr.msra.gmra.mxu1 %v2394_v59  ;;  %v749_v59 = vmax.f32 %v747_v50, 0.0  ;;  %v8963_v50 = vld [vmem:[#allocation9 + $0xab8] sm:$0xff] }
 0x138   :  { %6042 = vmatpush.bf16.msrb.mxu1 %v8923_v57  ;;  %6011 = vmatmul.bf16.vlgmr.msra.gmra.mxu2 %v2395_v63  ;;  %v785_v63 = vmax.f32 %v783_v52, 0.0 }
 0x139   :  { %6055 = vmatpush.bf16.msrb.mxu2 %v8931_v60  ;;  %6024 = vmatmul.bf16.vlgmr.msra.gmra.mxu3 %v2396_v10  ;;  %v750_v60 = vmax.f32 %v748_v51, 0.0  ;;  %v8971_v51 = vld [vmem:[#allocation9 + $0xaf8] sm:$0xff] }
 0x13a   :  { %6068 = vmatpush.bf16.msrb.mxu3 %v8939_v61  ;;  %v784_v61 = vmax.f32 %v782_v37, 0.0 }
 0x13b   :  { %6030 = vmatpush.bf16.msrb.mxu0 %v8914_v42  ;;  %v5804_v41 = vpop.f32.mrf.mxu2  ;;  %v5780_v0 = vpop.f32.mrf.mxu0  ;;  %v751_v10 = vpack.c.bf16 %v750_v60, %v749_v59  ;;  %v8917_v42 = vld [vmem:[#allocation9 + $0x948] sm:$0xff]  ;;  %v840_v60 = vmul.f32 %v9885_v33, %v838_v9 }
 0x13c   :  { %6043 = vmatpush.bf16.msrb.mxu1 %v8922_v12  ;;  %v5805_v57 = vadd.f32 %v5804_v41, %v5792_v49  ;;  %v5817_v58 = vpop.f32.mrf.mxu3  ;;  %v5793_v6 = vpop.f32.mrf.mxu1  ;;  %v786_v11 = vpack.c.bf16 %v785_v63, %v784_v61  ;;  %v791_v12 = vstv %s9903_s12  ;;  %v834_v41 = vadd.f32 %v832_v26, %v827_v31  ;;  %v8946_v61 = vld [vmem:[#allocation9 + $0xa30] sm:$0xff]  ;;  %s10041_s12 = sld [smem:[#allocation7 + $0x19]] }
 0x13d   :  { %6056 = vmatpush.bf16.msrb.mxu2 %v8930_v15  ;;  %v8925_v15 = vld [vmem:[#allocation9 + $0x988] sm:$0xff]  ;;  %v2333_v40 = vunpack.c.l.b16 %v751_v10  ;;  %v2334_v19 = vunpack.c.h.b16 %v751_v10  ;;  %v792_v21 = vmul.f32 %v9848_v29, %v791_v12  ;;  %v8954_v63 = vld [vmem:[#allocation9 + $0xa70] sm:$0xff]  ;;  %v845_v0 = vstv %s9923_s19  ;;  %s10064_s19 = sld [smem:[#allocation4 + $0x6c]] }
 0x13e   :  { %6069 = vmatpush.bf16.msrb.mxu3 %v8938_v16  ;;  %v9911_v2 = vadd.f32 %v5817_v58, %v5805_v57  ;;  %v8933_v16 = vld [vmem:[#allocation9 + $0x9c8] sm:$0xff]  ;;  %v2335_v20 = vunpack.c.l.b16 %v786_v11  ;;  %v2336_v3 = vunpack.c.h.b16 %v786_v11  ;;  %v839_v57 = vmul.f32 %v9879_v1, %v838_v9  ;;  %v8967_v9 = vld [vmem:[#allocation9 + $0xad8] sm:$0xff] }
 0x13f   :  { %6031 = vmatpush.bf16.msrb.mxu0 %v8913_v27  ;;  %v793_v27 = vmul.f32 %v9854_v32, %v791_v12  ;;  %v2398_v49 = vpack.c.b16 %v2334_v19, %v2334_v19  ;;  %v847_v12 = vmul.f32 %v9812_v30, %v845_v0  ;;  %v816_v19 = vstv %s9939_s20  ;;  %s10066_s20 = sld [smem:[#allocation4 + $0x6d]] }
 0x140   :  { %6044 = vmatpush.bf16.msrb.mxu1 %v8921_v43  ;;  %v797_v43 = vmul.f32 %v9860_v38, %v796_v13  ;;  %v2399_v37 = vpack.c.b16 %v2335_v20, %v2335_v20  ;;  %v2400_v58 = vpack.c.b16 %v2336_v3, %v2336_v3  ;;  %v841_v11 = vadd.f32 %v839_v57, %v834_v41  ;;  %v8945_v13 = vld [vmem:[#allocation9 + $0xa28] sm:$0xff]  ;;  %v8958_v41 = vld [vmem:[#allocation9 + $0xa90] sm:$0xff] }
 0x141   :  { %6057 = vmatpush.bf16.msrb.mxu2 %v8929_v22  ;;  %v8908_v22 = vld [vmem:[#allocation9 + $0x900] sm:$0xff]  ;;  %v8966_v57 = vld [vmem:[#allocation9 + $0xad0] sm:$0xff] }
 0x142   :  { %6070 = vmatpush.bf16.msrb.mxu3 %v8937_v23  ;;  %v8916_v23 = vld [vmem:[#allocation9 + $0x940] sm:$0xff]  ;;  %v799_v52 = vadd.f32 %v797_v43, %v792_v21 }
 0x143   :  { %6032 = vmatpush.bf16.msrb.mxu0 %v8912_v36  ;;  %v5806_v17 = vpop.f32.mrf.mxu2  ;;  %v828_v36 = vmul.f32 %v9854_v32, %v826_v34  ;;  %v8952_v43 = vld [vmem:[#allocation9 + $0xa60] sm:$0xff] }
 0x144   :  { %6045 = vmatpush.bf16.msrb.mxu1 %v8920_v44  ;;  %v5819_v39 = vpop.f32.mrf.mxu3  ;;  %v833_v44 = vmul.f32 %v9866_v46, %v831_v18  ;;  %v8969_v17 = vld [vmem:[#allocation9 + $0xae8] sm:$0xff] }
 0x145   :  { %6058 = vmatpush.bf16.msrb.mxu2 %v8928_v47  ;;  %v8955_v47 = vld [vmem:[#allocation9 + $0xa78] sm:$0xff] }
 0x146   :  { %6071 = vmatpush.bf16.msrb.mxu3 %v8936_v48  ;;  %v2397_v48 = vpack.c.b16 %v2333_v40, %v2333_v40  ;;  %v835_v59 = vadd.f32 %v833_v44, %v828_v36  ;;  %v8951_v36 = vld [vmem:[#allocation9 + $0xa58] sm:$0xff] }
 0x147   :  { %6033 = vmatpush.bf16.msrb.mxu0 %v8911_v14  ;;  %v804_v14 = vmul.f32 %v9879_v1, %v803_v25  ;;  %v8959_v44 = vld [vmem:[#allocation9 + $0xa98] sm:$0xff] }
 0x148   :  { %6046 = vmatpush.bf16.msrb.mxu1 %v8919_v53  ;;  %v805_v53 = vmul.f32 %v9885_v33, %v803_v25  ;;  %v8968_v25 = vld [vmem:[#allocation9 + $0xae0] sm:$0xff] }
 0x149   :  { %6059 = vmatpush.bf16.msrb.mxu2 %v8927_v55  ;;  %v800_v55 = vadd.f32 %v798_v24, %v793_v27  ;;  %v806_v6 = vadd.f32 %v804_v14, %v799_v52  ;;  %v8944_v27 = vld [vmem:[#allocation9 + $0xa20] sm:$0xff] }
 0x14a   :  { %6072 = vmatpush.bf16.msrb.mxu3 %v8935_v56  ;;  %v810_v56 = vstv %s9919_s18  ;;  %v8960_v24 = vld [vmem:[#allocation9 + $0xaa0] sm:$0xff]  ;;  %s10062_s18 = sld [smem:[#allocation4 + $0x69]] }
 0x14b   :  { %6034 = vmatpush.bf16.msrb.mxu0 %v8910_v4  ;;  %v8962_v4 = vld [vmem:[#allocation9 + $0xab0] sm:$0xff]  ;;  %v812_v10 = vmul.f32 %v9812_v30, %v810_v56 }
 0x14c   :  { %6047 = vmatpush.bf16.msrb.mxu1 %v8918_v5  ;;  %v8970_v5 = vld [vmem:[#allocation9 + $0xaf0] sm:$0xff] }
 0x14d   :  { %6060 = vmatpush.bf16.msrb.mxu2 %v8926_v7  ;;  %v811_v7 = vmul.f32 %v9806_v28, %v810_v56 }
 0x14e   :  { %6073 = vmatpush.bf16.msrb.mxu3 %v8934_v8  ;;  %v807_v8 = vadd.f32 %v805_v53, %v800_v55  ;;  %v8942_v53 = vld [vmem:[#allocation9 + $0xa10] sm:$0xff] }
 0x14f   :  { %6035 = vmatpush.bf16.msrb.mxu0 %v8909_v54  ;;  %v842_v54 = vadd.f32 %v840_v60, %v835_v59  ;;  %v813_v34 = vadd.f32 %v811_v7, %v806_v6  ;;  %v8950_v55 = vld [vmem:[#allocation9 + $0xa50] sm:$0xff]  ;;  %v8941_v60 = vld [vmem:[#allocation9 + $0xa08] sm:$0xff]  ;;  %v896_v7 = vstv %s9956_s24  ;;  %s10082_s24 = sld [smem:[#allocation4 + $0x6f]] }
 0x150   :  { %6048 = vmatpush.bf16.msrb.mxu1 %v8917_v42  ;;  %v846_v42 = vmul.f32 %v9806_v28, %v845_v0  ;;  %v814_v18 = vadd.f32 %v812_v10, %v807_v8  ;;  %v866_v0 = vstv %s9954_s23  ;;  %v901_v8 = vstv %s9958_s25  ;;  %s10078_s23 = sld [smem:[#allocation4 + $0x6b]] }
 0x151   :  { %6061 = vmatpush.bf16.msrb.mxu2 %v8925_v15  ;;  %v8953_v15 = vld [vmem:[#allocation9 + $0xa68] sm:$0xff]  ;;  %v849_v20 = vadd.f32 %v847_v12, %v842_v54  ;;  %v817_v26 = vadd.f32 %v816_v19, %v813_v34  ;;  %v868_v34 = vmul.f32 %v9866_v46, %v866_v0  ;;  %s10208_s25 = sld [smem:[#allocation4 + $0x7b]] }
 0x152   :  { %6074 = vmatpush.bf16.msrb.mxu3 %v8933_v16  ;;  %v8961_v16 = vld [vmem:[#allocation9 + $0xaa8] sm:$0xff]  ;;  %v848_v39 = vadd.f32 %v846_v42, %v841_v11 }
 0x153   :  { %6036 = vmatpush.bf16.msrb.mxu0 %v8908_v22  ;;  %v5830_v40 = vpop.f32.mrf.mxu0 }
 0x154   :  { %6049 = vmatpush.bf16.msrb.mxu1 %v8916_v23  ;;  %v5831_v21 = vadd.f32 %v5830_v40, %v9911_v2  ;;  %v5843_v22 = vpop.f32.mrf.mxu1  ;;  %v851_v23 = vstv %s9943_s21  ;;  %v8943_v2 = vld [vmem:[#allocation9 + $0xa18] sm:$0xff]  ;;  %v897_v40 = vmul.f32 %v9848_v29, %v896_v7  ;;  %s10070_s21 = sld [smem:[#allocation4 + $0x6a]] }
 0x155   :  { %6062 = vmatpush.bf16.msrb.mxu2 %v8924_v35  ;;  %v818_v35 = vadd.f32 %v816_v19, %v814_v18  ;;  %v853_v3 = vadd.f32 %v851_v23, %v849_v20  ;;  %v873_v18 = vstv %s9962_s26  ;;  %v902_v19 = vmul.f32 %v9860_v38, %v901_v8  ;;  %v8964_v20 = vld [vmem:[#allocation9 + $0xac0] sm:$0xff]  ;;  %s10212_s26 = sld [smem:[#allocation4 + $0x7f]] }
 0x156   :  { %6075 = vmatpush.bf16.msrb.mxu3 %v8932_v62  ;;  %6037 = vmatmul.bf16.vlgmr.msrb.gmra.mxu0 %v2397_v48  ;;  %v5844_v31 = vadd.f32 %v5843_v22, %v5831_v21  ;;  %v852_v62 = vadd.f32 %v851_v23, %v848_v39  ;;  %v8956_v39 = vld [vmem:[#allocation9 + $0xa80] sm:$0xff]  ;;  %v908_v22 = vstv %s9964_s27  ;;  %v8979_v23 = vld [vmem:[#allocation9 + $0xb38] sm:$0xff]  ;;  %s10227_s27 = sld [smem:[#allocation7 + $0x1e]] }
 0x157   :  { %6081 = vmatpush.bf16.msra.mxu0 %v8947_v45  ;;  %6050 = vmatmul.bf16.vlgmr.msrb.gmra.mxu1 %v2398_v49  ;;  %v819_v49 = vmax.f32 %v817_v26, 0.0  ;;  %v8995_v26 = vld [vmem:[#allocation9 + $0xbb8] sm:$0xff] }
 0x158   :  { %6094 = vmatpush.bf16.msra.mxu1 %v8955_v47  ;;  %6063 = vmatmul.bf16.vlgmr.msrb.gmra.mxu2 %v2399_v37  ;;  %v855_v37 = vmax.f32 %v853_v3, 0.0 }
 0x159   :  { %6107 = vmatpush.bf16.msra.mxu2 %v8963_v50  ;;  %6076 = vmatmul.bf16.vlgmr.msrb.gmra.mxu3 %v2400_v58  ;;  %v820_v50 = vmax.f32 %v818_v35, 0.0  ;;  %v9003_v35 = vld [vmem:[#allocation9 + $0xbf8] sm:$0xff] }
 0x15a   :  { %6120 = vmatpush.bf16.msra.mxu3 %v8971_v51  ;;  %v854_v51 = vmax.f32 %v852_v62, 0.0 }
 0x15b   :  { %6082 = vmatpush.bf16.msra.mxu0 %v8946_v61  ;;  %v5856_v45 = vpop.f32.mrf.mxu2  ;;  %v5832_v52 = vpop.f32.mrf.mxu0  ;;  %v821_v58 = vpack.c.bf16 %v820_v50, %v819_v49  ;;  %v8949_v61 = vld [vmem:[#allocation9 + $0xa48] sm:$0xff]  ;;  %v910_v50 = vmul.f32 %v9885_v33, %v908_v22 }
 0x15c   :  { %6095 = vmatpush.bf16.msra.mxu1 %v8954_v63  ;;  %v5857_v47 = vadd.f32 %v5856_v45, %v5844_v31  ;;  %v5869_v48 = vpop.f32.mrf.mxu3  ;;  %v5845_v56 = vpop.f32.mrf.mxu1  ;;  %v856_v59 = vpack.c.bf16 %v855_v37, %v854_v51  ;;  %v861_v63 = vstv %s9952_s22  ;;  %v904_v45 = vadd.f32 %v902_v19, %v897_v40  ;;  %v8978_v51 = vld [vmem:[#allocation9 + $0xb30] sm:$0xff]  ;;  %s10072_s22 = sld [smem:[#allocation4 + $0x6e]] }
 0x15d   :  { %6108 = vmatpush.bf16.msra.mxu2 %v8962_v4  ;;  %v8957_v4 = vld [vmem:[#allocation9 + $0xa88] sm:$0xff]  ;;  %v2337_v10 = vunpack.c.l.b16 %v821_v58  ;;  %v2338_v11 = vunpack.c.h.b16 %v821_v58  ;;  %v862_v12 = vmul.f32 %v9848_v29, %v861_v63  ;;  %v8986_v37 = vld [vmem:[#allocation9 + $0xb70] sm:$0xff]  ;;  %v915_v52 = vstv %s9972_s29 }
 0x15e   :  { %6121 = vmatpush.bf16.msra.mxu3 %v8970_v5  ;;  %v9960_v14 = vadd.f32 %v5869_v48, %v5857_v47  ;;  %v8965_v5 = vld [vmem:[#allocation9 + $0xac8] sm:$0xff]  ;;  %v2339_v42 = vunpack.c.l.b16 %v856_v59  ;;  %v2340_v21 = vunpack.c.h.b16 %v856_v59  ;;  %v909_v47 = vmul.f32 %v9879_v1, %v908_v22 }
 0x15f   :  { %6083 = vmatpush.bf16.msra.mxu0 %v8945_v13  ;;  %v863_v13 = vmul.f32 %v9854_v32, %v861_v63  ;;  %v2402_v31 = vpack.c.b16 %v2338_v11, %v2338_v11  ;;  %v917_v63 = vmul.f32 %v9812_v30, %v915_v52  ;;  %v886_v11 = vstv %s9988_s30 }
 0x160   :  { %6096 = vmatpush.bf16.msra.mxu1 %v8953_v15  ;;  %v867_v15 = vmul.f32 %v9860_v38, %v866_v0  ;;  %v2403_v62 = vpack.c.b16 %v2339_v42, %v2339_v42  ;;  %v2404_v48 = vpack.c.b16 %v2340_v21, %v2340_v21  ;;  %v911_v59 = vadd.f32 %v909_v47, %v904_v45  ;;  %v8977_v0 = vld [vmem:[#allocation9 + $0xb28] sm:$0xff]  ;;  %v8991_v21 = vld [vmem:[#allocation9 + $0xb98] sm:$0xff] }
 0x161   :  { %6109 = vmatpush.bf16.msra.mxu2 %v8961_v16  ;;  %v8940_v16 = vld [vmem:[#allocation9 + $0xa00] sm:$0xff] }
 0x162   :  { %6122 = vmatpush.bf16.msra.mxu3 %v8969_v17  ;;  %v8948_v17 = vld [vmem:[#allocation9 + $0xa40] sm:$0xff]  ;;  %v869_v3 = vadd.f32 %v867_v15, %v862_v12  ;;  %v921_v15 = vstv %s9992_s1 }
 0x163   :  { %6084 = vmatpush.bf16.msra.mxu0 %v8944_v27  ;;  %v5858_v6 = vpop.f32.mrf.mxu2  ;;  %v898_v27 = vmul.f32 %v9854_v32, %v896_v7  ;;  %v8984_v12 = vld [vmem:[#allocation9 + $0xb60] sm:$0xff] }
 0x164   :  { %6097 = vmatpush.bf16.msra.mxu1 %v8952_v43  ;;  %v5871_v54 = vpop.f32.mrf.mxu3  ;;  %v903_v43 = vmul.f32 %v9866_v46, %v901_v8  ;;  %v9001_v6 = vld [vmem:[#allocation9 + $0xbe8] sm:$0xff] }
 0x165   :  { %6110 = vmatpush.bf16.msra.mxu2 %v8960_v24  ;;  %v8987_v24 = vld [vmem:[#allocation9 + $0xb78] sm:$0xff] }
 0x166   :  { %6123 = vmatpush.bf16.msra.mxu3 %v8968_v25  ;;  %v2401_v25 = vpack.c.b16 %v2337_v10, %v2337_v10  ;;  %v905_v49 = vadd.f32 %v903_v43, %v898_v27  ;;  %v8999_v27 = vld [vmem:[#allocation9 + $0xbd8] sm:$0xff] }
 0x167   :  { %6085 = vmatpush.bf16.msra.mxu0 %v8943_v2  ;;  %v874_v2 = vmul.f32 %v9879_v1, %v873_v18 }
 0x168   :  { %6098 = vmatpush.bf16.msra.mxu1 %v8951_v36  ;;  %v875_v36 = vmul.f32 %v9885_v33, %v873_v18 }
 0x169   :  { %6111 = vmatpush.bf16.msra.mxu2 %v8959_v44  ;;  %v870_v44 = vadd.f32 %v868_v34, %v863_v13  ;;  %v876_v56 = vadd.f32 %v874_v2, %v869_v3  ;;  %v8974_v3 = vld [vmem:[#allocation9 + $0xb10] sm:$0xff] }
 0x16a   :  { %6124 = vmatpush.bf16.msra.mxu3 %v8967_v9  ;;  %v880_v9 = vstv %s9968_s28  ;;  %v8982_v2 = vld [vmem:[#allocation9 + $0xb50] sm:$0xff]  ;;  %s10232_s28 = sld [smem:[#allocation7 + $0x1f]] }
 0x16b   :  { %6086 = vmatpush.bf16.msra.mxu0 %v8942_v53  ;;  %v8994_v53 = vld [vmem:[#allocation9 + $0xbb0] sm:$0xff]  ;;  %v882_v58 = vmul.f32 %v9812_v30, %v880_v9  ;;  %v8976_v30 = vld [vmem:[#allocation9 + $0xb20] sm:$0xff] }
 0x16c   :  { %6099 = vmatpush.bf16.msra.mxu1 %v8950_v55  ;;  %v9002_v55 = vld [vmem:[#allocation9 + $0xbf0] sm:$0xff] }
 0x16d   :  { %6112 = vmatpush.bf16.msra.mxu2 %v8958_v41  ;;  %v881_v41 = vmul.f32 %v9806_v28, %v880_v9  ;;  %v8998_v9 = vld [vmem:[#allocation9 + $0xbd0] sm:$0xff] }
 0x16e   :  { %6125 = vmatpush.bf16.msra.mxu3 %v8966_v57  ;;  %v877_v57 = vadd.f32 %v875_v36, %v870_v44  ;;  %v8990_v44 = vld [vmem:[#allocation9 + $0xb90] sm:$0xff] }
 0x16f   :  { %6087 = vmatpush.bf16.msra.mxu0 %v8941_v60  ;;  %v912_v60 = vadd.f32 %v910_v50, %v905_v49  ;;  %v883_v7 = vadd.f32 %v881_v41, %v876_v56  ;;  %v8981_v49 = vld [vmem:[#allocation9 + $0xb48] sm:$0xff]  ;;  %v931_v50 = vstv %s10001_s6  ;;  %v971_v56 = vstv %s10007_s9 }
 0x170   :  { %6100 = vmatpush.bf16.msra.mxu1 %v8949_v61  ;;  %v916_v61 = vmul.f32 %v9806_v28, %v915_v52  ;;  %v884_v8 = vadd.f32 %v882_v58, %v877_v57  ;;  %v8997_v52 = vld [vmem:[#allocation9 + $0xbc8] sm:$0xff] }
 0x171   :  { %6113 = vmatpush.bf16.msra.mxu2 %v8957_v4  ;;  %v8985_v4 = vld [vmem:[#allocation9 + $0xb68] sm:$0xff]  ;;  %v919_v42 = vadd.f32 %v917_v63, %v912_v60  ;;  %v887_v18 = vadd.f32 %v886_v11, %v883_v7  ;;  %v932_v60 = vmul.f32 %v9848_v29, %v931_v50 }
 0x172   :  { %6126 = vmatpush.bf16.msra.mxu3 %v8965_v5  ;;  %v8993_v5 = vld [vmem:[#allocation9 + $0xba8] sm:$0xff]  ;;  %v918_v54 = vadd.f32 %v916_v61, %v911_v59  ;;  %v888_v40 = vadd.f32 %v886_v11, %v884_v8  ;;  %v933_v61 = vmul.f32 %v9854_v32, %v931_v50  ;;  %v972_v8 = vmul.f32 %v9860_v38, %v971_v56  ;;  %v8996_v11 = vld [vmem:[#allocation9 + $0xbc0] sm:$0xff] }
 0x173   :  { %6088 = vmatpush.bf16.msra.mxu0 %v8940_v16  ;;  %v5882_v10 = vpop.f32.mrf.mxu0  ;;  %v8992_v16 = vld [vmem:[#allocation9 + $0xba0] sm:$0xff] }
 0x174   :  { %6101 = vmatpush.bf16.msra.mxu1 %v8948_v17  ;;  %v5883_v28 = vadd.f32 %v5882_v10, %v9960_v14  ;;  %v5895_v13 = vpop.f32.mrf.mxu1  ;;  %v9000_v17 = vld [vmem:[#allocation9 + $0xbe0] sm:$0xff]  ;;  %v922_v19 = vadd.f32 %v921_v15, %v918_v54  ;;  %v8975_v14 = vld [vmem:[#allocation9 + $0xb18] sm:$0xff] }
 0x175   :  { %6114 = vmatpush.bf16.msra.mxu2 %v8956_v39  ;;  %v923_v39 = vadd.f32 %v921_v15, %v919_v42  ;;  %v8988_v10 = vld [vmem:[#allocation9 + $0xb80] sm:$0xff] }
 0x176   :  { %6127 = vmatpush.bf16.msra.mxu3 %v8964_v20  ;;  %6089 = vmatmul.bf16.vlgmr.msra.gmra.mxu0 %v2401_v25  ;;  %v5896_v34 = vadd.f32 %v5895_v13, %v5883_v28  ;;  %v8983_v20 = vld [vmem:[#allocation9 + $0xb58] sm:$0xff]  ;;  %v890_v25 = vmax.f32 %v888_v40, 0.0  ;;  %v973_v28 = vmul.f32 %v9866_v46, %v971_v56  ;;  %v9008_v56 = vld [vmem:[#allocation9 + $0xc20] sm:$0xff] }
 0x177   :  { %6133 = vmatpush.bf16.msrb.mxu0 %v8979_v23  ;;  %6102 = vmatmul.bf16.vlgmr.msra.gmra.mxu1 %v2402_v31  ;;  %v924_v31 = vmax.f32 %v922_v19, 0.0  ;;  %v9019_v13 = vld [vmem:[#allocation9 + $0xc78] sm:$0xff]  ;;  %v950_v19 = vstv %s10017_s3  ;;  %s10143_s3 = sld [smem:[#allocation4 + $0x70]] }
 0x178   :  { %6146 = vmatpush.bf16.msrb.mxu1 %v8987_v24  ;;  %6115 = vmatmul.bf16.vlgmr.msra.gmra.mxu2 %v2403_v62  ;;  %v889_v24 = vmax.f32 %v887_v18, 0.0 }
 0x179   :  { %6159 = vmatpush.bf16.msrb.mxu2 %v8995_v26  ;;  %6128 = vmatmul.bf16.vlgmr.msra.gmra.mxu3 %v2404_v48  ;;  %v925_v26 = vmax.f32 %v923_v39, 0.0  ;;  %v8973_v48 = vld [vmem:[#allocation9 + $0xb08] sm:$0xff] }
 0x17a   :  { %6172 = vmatpush.bf16.msrb.mxu3 %v9003_v35  ;;  %v891_v45 = vpack.c.bf16 %v890_v25, %v889_v24  ;;  %v9034_v24 = vld [vmem:[#allocation9 + $0xcf0] sm:$0xff] }
 0x17b   :  { %6134 = vmatpush.bf16.msrb.mxu0 %v8978_v51  ;;  %v5908_v43 = vpop.f32.mrf.mxu2  ;;  %v5884_v35 = vpop.f32.mrf.mxu0  ;;  %v926_v47 = vpack.c.bf16 %v925_v26, %v924_v31  ;;  %v936_v51 = vstv %s10003_s7  ;;  %v10046_v25 = vld [vmem:[%s10244_s0 + $0x30] sm:$0xff]  ;;  %v10052_v26 = vld [vmem:[%s10244_s0 + $0x38] sm:$0xff] }
 0x17c   :  { %6147 = vmatpush.bf16.msrb.mxu1 %v8986_v37  ;;  %v5909_v22 = vadd.f32 %v5908_v43, %v5896_v34  ;;  %v5921_v23 = vpop.f32.mrf.mxu3  ;;  %v5897_v36 = vpop.f32.mrf.mxu1  ;;  %v8989_v37 = vld [vmem:[#allocation9 + $0xb88] sm:$0xff]  ;;  %v2341_v41 = vunpack.c.l.b16 %v891_v45  ;;  %v2342_v57 = vunpack.c.h.b16 %v891_v45  ;;  %v937_v63 = vmul.f32 %v9860_v38, %v936_v51  ;;  %v9035_v34 = vld [vmem:[#allocation9 + $0xcf8] sm:$0xff]  ;;  %v9018_v43 = vld [vmem:[#allocation9 + $0xc70] sm:$0xff] }
 0x17d   :  { %6160 = vmatpush.bf16.msrb.mxu2 %v8994_v53  ;;  %v2343_v59 = vunpack.c.l.b16 %v926_v47  ;;  %v2344_v54 = vunpack.c.h.b16 %v926_v47  ;;  %v951_v31 = vmul.f32 %v10046_v25, %v950_v19  ;;  %v952_v35 = vmul.f32 %v10052_v26, %v950_v19  ;;  %v9017_v45 = vld [vmem:[#allocation9 + $0xc68] sm:$0xff] }
 0x17e   :  { %6173 = vmatpush.bf16.msrb.mxu3 %v9002_v55  ;;  %v10009_v62 = vadd.f32 %v5921_v23, %v5909_v22  ;;  %v966_v55 = vstv %s10005_s8  ;;  %v2405_v15 = vpack.c.b16 %v2341_v41, %v2341_v41  ;;  %v939_v18 = vadd.f32 %v937_v63, %v932_v60  ;;  %v9026_v23 = vld [vmem:[#allocation9 + $0xcb0] sm:$0xff]  ;;  %v9025_v47 = vld [vmem:[#allocation9 + $0xca8] sm:$0xff]  ;;  %v9016_v41 = vld [vmem:[#allocation9 + $0xc60] sm:$0xff] }
 0x17f   :  { %6135 = vmatpush.bf16.msrb.mxu0 %v8977_v0  ;;  %v8972_v0 = vld [vmem:[#allocation9 + $0xb00] sm:$0xff]  ;;  %v967_v7 = vmul.f32 %v9848_v29, %v966_v55  ;;  %v968_v42 = vmul.f32 %v9854_v32, %v966_v55  ;;  %v2407_v29 = vpack.c.b16 %v2343_v59, %v2343_v59  ;;  %v985_v22 = vstv %s10021_s4  ;;  %v9013_v19 = vld [vmem:[#allocation9 + $0xc48] sm:$0xff]  ;;  %s10145_s4 = sld [smem:[#allocation4 + $0x71]] }
 0x180   :  { %6148 = vmatpush.bf16.msrb.mxu1 %v8985_v4  ;;  %v8980_v4 = vld [vmem:[#allocation9 + $0xb40] sm:$0xff]  ;;  %v986_v36 = vmul.f32 %v10046_v25, %v985_v22 }
 0x181   :  { %6161 = vmatpush.bf16.msrb.mxu2 %v8993_v5  ;;  %v938_v5 = vmul.f32 %v9866_v46, %v936_v51  ;;  %v974_v39 = vadd.f32 %v972_v8, %v967_v7  ;;  %v9024_v59 = vld [vmem:[#allocation9 + $0xca0] sm:$0xff]  ;;  %v9023_v7 = vld [vmem:[#allocation9 + $0xc98] sm:$0xff] }
 0x182   :  { %6174 = vmatpush.bf16.msrb.mxu3 %v9001_v6  ;;  %v943_v6 = vstv %s10011_s2  ;;  %v9032_v60 = vld [vmem:[#allocation9 + $0xce0] sm:$0xff]  ;;  %v9031_v8 = vld [vmem:[#allocation9 + $0xcd8] sm:$0xff] }
 0x183   :  { %6136 = vmatpush.bf16.msrb.mxu0 %v8976_v30  ;;  %v5910_v53 = vpop.f32.mrf.mxu2  ;;  %v978_v30 = vstv %s10013_s10  ;;  %v944_v38 = vmul.f32 %v9879_v1, %v943_v6  ;;  %v945_v40 = vmul.f32 %v9885_v33, %v943_v6  ;;  %v940_v32 = vadd.f32 %v938_v5, %v933_v61  ;;  %v9015_v6 = vld [vmem:[#allocation9 + $0xc58] sm:$0xff]  ;;  %s10130_s10 = sld [smem:[#allocation7 + $0x1a]] }
 0x184   :  { %6149 = vmatpush.bf16.msrb.mxu1 %v8984_v12  ;;  %v5923_v58 = vpop.f32.mrf.mxu3  ;;  %v9011_v12 = vld [vmem:[#allocation9 + $0xc38] sm:$0xff]  ;;  %v979_v46 = vmul.f32 %v9879_v1, %v978_v30 }
 0x185   :  { %6162 = vmatpush.bf16.msrb.mxu2 %v8992_v16  ;;  %v2406_v16 = vpack.c.b16 %v2342_v57, %v2342_v57  ;;  %v946_v1 = vadd.f32 %v944_v38, %v939_v18  ;;  %v991_v58 = vstv %s10041_s12  ;;  %v9030_v18 = vld [vmem:[#allocation9 + $0xcd0] sm:$0xff]  ;;  %s10149_s12 = sld [smem:[#allocation4 + $0x75]] }
 0x186   :  { %6175 = vmatpush.bf16.msrb.mxu3 %v9000_v17  ;;  %v9027_v17 = vld [vmem:[#allocation9 + $0xcb8] sm:$0xff] }
 0x187   :  { %6137 = vmatpush.bf16.msrb.mxu0 %v8975_v14  ;;  %v2408_v14 = vpack.c.b16 %v2344_v54, %v2344_v54 }
 0x188   :  { %6150 = vmatpush.bf16.msrb.mxu1 %v8983_v20  ;;  %v975_v20 = vadd.f32 %v973_v28, %v968_v42 }
 0x189   :  { %6163 = vmatpush.bf16.msrb.mxu2 %v8991_v21  ;;  %v980_v21 = vmul.f32 %v9885_v33, %v978_v30  ;;  %v947_v33 = vadd.f32 %v945_v40, %v940_v32  ;;  %v9005_v32 = vld [vmem:[#allocation9 + $0xc08] sm:$0xff] }
 0x18a   :  { %6176 = vmatpush.bf16.msrb.mxu3 %v8999_v27  ;;  %v9010_v27 = vld [vmem:[#allocation9 + $0xc30] sm:$0xff] }
 0x18b   :  { %6138 = vmatpush.bf16.msrb.mxu0 %v8974_v3  ;;  %v981_v3 = vadd.f32 %v979_v46, %v974_v39  ;;  %v954_v50 = vadd.f32 %v952_v35, %v947_v33  ;;  %v1001_v39 = vstv %s10060_s17  ;;  %v1006_v46 = vstv %s10062_s18  ;;  %v10094_v35 = vld [vmem:[%s10244_s0 + $0x8] sm:$0xff]  ;;  %s10179_s17 = sld [smem:[#allocation7 + $0x1c]] }
 0x18c   :  { %6151 = vmatpush.bf16.msrb.mxu1 %v8982_v2  ;;  %v982_v2 = vadd.f32 %v980_v21, %v975_v20  ;;  %v9029_v20 = vld [vmem:[#allocation9 + $0xcc8] sm:$0xff]  ;;  %s10183_s18 = sld [smem:[#allocation7 + $0x1d]] }
 0x18d   :  { %6164 = vmatpush.bf16.msrb.mxu2 %v8990_v44  ;;  %v987_v44 = vmul.f32 %v10052_v26, %v985_v22 }
 0x18e   :  { %6177 = vmatpush.bf16.msrb.mxu3 %v8998_v9  ;;  %v9009_v9 = vld [vmem:[#allocation9 + $0xc28] sm:$0xff] }
 0x18f   :  { %6139 = vmatpush.bf16.msrb.mxu0 %v8973_v48  ;;  %v9033_v48 = vld [vmem:[#allocation9 + $0xce8] sm:$0xff]  ;;  %v989_v53 = vadd.f32 %v987_v44, %v982_v2  ;;  %v10100_v2 = vld [vmem:[%s10244_s0 + $0x10] sm:$0xff]  ;;  %v9004_v44 = vld [vmem:[#allocation9 + $0xc00] sm:$0xff] }
 0x190   :  { %6152 = vmatpush.bf16.msrb.mxu1 %v8981_v49  ;;  %v953_v49 = vadd.f32 %v951_v31, %v946_v1  ;;  %v10088_v31 = vld [vmem:[%s10244_s0] sm:$0xff] }
 0x191   :  { %6165 = vmatpush.bf16.msrb.mxu2 %v8989_v37  ;;  %v956_v37 = vstv %s10037_s11  ;;  %v993_v5 = vadd.f32 %v991_v58, %v989_v53  ;;  %v1002_v33 = vmul.f32 %v10088_v31, %v1001_v39  ;;  %s10147_s11 = sld [smem:[#allocation4 + $0x74]] }
 0x192   :  { %6178 = vmatpush.bf16.msrb.mxu3 %v8997_v52  ;;  %v988_v52 = vadd.f32 %v986_v36, %v981_v3  ;;  %v957_v63 = vadd.f32 %v956_v37, %v953_v49  ;;  %v1003_v3 = vmul.f32 %v10094_v35, %v1001_v39  ;;  %v1007_v36 = vmul.f32 %v10100_v2, %v1006_v46 }
 0x193   :  { %6140 = vmatpush.bf16.msrb.mxu0 %v8972_v0  ;;  %v5934_v51 = vpop.f32.mrf.mxu0  ;;  %v958_v0 = vadd.f32 %v956_v37, %v954_v50  ;;  %v9028_v37 = vld [vmem:[#allocation9 + $0xcc0] sm:$0xff] }
 0x194   :  { %6153 = vmatpush.bf16.msrb.mxu1 %v8980_v4  ;;  %v5935_v55 = vadd.f32 %v5934_v51, %v10009_v62  ;;  %v5947_v57 = vpop.f32.mrf.mxu1  ;;  %v992_v4 = vadd.f32 %v991_v58, %v988_v52  ;;  %v9007_v62 = vld [vmem:[#allocation9 + $0xc18] sm:$0xff]  ;;  %v959_v42 = vmax.f32 %v957_v63, 0.0  ;;  %v9020_v51 = vld [vmem:[#allocation9 + $0xc80] sm:$0xff] }
 0x195   :  { %6166 = vmatpush.bf16.msrb.mxu2 %v8988_v10  ;;  %v960_v28 = vmax.f32 %v958_v0, 0.0  ;;  %v1009_v0 = vadd.f32 %v1007_v36, %v1002_v33  ;;  %v9048_v36 = vld [vmem:[#allocation9 + $0xd60] sm:$0xff] }
 0x196   :  { %6179 = vmatpush.bf16.msrb.mxu3 %v8996_v11  ;;  %6141 = vmatmul.bf16.vlgmr.msrb.gmra.mxu0 %v2405_v15  ;;  %v5948_v61 = vadd.f32 %v5947_v57, %v5935_v55  ;;  %v994_v30 = vmax.f32 %v992_v4, 0.0  ;;  %v9051_v57 = vld [vmem:[#allocation9 + $0xd78] sm:$0xff]  ;;  %v10119_v4 = vld [vmem:[%s10244_s0 + $0x20] sm:$0xff] }
 0x197   :  { %6185 = vmatpush.bf16.msra.mxu0 %v9011_v12  ;;  %6154 = vmatmul.bf16.vlgmr.msrb.gmra.mxu1 %v2406_v16  ;;  %v995_v12 = vmax.f32 %v993_v5, 0.0  ;;  %v9006_v16 = vld [vmem:[#allocation9 + $0xc10] sm:$0xff]  ;;  %v961_v38 = vpack.c.bf16 %v960_v28, %v959_v42 }
 0x198   :  { %6198 = vmatpush.bf16.msra.mxu1 %v9019_v13  ;;  %6167 = vmatmul.bf16.vlgmr.msrb.gmra.mxu2 %v2407_v29  ;;  %v9022_v29 = vld [vmem:[#allocation9 + $0xc90] sm:$0xff] }
 0x199   :  { %6211 = vmatpush.bf16.msra.mxu2 %v9027_v17  ;;  %6180 = vmatmul.bf16.vlgmr.msrb.gmra.mxu3 %v2408_v14  ;;  %v9014_v17 = vld [vmem:[#allocation9 + $0xc50] sm:$0xff]  ;;  %v10074_v40 = vpack.c.bf16 %v995_v12, %v994_v30  ;;  %v9021_v14 = vld [vmem:[#allocation9 + $0xc88] sm:$0xff]  ;;  %v2345_v22 = vunpack.c.l.b16 %v961_v38 }
 0x19a   :  { %6224 = vmatpush.bf16.msra.mxu3 %v9035_v34  ;;  %v9042_v30 = vld [vmem:[#allocation9 + $0xd30] sm:$0xff] }
 0x19b   :  { %6186 = vmatpush.bf16.msra.mxu0 %v9010_v27  ;;  %v5960_v10 = vpop.f32.mrf.mxu2  ;;  %v5936_v13 = vpop.f32.mrf.mxu0  ;;  %v1036_v27 = vstv %s10064_s19  ;;  %v2347_v1 = vunpack.c.l.b16 %v10074_v40  ;;  %v2348_v52 = vunpack.c.h.b16 %v10074_v40  ;;  %v2409_v58 = vpack.c.b16 %v2345_v22, %v2345_v22  ;;  %v9050_v12 = vld [vmem:[#allocation9 + $0xd70] sm:$0xff]  ;;  %s10192_s19 = sld [smem:[#allocation4 + $0x78]] }
 0x19c   :  { %6199 = vmatpush.bf16.msra.mxu1 %v9018_v43  ;;  %v5961_v11 = vadd.f32 %v5960_v10, %v5948_v61  ;;  %v5973_v54 = vpop.f32.mrf.mxu3  ;;  %v5949_v34 = vpop.f32.mrf.mxu1  ;;  %v1041_v43 = vstv %s10066_s20  ;;  %v1037_v49 = vmul.f32 %v10088_v31, %v1036_v27  ;;  %v1038_v53 = vmul.f32 %v10094_v35, %v1036_v27  ;;  %v9067_v61 = vld [vmem:[#allocation9 + $0xdf8] sm:$0xff]  ;;  %s10194_s20 = sld [smem:[#allocation4 + $0x79]] }
 0x19d   :  { %6212 = vmatpush.bf16.msra.mxu2 %v9026_v23  ;;  %v2346_v23 = vunpack.c.h.b16 %v961_v38  ;;  %v1042_v50 = vmul.f32 %v10100_v2, %v1041_v43  ;;  %v2411_v63 = vpack.c.b16 %v2347_v1, %v2347_v1  ;;  %v1055_v13 = vstv %s10082_s24  ;;  %s10204_s24 = sld [smem:[#allocation4 + $0x7e]] }
 0x19e   :  { %6225 = vmatpush.bf16.msra.mxu3 %v9034_v24  ;;  %v10068_v15 = vadd.f32 %v5973_v54, %v5961_v11  ;;  %v2412_v54 = vpack.c.b16 %v2348_v52, %v2348_v52  ;;  %v1057_v39 = vmul.f32 %v10052_v26, %v1055_v13 }
 0x19f   :  { %6187 = vmatpush.bf16.msra.mxu0 %v9009_v9  ;;  %v9012_v9 = vld [vmem:[#allocation9 + $0xc40] sm:$0xff]  ;;  %v1044_v10 = vadd.f32 %v1042_v50, %v1037_v49 }
 0x1a0   :  { %6200 = vmatpush.bf16.msra.mxu1 %v9017_v45  ;;  %v10106_v45 = vld [vmem:[%s10244_s0 + $0x18] sm:$0xff] }
 0x1a1   :  { %6213 = vmatpush.bf16.msra.mxu2 %v9025_v47  ;;  %v1008_v47 = vmul.f32 %v10106_v45, %v1006_v46  ;;  %v1043_v55 = vmul.f32 %v10106_v45, %v1041_v43  ;;  %v9041_v46 = vld [vmem:[#allocation9 + $0xd28] sm:$0xff] }
 0x1a2   :  { %6226 = vmatpush.bf16.msra.mxu3 %v9033_v48  ;;  %v1013_v48 = vstv %s10070_s21  ;;  %s10196_s21 = sld [smem:[#allocation4 + $0x7c]] }
 0x1a3   :  { %6188 = vmatpush.bf16.msra.mxu0 %v9008_v56  ;;  %v5962_v21 = vpop.f32.mrf.mxu2  ;;  %v1048_v56 = vstv %s10072_s22  ;;  %v1014_v5 = vmul.f32 %v10119_v4, %v1013_v48  ;;  %v1045_v42 = vadd.f32 %v1043_v55, %v1038_v53  ;;  %v9047_v53 = vld [vmem:[#allocation9 + $0xd58] sm:$0xff]  ;;  %s10198_s22 = sld [smem:[#allocation4 + $0x7d]] }
 0x1a4   :  { %6201 = vmatpush.bf16.msra.mxu1 %v9016_v41  ;;  %v5975_v24 = vpop.f32.mrf.mxu3  ;;  %v9043_v41 = vld [vmem:[#allocation9 + $0xd38] sm:$0xff]  ;;  %v1049_v11 = vmul.f32 %v10119_v4, %v1048_v56  ;;  %v9065_v21 = vld [vmem:[#allocation9 + $0xde8] sm:$0xff] }
 0x1a5   :  { %6214 = vmatpush.bf16.msra.mxu2 %v9024_v59  ;;  %v2410_v59 = vpack.c.b16 %v2346_v23, %v2346_v23  ;;  %v1016_v34 = vadd.f32 %v1014_v5, %v1009_v0  ;;  %v1026_v23 = vstv %s10130_s10  ;;  %v9055_v55 = vld [vmem:[#allocation9 + $0xd98] sm:$0xff] }
 0x1a6   :  { %6227 = vmatpush.bf16.msra.mxu3 %v9032_v60  ;;  %v9059_v60 = vld [vmem:[#allocation9 + $0xdb8] sm:$0xff]  ;;  %v1051_v40 = vadd.f32 %v1049_v11, %v1044_v10  ;;  %v9054_v10 = vld [vmem:[#allocation9 + $0xd90] sm:$0xff] }
 0x1a7   :  { %6189 = vmatpush.bf16.msra.mxu0 %v9007_v62  ;;  %v10125_v62 = vld [vmem:[%s10244_s0 + $0x28] sm:$0xff]  ;;  %s10134_s0 = sld [smem:[#allocation7 + $0x1b]]  ;;  %v9062_v11 = vld [vmem:[#allocation9 + $0xdd0] sm:$0xff] }
 0x1a8   :  { %6202 = vmatpush.bf16.msra.mxu1 %v9015_v6  ;;  %v1015_v6 = vmul.f32 %v10125_v62, %v1013_v48  ;;  %v1050_v28 = vmul.f32 %v10125_v62, %v1048_v56  ;;  %v9064_v48 = vld [vmem:[#allocation9 + $0xde0] sm:$0xff]  ;;  %v9063_v56 = vld [vmem:[#allocation9 + $0xdd8] sm:$0xff] }
 0x1a9   :  { %6215 = vmatpush.bf16.msra.mxu2 %v9023_v7  ;;  %v1010_v7 = vadd.f32 %v1008_v47, %v1003_v3  ;;  %v9040_v3 = vld [vmem:[#allocation9 + $0xd20] sm:$0xff] }
 0x1aa   :  { %6228 = vmatpush.bf16.msra.mxu3 %v9031_v8  ;;  %v1020_v8 = vstv %s10078_s23  ;;  %v9056_v47 = vld [vmem:[#allocation9 + $0xda0] sm:$0xff]  ;;  %s10202_s23 = sld [smem:[#allocation4 + $0x7a]] }
 0x1ab   :  { %6190 = vmatpush.bf16.msra.mxu0 %v9006_v16  ;;  %v9058_v16 = vld [vmem:[#allocation9 + $0xdb0] sm:$0xff]  ;;  %v1022_v38 = vmul.f32 %v10052_v26, %v1020_v8 }
 0x1ac   :  { %6203 = vmatpush.bf16.msra.mxu1 %v9014_v17  ;;  %v9066_v17 = vld [vmem:[#allocation9 + $0xdf0] sm:$0xff] }
 0x1ad   :  { %6216 = vmatpush.bf16.msra.mxu2 %v9022_v29  ;;  %v1021_v29 = vmul.f32 %v10046_v25, %v1020_v8 }
 0x1ae   :  { %6229 = vmatpush.bf16.msra.mxu3 %v9030_v18  ;;  %v1017_v18 = vadd.f32 %v1015_v6, %v1010_v7  ;;  %v9038_v6 = vld [vmem:[#allocation9 + $0xd10] sm:$0xff] }
 0x1af   :  { %6191 = vmatpush.bf16.msra.mxu0 %v9005_v32  ;;  %v1052_v32 = vadd.f32 %v1050_v28, %v1045_v42  ;;  %v1023_v27 = vadd.f32 %v1021_v29, %v1016_v34  ;;  %v9046_v7 = vld [vmem:[#allocation9 + $0xd50] sm:$0xff]  ;;  %v9037_v28 = vld [vmem:[#allocation9 + $0xd08] sm:$0xff]  ;;  %v1106_v29 = vstv %s10147_s11 }
 0x1b0   :  { %6204 = vmatpush.bf16.msra.mxu1 %v9013_v19  ;;  %v1056_v19 = vmul.f32 %v10046_v25, %v1055_v13  ;;  %v1024_v43 = vadd.f32 %v1022_v38, %v1017_v18  ;;  %v1076_v13 = vstv %s10145_s4  ;;  %v1111_v18 = vstv %s10149_s12 }
 0x1b1   :  { %6217 = vmatpush.bf16.msra.mxu2 %v9021_v14  ;;  %v9049_v14 = vld [vmem:[#allocation9 + $0xd68] sm:$0xff]  ;;  %v1059_v1 = vadd.f32 %v1057_v39, %v1052_v32  ;;  %v1027_v50 = vadd.f32 %v1026_v23, %v1023_v27  ;;  %v1078_v27 = vmul.f32 %v10106_v45, %v1076_v13 }
 0x1b2   :  { %6230 = vmatpush.bf16.msra.mxu3 %v9029_v20  ;;  %v9057_v20 = vld [vmem:[#allocation9 + $0xda8] sm:$0xff]  ;;  %v1058_v24 = vadd.f32 %v1056_v19, %v1051_v40 }
 0x1b3   :  { %6192 = vmatpush.bf16.msra.mxu0 %v9004_v44  ;;  %v5986_v22 = vpop.f32.mrf.mxu0 }
 0x1b4   :  { %6205 = vmatpush.bf16.msra.mxu1 %v9012_v9  ;;  %v5987_v33 = vadd.f32 %v5986_v22, %v10068_v15  ;;  %v5999_v44 = vpop.f32.mrf.mxu1  ;;  %v1061_v9 = vstv %s10134_s0  ;;  %v9039_v15 = vld [vmem:[#allocation9 + $0xd18] sm:$0xff]  ;;  %v1107_v22 = vmul.f32 %v10088_v31, %v1106_v29 }
 0x1b5   :  { %6218 = vmatpush.bf16.msra.mxu2 %v9020_v51  ;;  %v1028_v51 = vadd.f32 %v1026_v23, %v1024_v43  ;;  %v1063_v52 = vadd.f32 %v1061_v9, %v1059_v1  ;;  %v1083_v43 = vstv %s10153_s14  ;;  %v1112_v23 = vmul.f32 %v10100_v2, %v1111_v18  ;;  %v9060_v1 = vld [vmem:[#allocation9 + $0xdc0] sm:$0xff] }
 0x1b6   :  { %6231 = vmatpush.bf16.msra.mxu3 %v9028_v37  ;;  %6193 = vmatmul.bf16.vlgmr.msra.gmra.mxu0 %v2409_v58  ;;  %v6000_v49 = vadd.f32 %v5999_v44, %v5987_v33  ;;  %v1062_v37 = vadd.f32 %v1061_v9, %v1058_v24  ;;  %v9052_v24 = vld [vmem:[#allocation9 + $0xd80] sm:$0xff]  ;;  %v1118_v44 = vstv %s10155_s13  ;;  %v9075_v9 = vld [vmem:[#allocation9 + $0xe38] sm:$0xff] }
 0x1b7   :  { %6237 = vmatpush.bf16.msrb.mxu0 %v9043_v41  ;;  %6206 = vmatmul.bf16.vlgmr.msra.gmra.mxu1 %v2410_v59  ;;  %v1029_v59 = vmax.f32 %v1027_v50, 0.0  ;;  %v9091_v50 = vld [vmem:[#allocation9 + $0xeb8] sm:$0xff] }
 0x1b8   :  { %6250 = vmatpush.bf16.msrb.mxu1 %v9051_v57  ;;  %6219 = vmatmul.bf16.vlgmr.msra.gmra.mxu2 %v2411_v63  ;;  %v1065_v63 = vmax.f32 %v1063_v52, 0.0 }
 0x1b9   :  { %6263 = vmatpush.bf16.msrb.mxu2 %v9059_v60  ;;  %6232 = vmatmul.bf16.vlgmr.msra.gmra.mxu3 %v2412_v54  ;;  %v1030_v60 = vmax.f32 %v1028_v51, 0.0  ;;  %v9099_v51 = vld [vmem:[#allocation9 + $0xef8] sm:$0xff] }
 0x1ba   :  { %6276 = vmatpush.bf16.msrb.mxu3 %v9067_v61  ;;  %v1064_v61 = vmax.f32 %v1062_v37, 0.0 }
 0x1bb   :  { %6238 = vmatpush.bf16.msrb.mxu0 %v9042_v30  ;;  %v6012_v41 = vpop.f32.mrf.mxu2  ;;  %v5988_v0 = vpop.f32.mrf.mxu0  ;;  %v1031_v54 = vpack.c.bf16 %v1030_v60, %v1029_v59  ;;  %v9045_v30 = vld [vmem:[#allocation9 + $0xd48] sm:$0xff]  ;;  %v1120_v60 = vmul.f32 %v10125_v62, %v1118_v44 }
 0x1bc   :  { %6251 = vmatpush.bf16.msrb.mxu1 %v9050_v12  ;;  %v6013_v57 = vadd.f32 %v6012_v41, %v6000_v49  ;;  %v6025_v58 = vpop.f32.mrf.mxu3  ;;  %v6001_v8 = vpop.f32.mrf.mxu1  ;;  %v1066_v42 = vpack.c.bf16 %v1065_v63, %v1064_v61  ;;  %v1071_v12 = vstv %s10143_s3  ;;  %v1114_v41 = vadd.f32 %v1112_v23, %v1107_v22  ;;  %v9074_v61 = vld [vmem:[#allocation9 + $0xe30] sm:$0xff] }
 0x1bd   :  { %6264 = vmatpush.bf16.msrb.mxu2 %v9058_v16  ;;  %v9053_v16 = vld [vmem:[#allocation9 + $0xd88] sm:$0xff]  ;;  %v2349_v38 = vunpack.c.l.b16 %v1031_v54  ;;  %v2350_v40 = vunpack.c.h.b16 %v1031_v54  ;;  %v1072_v39 = vmul.f32 %v10088_v31, %v1071_v12  ;;  %v9082_v63 = vld [vmem:[#allocation9 + $0xe70] sm:$0xff]  ;;  %v1125_v0 = vstv %s10163_s16 }
 0x1be   :  { %6277 = vmatpush.bf16.msrb.mxu3 %v9066_v17  ;;  %v10151_v5 = vadd.f32 %v6025_v58, %v6013_v57  ;;  %v9061_v17 = vld [vmem:[#allocation9 + $0xdc8] sm:$0xff]  ;;  %v2351_v19 = vunpack.c.l.b16 %v1066_v42  ;;  %v2352_v33 = vunpack.c.h.b16 %v1066_v42  ;;  %v1119_v57 = vmul.f32 %v10119_v4, %v1118_v44  ;;  %v9095_v44 = vld [vmem:[#allocation9 + $0xed8] sm:$0xff] }
 0x1bf   :  { %6239 = vmatpush.bf16.msrb.mxu0 %v9041_v46  ;;  %v1073_v46 = vmul.f32 %v10094_v35, %v1071_v12  ;;  %v2414_v49 = vpack.c.b16 %v2350_v40, %v2350_v40  ;;  %v1127_v12 = vmul.f32 %v10052_v26, %v1125_v0 }
 0x1c0   :  { %6252 = vmatpush.bf16.msrb.mxu1 %v9049_v14  ;;  %v1077_v14 = vmul.f32 %v10100_v2, %v1076_v13  ;;  %v2415_v37 = vpack.c.b16 %v2351_v19, %v2351_v19  ;;  %v2416_v58 = vpack.c.b16 %v2352_v33, %v2352_v33  ;;  %v1121_v42 = vadd.f32 %v1119_v57, %v1114_v41  ;;  %v9073_v13 = vld [vmem:[#allocation9 + $0xe28] sm:$0xff]  ;;  %v9086_v41 = vld [vmem:[#allocation9 + $0xe90] sm:$0xff] }
 0x1c1   :  { %6265 = vmatpush.bf16.msrb.mxu2 %v9057_v20  ;;  %v9036_v20 = vld [vmem:[#allocation9 + $0xd00] sm:$0xff]  ;;  %v9094_v57 = vld [vmem:[#allocation9 + $0xed0] sm:$0xff] }
 0x1c2   :  { %6278 = vmatpush.bf16.msrb.mxu3 %v9065_v21  ;;  %v9044_v21 = vld [vmem:[#allocation9 + $0xd40] sm:$0xff]  ;;  %v1079_v52 = vadd.f32 %v1077_v14, %v1072_v39 }
 0x1c3   :  { %6240 = vmatpush.bf16.msrb.mxu0 %v9040_v3  ;;  %v6014_v34 = vpop.f32.mrf.mxu2  ;;  %v1108_v3 = vmul.f32 %v10094_v35, %v1106_v29  ;;  %v9072_v39 = vld [vmem:[#allocation9 + $0xe20] sm:$0xff] }
 0x1c4   :  { %6253 = vmatpush.bf16.msrb.mxu1 %v9048_v36  ;;  %v6027_v32 = vpop.f32.mrf.mxu3  ;;  %v1113_v36 = vmul.f32 %v10106_v45, %v1111_v18  ;;  %v9097_v34 = vld [vmem:[#allocation9 + $0xee8] sm:$0xff] }
 0x1c5   :  { %6266 = vmatpush.bf16.msrb.mxu2 %v9056_v47  ;;  %v9083_v47 = vld [vmem:[#allocation9 + $0xe78] sm:$0xff] }
 0x1c6   :  { %6279 = vmatpush.bf16.msrb.mxu3 %v9064_v48  ;;  %v2413_v48 = vpack.c.b16 %v2349_v38, %v2349_v38  ;;  %v1115_v59 = vadd.f32 %v1113_v36, %v1108_v3  ;;  %v9071_v3 = vld [vmem:[#allocation9 + $0xe18] sm:$0xff] }
 0x1c7   :  { %6241 = vmatpush.bf16.msrb.mxu0 %v9039_v15  ;;  %v1084_v15 = vmul.f32 %v10119_v4, %v1083_v43  ;;  %v9087_v36 = vld [vmem:[#allocation9 + $0xe98] sm:$0xff] }
 0x1c8   :  { %6254 = vmatpush.bf16.msrb.mxu1 %v9047_v53  ;;  %v1085_v53 = vmul.f32 %v10125_v62, %v1083_v43  ;;  %v9096_v43 = vld [vmem:[#allocation9 + $0xee0] sm:$0xff] }
 0x1c9   :  { %6267 = vmatpush.bf16.msrb.mxu2 %v9055_v55  ;;  %v1080_v55 = vadd.f32 %v1078_v27, %v1073_v46  ;;  %v1086_v8 = vadd.f32 %v1084_v15, %v1079_v52  ;;  %v9080_v46 = vld [vmem:[#allocation9 + $0xe60] sm:$0xff] }
 0x1ca   :  { %6280 = vmatpush.bf16.msrb.mxu3 %v9063_v56  ;;  %v1090_v56 = vstv %s10159_s15  ;;  %v9088_v27 = vld [vmem:[#allocation9 + $0xea0] sm:$0xff] }
 0x1cb   :  { %6242 = vmatpush.bf16.msrb.mxu0 %v9038_v6  ;;  %v9090_v6 = vld [vmem:[#allocation9 + $0xeb0] sm:$0xff]  ;;  %v1092_v54 = vmul.f32 %v10052_v26, %v1090_v56 }
 0x1cc   :  { %6255 = vmatpush.bf16.msrb.mxu1 %v9046_v7  ;;  %v9098_v7 = vld [vmem:[#allocation9 + $0xef0] sm:$0xff] }
 0x1cd   :  { %6268 = vmatpush.bf16.msrb.mxu2 %v9054_v10  ;;  %v1091_v10 = vmul.f32 %v10046_v25, %v1090_v56 }
 0x1ce   :  { %6281 = vmatpush.bf16.msrb.mxu3 %v9062_v11  ;;  %v1087_v11 = vadd.f32 %v1085_v53, %v1080_v55  ;;  %v9070_v53 = vld [vmem:[#allocation9 + $0xe10] sm:$0xff] }
 0x1cf   :  { %6243 = vmatpush.bf16.msrb.mxu0 %v9037_v28  ;;  %v1122_v28 = vadd.f32 %v1120_v60, %v1115_v59  ;;  %v1093_v18 = vadd.f32 %v1091_v10, %v1086_v8  ;;  %v9078_v55 = vld [vmem:[#allocation9 + $0xe50] sm:$0xff]  ;;  %v9069_v60 = vld [vmem:[#allocation9 + $0xe08] sm:$0xff]  ;;  %v1146_v8 = vstv %s10194_s20 }
 0x1d0   :  { %6256 = vmatpush.bf16.msrb.mxu1 %v9045_v30  ;;  %v1126_v30 = vmul.f32 %v10046_v25, %v1125_v0  ;;  %v1094_v38 = vadd.f32 %v1092_v54, %v1087_v11  ;;  %v9093_v0 = vld [vmem:[#allocation9 + $0xec8] sm:$0xff]  ;;  %v1176_v11 = vstv %s10196_s21  ;;  %v1181_v54 = vstv %s10198_s22 }
 0x1d1   :  { %6269 = vmatpush.bf16.msrb.mxu2 %v9053_v16  ;;  %v9081_v16 = vld [vmem:[#allocation9 + $0xe68] sm:$0xff]  ;;  %v1129_v32 = vadd.f32 %v1127_v12, %v1122_v28  ;;  %v9068_v12 = vld [vmem:[#allocation9 + $0xe00] sm:$0xff] }
 0x1d2   :  { %6282 = vmatpush.bf16.msrb.mxu3 %v9061_v17  ;;  %v9089_v17 = vld [vmem:[#allocation9 + $0xea8] sm:$0xff]  ;;  %v1128_v40 = vadd.f32 %v1126_v30, %v1121_v42 }
 0x1d3   :  { %6244 = vmatpush.bf16.msrb.mxu0 %v9036_v20  ;;  %v6038_v29 = vpop.f32.mrf.mxu0  ;;  %v1096_v20 = vstv %s10179_s17 }
 0x1d4   :  { %6257 = vmatpush.bf16.msrb.mxu1 %v9044_v21  ;;  %v6039_v19 = vadd.f32 %v6038_v29, %v10151_v5  ;;  %v6051_v14 = vpop.f32.mrf.mxu1  ;;  %v1131_v21 = vstv %s10183_s18  ;;  %v1097_v23 = vadd.f32 %v1096_v20, %v1093_v18  ;;  %v9079_v5 = vld [vmem:[#allocation9 + $0xe58] sm:$0xff]  ;;  %v1147_v29 = vmul.f32 %v10100_v2, %v1146_v8  ;;  %v9084_v18 = vld [vmem:[#allocation9 + $0xe80] sm:$0xff] }
 0x1d5   :  { %6270 = vmatpush.bf16.msrb.mxu2 %v9052_v24  ;;  %v1098_v24 = vadd.f32 %v1096_v20, %v1094_v38  ;;  %v1133_v33 = vadd.f32 %v1131_v21, %v1129_v32  ;;  %v9092_v38 = vld [vmem:[#allocation9 + $0xec0] sm:$0xff]  ;;  %v1153_v32 = vstv %s10202_s23  ;;  %v1178_v20 = vmul.f32 %v10094_v35, %v1176_v11 }
 0x1d6   :  { %6283 = vmatpush.bf16.msrb.mxu3 %v9060_v1  ;;  %6245 = vmatmul.bf16.vlgmr.msrb.gmra.mxu0 %v2413_v48  ;;  %v6052_v22 = vadd.f32 %v6051_v14, %v6039_v19  ;;  %v1132_v1 = vadd.f32 %v1131_v21, %v1128_v40  ;;  %v1148_v40 = vmul.f32 %v10106_v45, %v1146_v8  ;;  %v9115_v14 = vld [vmem:[#allocation9 + $0xf78] sm:$0xff] }
 0x1d7   :  { %6289 = vmatpush.bf16.msra.mxu0 %v9075_v9  ;;  %6258 = vmatmul.bf16.vlgmr.msrb.gmra.mxu1 %v2414_v49  ;;  %v1099_v49 = vmax.f32 %v1097_v23, 0.0  ;;  %v1177_v19 = vmul.f32 %v10088_v31, %v1176_v11  ;;  %v1183_v21 = vmul.f32 %v10106_v45, %v1181_v54  ;;  %v1160_v45 = vstv %s10208_s25 }
 0x1d8   :  { %6302 = vmatpush.bf16.msra.mxu1 %v9083_v47  ;;  %6271 = vmatmul.bf16.vlgmr.msrb.gmra.mxu2 %v2415_v37  ;;  %v1135_v37 = vmax.f32 %v1133_v33, 0.0 }
 0x1d9   :  { %6315 = vmatpush.bf16.msra.mxu2 %v9091_v50  ;;  %6284 = vmatmul.bf16.vlgmr.msrb.gmra.mxu3 %v2416_v58  ;;  %v1100_v50 = vmax.f32 %v1098_v24, 0.0 }
 0x1da   :  { %6328 = vmatpush.bf16.msra.mxu3 %v9099_v51  ;;  %v1134_v51 = vmax.f32 %v1132_v1, 0.0  ;;  %v1188_v1 = vstv %s10204_s24 }
 0x1db   :  { %6290 = vmatpush.bf16.msra.mxu0 %v9074_v61  ;;  %v6064_v9 = vpop.f32.mrf.mxu2  ;;  %v6040_v52 = vpop.f32.mrf.mxu0  ;;  %v1101_v58 = vpack.c.bf16 %v1100_v50, %v1099_v49  ;;  %v9077_v61 = vld [vmem:[#allocation9 + $0xe48] sm:$0xff]  ;;  %v1195_v49 = vstv %s10212_s26  ;;  %v9122_v50 = vld [vmem:[#allocation9 + $0xfb0] sm:$0xff] }
 0x1dc   :  { %6303 = vmatpush.bf16.msra.mxu1 %v9082_v63  ;;  %v6065_v47 = vadd.f32 %v6064_v9, %v6052_v22  ;;  %v6077_v48 = vpop.f32.mrf.mxu3  ;;  %v6053_v56 = vpop.f32.mrf.mxu1  ;;  %v1136_v59 = vpack.c.bf16 %v1135_v37, %v1134_v51  ;;  %v9085_v63 = vld [vmem:[#allocation9 + $0xe88] sm:$0xff]  ;;  %v1185_v9 = vadd.f32 %v1183_v21, %v1178_v20  ;;  %v9130_v51 = vld [vmem:[#allocation9 + $0xff0] sm:$0xff]  ;;  %v1161_v52 = vmul.f32 %v10046_v25, %v1160_v45 }
 0x1dd   :  { %6316 = vmatpush.bf16.msra.mxu2 %v9090_v6  ;;  %v2353_v42 = vunpack.c.l.b16 %v1101_v58  ;;  %v2354_v30 = vunpack.c.h.b16 %v1101_v58  ;;  %v9113_v56 = vld [vmem:[#allocation9 + $0xf68] sm:$0xff]  ;;  %v1197_v58 = vmul.f32 %v10052_v26, %v1195_v49  ;;  %v9102_v20 = vld [vmem:[#allocation9 + $0xf10] sm:$0xff] }
 0x1de   :  { %6329 = vmatpush.bf16.msra.mxu3 %v9098_v7  ;;  %v10200_v15 = vadd.f32 %v6077_v48, %v6065_v47  ;;  %v1141_v7 = vstv %s10192_s19  ;;  %v2355_v28 = vunpack.c.l.b16 %v1136_v59  ;;  %v1189_v47 = vmul.f32 %v10119_v4, %v1188_v1  ;;  %v9110_v21 = vld [vmem:[#allocation9 + $0xf50] sm:$0xff] }
 0x1df   :  { %6291 = vmatpush.bf16.msra.mxu0 %v9073_v13  ;;  %v9076_v13 = vld [vmem:[#allocation9 + $0xe40] sm:$0xff]  ;;  %v2417_v22 = vpack.c.b16 %v2353_v42, %v2353_v42  ;;  %v2418_v24 = vpack.c.b16 %v2354_v30, %v2354_v30  ;;  %v1190_v48 = vmul.f32 %v10125_v62, %v1188_v1 }
 0x1e0   :  { %6304 = vmatpush.bf16.msra.mxu1 %v9081_v16  ;;  %v2356_v16 = vunpack.c.h.b16 %v1136_v59  ;;  %v2419_v23 = vpack.c.b16 %v2355_v28, %v2355_v28  ;;  %v9121_v59 = vld [vmem:[#allocation9 + $0xfa8] sm:$0xff]  ;;  %v9128_v42 = vld [vmem:[#allocation9 + $0xfe0] sm:$0xff]  ;;  %v1201_v28 = vstv %s10232_s28 }
 0x1e1   :  { %6317 = vmatpush.bf16.msra.mxu2 %v9089_v17  ;;  %v1142_v17 = vmul.f32 %v10088_v31, %v1141_v7  ;;  %v1154_v31 = vmul.f32 %v10119_v4, %v1153_v32  ;;  %v1196_v4 = vmul.f32 %v10046_v25, %v1195_v49 }
 0x1e2   :  { %6330 = vmatpush.bf16.msra.mxu3 %v9097_v34  ;;  %v1143_v34 = vmul.f32 %v10094_v35, %v1141_v7  ;;  %v2420_v33 = vpack.c.b16 %v2356_v16, %v2356_v16  ;;  %v1155_v35 = vmul.f32 %v10125_v62, %v1153_v32  ;;  %v9105_v62 = vld [vmem:[#allocation9 + $0xf28] sm:$0xff]  ;;  %v9112_v7 = vld [vmem:[#allocation9 + $0xf60] sm:$0xff]  ;;  %v9103_v16 = vld [vmem:[#allocation9 + $0xf18] sm:$0xff] }
 0x1e3   :  { %6292 = vmatpush.bf16.msra.mxu0 %v9072_v39  ;;  %v6066_v6 = vpop.f32.mrf.mxu2  ;;  %v1182_v39 = vmul.f32 %v10100_v2, %v1181_v54 }
 0x1e4   :  { %6305 = vmatpush.bf16.msra.mxu1 %v9080_v46  ;;  %v6079_v10 = vpop.f32.mrf.mxu3  ;;  %v9107_v46 = vld [vmem:[#allocation9 + $0xf38] sm:$0xff]  ;;  %v1150_v2 = vadd.f32 %v1148_v40, %v1143_v34  ;;  %v9104_v6 = vld [vmem:[#allocation9 + $0xf20] sm:$0xff] }
 0x1e5   :  { %6318 = vmatpush.bf16.msra.mxu2 %v9088_v27  ;;  %v9123_v27 = vld [vmem:[#allocation9 + $0xfb8] sm:$0xff]  ;;  %v1166_v10 = vstv %s10227_s27 }
 0x1e6   :  { %6331 = vmatpush.bf16.msra.mxu3 %v9096_v43  ;;  %v9131_v43 = vld [vmem:[#allocation9 + $0xff8] sm:$0xff] }
 0x1e7   :  { %6293 = vmatpush.bf16.msra.mxu0 %v9071_v3  ;;  %v1149_v3 = vadd.f32 %v1147_v29, %v1142_v17  ;;  %v9111_v17 = vld [vmem:[#allocation9 + $0xf58] sm:$0xff] }
 0x1e8   :  { %6306 = vmatpush.bf16.msra.mxu1 %v9079_v5  ;;  %v1184_v5 = vadd.f32 %v1182_v39, %v1177_v19  ;;  %v9119_v29 = vld [vmem:[#allocation9 + $0xf98] sm:$0xff] }
 0x1e9   :  { %6319 = vmatpush.bf16.msra.mxu2 %v9087_v36  ;;  %v9106_v36 = vld [vmem:[#allocation9 + $0xf30] sm:$0xff]  ;;  %v1156_v37 = vadd.f32 %v1154_v31, %v1149_v3  ;;  %v9109_v3 = vld [vmem:[#allocation9 + $0xf48] sm:$0xff] }
 0x1ea   :  { %6332 = vmatpush.bf16.msra.mxu3 %v9095_v44  ;;  %v9114_v44 = vld [vmem:[#allocation9 + $0xf70] sm:$0xff] }
 0x1eb   :  { %6294 = vmatpush.bf16.msra.mxu0 %v9070_v53  ;;  %v1157_v53 = vadd.f32 %v1155_v35, %v1150_v2  ;;  %v9117_v2 = vld [vmem:[#allocation9 + $0xf88] sm:$0xff] }
 0x1ec   :  { %6307 = vmatpush.bf16.msra.mxu1 %v9078_v55  ;;  %v1162_v55 = vmul.f32 %v10052_v26, %v1160_v45  ;;  %v9120_v26 = vld [vmem:[#allocation9 + $0xfa0] sm:$0xff]  ;;  %v9125_v35 = vld [vmem:[#allocation9 + $0xfc8] sm:$0xff] }
 0x1ed   :  { %6320 = vmatpush.bf16.msra.mxu2 %v9086_v41  ;;  %v1191_v41 = vadd.f32 %v1189_v47, %v1184_v5  ;;  %v9108_v47 = vld [vmem:[#allocation9 + $0xf40] sm:$0xff] }
 0x1ee   :  { %6333 = vmatpush.bf16.msra.mxu3 %v9094_v57  ;;  %v1192_v57 = vadd.f32 %v1190_v48, %v1185_v9  ;;  %v9100_v9 = vld [vmem:[#allocation9 + $0xf00] sm:$0xff] }
 0x1ef   :  { %6295 = vmatpush.bf16.msra.mxu0 %v9069_v60  ;;  %v9129_v60 = vld [vmem:[#allocation9 + $0xfe8] sm:$0xff]  ;;  %v1198_v11 = vadd.f32 %v1196_v4, %v1191_v41 }
 0x1f0   :  { %6308 = vmatpush.bf16.msra.mxu1 %v9077_v61  ;;  %v1199_v54 = vadd.f32 %v1197_v58, %v1192_v57 }
 0x1f1   :  { %6321 = vmatpush.bf16.msra.mxu2 %v9085_v63  ;;  %v1163_v63 = vadd.f32 %v1161_v52, %v1156_v37  ;;  %v1202_v34 = vadd.f32 %v1201_v28, %v1198_v11 }
 0x1f2   :  { %6334 = vmatpush.bf16.msra.mxu3 %v9093_v0  ;;  %v1164_v0 = vadd.f32 %v1162_v55, %v1157_v53 }
 0x1f3   :  { %6296 = vmatpush.bf16.msra.mxu0 %v9068_v12  ;;  %v6090_v61 = vpop.f32.mrf.mxu0  ;;  %v1167_v12 = vadd.f32 %v1166_v10, %v1163_v63 }
 0x1f4   :  { %6309 = vmatpush.bf16.msra.mxu1 %v9076_v13  ;;  %v6091_v25 = vadd.f32 %v6090_v61, %v10200_v15  ;;  %v6103_v8 = vpop.f32.mrf.mxu1  ;;  %v1168_v13 = vadd.f32 %v1166_v10, %v1164_v0  ;;  %v1203_v15 = vadd.f32 %v1201_v28, %v1199_v54 }
 0x1f5   :  { %6322 = vmatpush.bf16.msra.mxu2 %v9084_v18  ;;  %v9127_v18 = vld [vmem:[#allocation9 + $0xfd8] sm:$0xff]  ;;  %v1169_v19 = vmax.f32 %v1167_v12, 0.0 }
 0x1f6   :  { %6335 = vmatpush.bf16.msra.mxu3 %v9092_v38  ;;  %6297 = vmatmul.bf16.vlgmr.msra.gmra.mxu0 %v2417_v22  ;;  %v6104_v30 = vadd.f32 %v6103_v8, %v6091_v25  ;;  %v1170_v39 = vmax.f32 %v1168_v13, 0.0 }
 0x1f7   :  { %6341 = vmatpush.bf16.msrb.mxu0 %v9107_v46  ;;  %6310 = vmatmul.bf16.vlgmr.msra.gmra.mxu1 %v2418_v24  ;;  %v9126_v24 = vld [vmem:[#allocation9 + $0xfd0] sm:$0xff] }
 0x1f8   :  { %6354 = vmatpush.bf16.msrb.mxu1 %v9115_v14  ;;  %6323 = vmatmul.bf16.vlgmr.msra.gmra.mxu2 %v2419_v23  ;;  %v9118_v23 = vld [vmem:[#allocation9 + $0xf90] sm:$0xff]  ;;  %v1171_v1 = vpack.c.bf16 %v1170_v39, %v1169_v19 }
 0x1f9   :  { %6367 = vmatpush.bf16.msrb.mxu2 %v9123_v27  ;;  %6336 = vmatmul.bf16.vlgmr.msra.gmra.mxu3 %v2420_v33  ;;  %v1204_v27 = vmax.f32 %v1202_v34, 0.0  ;;  %v9101_v33 = vld [vmem:[#allocation9 + $0xf08] sm:$0xff] }
 0x1fa   :  { %6380 = vmatpush.bf16.msrb.mxu3 %v9131_v43  ;;  %v1205_v43 = vmax.f32 %v1203_v15, 0.0 }
 0x1fb   :  { %6342 = vmatpush.bf16.msrb.mxu0 %v9106_v36  ;;  %v6116_v38 = vpop.f32.mrf.mxu2  ;;  %v6092_v46 = vpop.f32.mrf.mxu0  ;;  %v2357_v36 = vunpack.c.l.b16 %v1171_v1 }
 0x1fc   :  { %6355 = vmatpush.bf16.msrb.mxu1 %v9114_v44  ;;  %v6117_v40 = vadd.f32 %v6116_v38, %v6104_v30  ;;  %v6129_v32 = vpop.f32.mrf.mxu3  ;;  %v6105_v22 = vpop.f32.mrf.mxu1  ;;  %v1206_v31 = vpack.c.bf16 %v1205_v43, %v1204_v27  ;;  %v2358_v44 = vunpack.c.h.b16 %v1171_v1 }
 0x1fd   :  { %6368 = vmatpush.bf16.msrb.mxu2 %v9122_v50  ;;  %v9116_v50 = vld [vmem:[#allocation9 + $0xf80] sm:$0xff]  ;;  %v2421_v37 = vpack.c.b16 %v2357_v36, %v2357_v36 }
 0x1fe   :  { %6381 = vmatpush.bf16.msrb.mxu3 %v9130_v51  ;;  %v6130_v14 = vadd.f32 %v6129_v32, %v6117_v40  ;;  %v2359_v48 = vunpack.c.l.b16 %v1206_v31  ;;  %v2360_v49 = vunpack.c.h.b16 %v1206_v31  ;;  %v9124_v51 = vld [vmem:[#allocation9 + $0xfc0] sm:$0xff]  ;;  %v2422_v52 = vpack.c.b16 %v2358_v44, %v2358_v44 }
 0x1ff   :  { %6343 = vmatpush.bf16.msrb.mxu0 %v9105_v62 }
 0x200   :  { %6356 = vmatpush.bf16.msrb.mxu1 %v9113_v56  ;;  %v2423_v53 = vpack.c.b16 %v2359_v48, %v2359_v48  ;;  %v2424_v55 = vpack.c.b16 %v2360_v49, %v2360_v49 }
 0x201   :  { %6369 = vmatpush.bf16.msrb.mxu2 %v9121_v59 }
 0x202   :  { %6382 = vmatpush.bf16.msrb.mxu3 %v9129_v60 }
 0x203   :  { %6344 = vmatpush.bf16.msrb.mxu0 %v9104_v6  ;;  %v6118_v45 = vpop.f32.mrf.mxu2 }
 0x204   :  { %6357 = vmatpush.bf16.msrb.mxu1 %v9112_v7  ;;  %v6131_v5 = vpop.f32.mrf.mxu3 }
 0x205   :  { %6370 = vmatpush.bf16.msrb.mxu2 %v9120_v26 }
 0x206   :  { %6383 = vmatpush.bf16.msrb.mxu3 %v9128_v42 }
 0x207   :  { %6345 = vmatpush.bf16.msrb.mxu0 %v9103_v16 }
 0x208   :  { %6358 = vmatpush.bf16.msrb.mxu1 %v9111_v17 }
 0x209   :  { %6371 = vmatpush.bf16.msrb.mxu2 %v9119_v29 }
 0x20a   :  { %6384 = vmatpush.bf16.msrb.mxu3 %v9127_v18 }
 0x20b   :  { %6346 = vmatpush.bf16.msrb.mxu0 %v9102_v20 }
 0x20c   :  { %6359 = vmatpush.bf16.msrb.mxu1 %v9110_v21 }
 0x20d   :  { %6372 = vmatpush.bf16.msrb.mxu2 %v9118_v23 }
 0x20e   :  { %6385 = vmatpush.bf16.msrb.mxu3 %v9126_v24 }
 0x20f   :  { %6347 = vmatpush.bf16.msrb.mxu0 %v9101_v33 }
 0x210   :  { %6360 = vmatpush.bf16.msrb.mxu1 %v9109_v3 }
 0x211   :  { %6373 = vmatpush.bf16.msrb.mxu2 %v9117_v2 }
 0x212   :  { %6386 = vmatpush.bf16.msrb.mxu3 %v9125_v35 }
 0x213   :  { %6348 = vmatpush.bf16.msrb.mxu0 %v9100_v9  ;;  %v6142_v4 = vpop.f32.mrf.mxu0 }
 0x214   :  { %6361 = vmatpush.bf16.msrb.mxu1 %v9108_v47  ;;  %v6143_v62 = vadd.f32 %v6142_v4, %v6130_v14  ;;  %v6155_v56 = vpop.f32.mrf.mxu1  ;;  %v9138_v47 = vld [vmem:[#allocation10] ss:$0 sm:$0xff] }
 0x215   :  { %6374 = vmatpush.bf16.msrb.mxu2 %v9116_v50 }
 0x216   :  { %6387 = vmatpush.bf16.msrb.mxu3 %v9124_v51  ;;  %6349 = vmatmul.bf16.vlgmr.msrb.gmra.mxu0 %v2421_v37  ;;  %v6156_v41 = vadd.f32 %v6155_v56, %v6143_v62 }
 0x217   :  { %6362 = vmatmul.bf16.vlgmr.msrb.gmra.mxu1 %v2422_v52 }
 0x218   :  { %6375 = vmatmul.bf16.vlgmr.msrb.gmra.mxu2 %v2423_v53 }
 0x219   :  { %6388 = vmatmul.bf16.vlgmr.msrb.gmra.mxu3 %v2424_v55 }
 0x21b   :  { %v6168_v57 = vpop.f32.mrf.mxu2  ;;  %v6144_v60 = vpop.f32.mrf.mxu0 }
 0x21c   :  { %v6169_v58 = vadd.f32 %v6168_v57, %v6156_v41  ;;  %v6181_v59 = vpop.f32.mrf.mxu3  ;;  %v6157_v63 = vpop.f32.mrf.mxu1 }
 0x21e   :  { %v6182_v61 = vadd.f32 %v6181_v59, %v6169_v58 }
 0x223   :  { %v6170_v0 = vpop.f32.mrf.mxu2 }
 0x224   :  { %v6183_v25 = vpop.f32.mrf.mxu3 }
 0x233   :  { %v6194_v6 = vpop.f32.mrf.mxu0 }
 0x234   :  { %v6195_v7 = vadd.f32 %v6194_v6, %v6182_v61  ;;  %v6207_v8 = vpop.f32.mrf.mxu1 }
 0x236   :  { %v6208_v10 = vadd.f32 %v6207_v8, %v6195_v7 }
 0x23b   :  { %v6220_v11 = vpop.f32.mrf.mxu2  ;;  %v6196_v42 = vpop.f32.mrf.mxu0 }
 0x23c   :  { %v6221_v54 = vadd.f32 %v6220_v11, %v6208_v10  ;;  %v6233_v26 = vpop.f32.mrf.mxu3  ;;  %v6209_v30 = vpop.f32.mrf.mxu1 }
 0x23e   :  { %v6234_v28 = vadd.f32 %v6233_v26, %v6221_v54 }
 0x243   :  { %v6222_v12 = vpop.f32.mrf.mxu2 }
 0x244   :  { %v6235_v13 = vpop.f32.mrf.mxu3 }
 0x253   :  { %v6246_v16 = vpop.f32.mrf.mxu0 }
 0x254   :  { %v6259_v17 = vpop.f32.mrf.mxu1  ;;  %v6247_v46 = vadd.f32 %v6246_v16, %v6234_v28 }
 0x256   :  { %v6260_v27 = vadd.f32 %v6259_v17, %v6247_v46 }
 0x25b   :  { %v6272_v34 = vpop.f32.mrf.mxu2  ;;  %v6248_v29 = vpop.f32.mrf.mxu0 }
 0x25c   :  { %v6285_v15 = vpop.f32.mrf.mxu3  ;;  %v6261_v18 = vpop.f32.mrf.mxu1  ;;  %v6273_v43 = vadd.f32 %v6272_v34, %v6260_v27 }
 0x25e   :  { %v6286_v24 = vadd.f32 %v6285_v15, %v6273_v43 }
 0x263   :  { %v6274_v38 = vpop.f32.mrf.mxu2 }
 0x264   :  { %v6287_v40 = vpop.f32.mrf.mxu3 }
 0x273   :  { %v6298_v32 = vpop.f32.mrf.mxu0 }
 0x274   :  { %v6311_v19 = vpop.f32.mrf.mxu1  ;;  %v6299_v1 = vadd.f32 %v6298_v32, %v6286_v24 }
 0x276   :  { %v6312_v33 = vadd.f32 %v6311_v19, %v6299_v1 }
 0x27b   :  { %v6324_v39 = vpop.f32.mrf.mxu2  ;;  %v6300_v20 = vpop.f32.mrf.mxu0 }
 0x27c   :  { %v6337_v14 = vpop.f32.mrf.mxu3  ;;  %v6313_v21 = vpop.f32.mrf.mxu1  ;;  %v6325_v3 = vadd.f32 %v6324_v39, %v6312_v33 }
 0x27e   :  { %v6338_v31 = vadd.f32 %v6337_v14, %v6325_v3 }
 0x283   :  { %v6326_v22 = vpop.f32.mrf.mxu2 }
 0x284   :  { %v6339_v23 = vpop.f32.mrf.mxu3 }
 0x293   :  { %v6350_v2 = vpop.f32.mrf.mxu0 }
 0x294   :  { %v6363_v35 = vpop.f32.mrf.mxu1  ;;  %v6351_v45 = vadd.f32 %v6350_v2, %v6338_v31 }
 0x296   :  { %v6364_v5 = vadd.f32 %v6363_v35, %v6351_v45 }
 0x29b   :  { %v6376_v36 = vpop.f32.mrf.mxu2  ;;  %v6352_v48 = vpop.f32.mrf.mxu0 }
 0x29c   :  { %v6389_v44 = vpop.f32.mrf.mxu3  ;;  %v6377_v9 = vadd.f32 %v6376_v36, %v6364_v5  ;;  %v6365_v49 = vpop.f32.mrf.mxu1 }
 0x29e   :  { %v6390_v50 = vadd.f32 %v6389_v44, %v6377_v9 }
 0x2a0   :  { %v6403_v51 = vadd.f32 %v9138_v47, %v6390_v50 }
 0x2a2   :  { %v6404_v37 = vmax.f32 %v6403_v51, 0.0 }
 0x2a3   :  { %v6378_v52 = vpop.f32.mrf.mxu2 }
 0x2a4   :  { %v6391_v53 = vpop.f32.mrf.mxu3  ;;  %6405 = vst [vmem:[%s10249_s5] sm:$0xff] %v6404_v37 }
 0x2a5   :  { %6410 = vsyncpa [#allocation5], 1 }
 0x2a6   :  { %6411 = vsyncpa [#allocation11], 1 }
 0x2a7   :  { %6412 = vsyncpa [#allocation6], 1 }
 0x2a8   :  { %6413 = vsyncpa [#allocation8], 1 }

</bundles_post_ra>
